<compile_context>
chip_gen: v6e
topology: v6e:2x2x1
jax: 0.10.0
libtpu: 0.0.40
codegen_flags: <defaults>
</compile_context>

<pallas_src>
import math

import jax
import jax.numpy as jnp
from jax.experimental import pallas as pl
from jax.experimental.pallas import tpu as pltpu

# ---- hyperparameters from the PyTorch module ---------------------------------
ACTION_SIZE = 7
EMBED_SIZE = 32
NUM_HEADS = 4
HEAD_DIM = EMBED_SIZE // NUM_HEADS
POWER_CHAN = 7
POWER_FEAT = 2
STATE_SIZE = 8
SWORD_CHAN = 2
SWORD_FEAT = 4
HIDDEN = 128
LN_EPS = 1e-5
NEG_INF = -1e30


# ---- row offsets inside the single (SLAB_ROWS, 128) parameter slab -------------
def _branch_offsets(base, n_chan):
    o = dict(xqkv=base)                       # 8 rows : [Wq'|Wk'|Wv'|W_in]
    o['ao'] = o['xqkv'] + 8                   # 32 rows, lanes 0:32
    o['ff1'] = o['ao'] + EMBED_SIZE           # 32 rows, lanes 0:32
    o['ff2'] = o['ff1'] + EMBED_SIZE          # 32 rows, lanes 0:32
    o['out'] = o['ff2'] + EMBED_SIZE          # n_chan*32 rows, 128 lanes
    o['vec'] = o['out'] + n_chan * EMBED_SIZE  # 16 rows of biases / LN params
    o['end'] = o['vec'] + 16
    return o


P_OFF = _branch_offsets(0, POWER_CHAN)         # power branch: rows [0, 344)
S_OFF = _branch_offsets(P_OFF['end'], SWORD_CHAN)   # sword branch: rows [344, 528)
H_E = S_OFF['end']                             # (8, 128)   state embed
H_D1P = H_E + 8                                # (128, 128) d1 block * power_embed
H_D1S = H_D1P + HIDDEN                         # (128, 128) d1 block * sword_embed
H_D1E = H_D1S + HIDDEN                         # (128, 128) d1 block * state_embed
H_D2 = H_D1E + HIDDEN                          # (128, 128)
H_PV = H_D2 + HIDDEN                           # (128, 128) packed [pi | v | 0...]
H_BIAS = H_PV + HIDDEN                         # 8 rows: e_b, d1_b, d2_b, pv_b
SLAB_ROWS = H_BIAS + 8                         # 1184


# ---- small in-kernel helpers (trace-time, all 2-D ops) ------------------------
def _mm(a, b):
    return jnp.dot(a, b, preferred_element_type=jnp.float32)


def _mm_nt(a, b):
    # a @ b.T without materializing a transpose: contract last dims of both.
    return jax.lax.dot_general(
        a, b, (((1,), (1,)), ((), ())), preferred_element_type=jnp.float32
    )


def _tree_sum(xs):
    xs = list(xs)
    while len(xs) > 1:
        nxt = [xs[i] + xs[i + 1] for i in range(0, len(xs) - 1, 2)]
        if len(xs) % 2:
            nxt.append(xs[-1])
        xs = nxt
    return xs[0]


def _layernorm(x, gamma, beta):
    # One-pass: mean and mean-of-squares reduce independently (halves XLU depth).
    mean = jnp.mean(x, axis=-1, keepdims=True)
    meansq = jnp.mean(x * x, axis=-1, keepdims=True)
    var = meansq - mean * mean
    return (x - mean) * jax.lax.rsqrt(var + LN_EPS) * gamma + beta


def _softmax_rows(scores):
    scores = scores - jnp.max(scores, axis=-1, keepdims=True)
    e = jnp.exp(scores)
    return e * pl.reciprocal(jnp.sum(e, axis=-1, keepdims=True), approx=True)


def _same_sample_mask(n, tb):
    """Additive mask over channel-major rows: 0 within a sample, -1e9 across.

    Rows/cols are ordered (channel * tb + batch_in_tile); tb is a power of two,
    so the batch id is a bitwise AND (VPU), no modulo needed.
    """
    r = jax.lax.broadcasted_iota(jnp.int32, (n, n), 0)
    c = jax.lax.broadcasted_iota(jnp.int32, (n, n), 1)
    same = jnp.bitwise_and(r, tb - 1) == jnp.bitwise_and(c, tb - 1)
    return jnp.where(same, 0.0, -1e9).astype(jnp.float32)


def _attn_branch(tok_ref, w_ref, off, n_chan, tb):
    """One attention branch for a whole batch tile.

    tok_ref : (n_chan*tb, feat) raw token rows, channel-major within the tile
    w_ref   : the full parameter slab; `off` = this branch's row offsets
    returns : (tb, 128) branch embedding (post-ReLU)
    """
    E = EMBED_SIZE
    feat = tok_ref.shape[1]
    n = n_chan * tb

    vec = w_ref[off['vec']:off['vec'] + 16, :]          # (16, 128) — tiny, load once
    fused_b = vec[0:1, :]                               # [b_q' | b_k' | b_v' | b_in]
    out_b = vec[1:2, :]
    ao_b = vec[2:3, :E]
    ff1_b = vec[3:4, :E]
    ff2_b = vec[4:5, :E]
    n1_g = vec[5:6, :E]
    n1_b = vec[6:7, :E]
    n2_g = vec[7:8, :E]
    n2_b = vec[8:9, :E]

    # Single fused MXU pass from the RAW tokens: [ q | k | v | tok_embed ].
    qkvt = _mm(tok_ref[...], w_ref[off['xqkv']:off['xqkv'] + feat, :]) + fused_b
    q, k, v = qkvt[:, 0:E], qkvt[:, E:2 * E], qkvt[:, 2 * E:3 * E]
    tok = qkvt[:, 3 * E:4 * E]                          # residual token embedding

    # Per-head attention with lane masks (no 8-wide lane slices). Each head's
    # context occupies its own lanes, so the sum of partials equals the concat.
    mask = _same_sample_mask(n, tb)
    scale = 1.0 / math.sqrt(HEAD_DIM)
    lane = jax.lax.broadcasted_iota(jnp.int32, (1, E), 1)
    ctx_parts = []
    for h in range(NUM_HEADS):
        lo = h * HEAD_DIM
        hm = ((lane >= lo) & (lane < lo + HEAD_DIM)).astype(jnp.float32)  # (1, E)
        sc = _mm_nt(q, k * hm) * scale + mask            # (n, n)
        p = _softmax_rows(sc)
        ctx_parts.append(_mm(p, v * hm))                 # nonzero only in head lanes
    ctx = _tree_sum(ctx_parts)                           # (n, E) == head concat
    attn = _mm(ctx, w_ref[off['ao']:off['ao'] + E, :E]) + ao_b

    # Post-norm transformer layer (ReLU FFN, dropout = 0).
    x1 = _layernorm(tok + attn, n1_g, n1_b)
    h1 = jnp.maximum(_mm(x1, w_ref[off['ff1']:off['ff1'] + E, :E]) + ff1_b, 0.0)
    ff = _mm(h1, w_ref[off['ff2']:off['ff2'] + E, :E]) + ff2_b
    x2 = _layernorm(x1 + ff, n2_g, n2_b)

    # Linear(n_chan*E -> 128) on the per-sample channel flatten: independent
    # per-channel partial matmuls, tree-summed (no serial accumulate chain).
    parts = [_mm(x2[c * tb:(c + 1) * tb, :],
                 w_ref[off['out'] + c * E:off['out'] + (c + 1) * E, :])
             for c in range(n_chan)]
    return jnp.maximum(_tree_sum(parts) + out_b, 0.0)    # (tb, 128)


# ---- the Pallas kernel ---------------------------------------------------------
def _aac_kernel(ptok_ref, stok_ref, pstate_ref, w_ref, out_ref):
    tb = pstate_ref.shape[0]                             # batch tile (power of two)

    bias = w_ref[H_BIAS:H_BIAS + 8, :]                   # (8, 128)
    e_b, d1_b, d2_b, pv_b = bias[0:1, :], bias[1:2, :], bias[2:3, :], bias[3:4, :]

    p_emb = _attn_branch(ptok_ref, w_ref, P_OFF, POWER_CHAN, tb)
    s_emb = _attn_branch(stok_ref, w_ref, S_OFF, SWORD_CHAN, tb)
    st_emb = jnp.maximum(
        _mm(pstate_ref[...], w_ref[H_E:H_E + STATE_SIZE, :]) + e_b, 0.0)

    # d1 on the (implicit) concat [p_emb | s_emb | st_emb]: three independent
    # 128x128 partial matmuls.
    x = jnp.maximum(
        _mm(p_emb, w_ref[H_D1P:H_D1P + HIDDEN, :]) +
        _mm(s_emb, w_ref[H_D1S:H_D1S + HIDDEN, :]) +
        (_mm(st_emb, w_ref[H_D1E:H_D1E + HIDDEN, :]) + d1_b), 0.0)
    x = jnp.maximum(_mm(x, w_ref[H_D2:H_D2 + HIDDEN, :]) + d2_b, 0.0)

    # pi (cols 0:ACTION_SIZE) and v (col ACTION_SIZE) in one lane-dense slab.
    raw = _mm(x, w_ref[H_PV:H_PV + HIDDEN, :]) + pv_b
    col = jax.lax.broadcasted_iota(jnp.int32, raw.shape, 1)
    is_pi = col < ACTION_SIZE
    logits = jnp.where(is_pi, raw, jnp.float32(NEG_INF))
    logits = logits - jnp.max(logits, axis=-1, keepdims=True)
    e = jnp.exp(logits)
    probs = e / jnp.sum(e, axis=-1, keepdims=True)       # exact recip for the policy
    out_ref[...] = jnp.where(is_pi, probs, raw)


# ---- parameter construction (deterministic, synthetic) -------------------------
def _linear(key, fin, fout):
    w = jax.random.normal(key, (fin, fout), jnp.float32) / jnp.sqrt(float(fin))
    b = jnp.zeros((1, fout), jnp.float32)
    return w, b


def _branch_params(key, feat, n_chan):
    ks = jax.random.split(key, 6)
    in_w, in_b = _linear(ks[0], feat, EMBED_SIZE)
    qkv_w, qkv_b = _linear(ks[1], EMBED_SIZE, 3 * EMBED_SIZE)   # cols = [Q | K | V]
    ao_w, ao_b = _linear(ks[2], EMBED_SIZE, EMBED_SIZE)
    ff1_w, ff1_b = _linear(ks[3], EMBED_SIZE, EMBED_SIZE)
    ff2_w, ff2_b = _linear(ks[4], EMBED_SIZE, EMBED_SIZE)
    out_w, out_b = _linear(ks[5], n_chan * EMBED_SIZE, HIDDEN)
    ones = jnp.ones((1, EMBED_SIZE), jnp.float32)
    zeros = jnp.zeros((1, EMBED_SIZE), jnp.float32)
    return dict(in_w=in_w, in_b=in_b, qkv_w=qkv_w, qkv_b=qkv_b, ao_w=ao_w, ao_b=ao_b,
                n1_g=ones, n1_b=zeros, ff1_w=ff1_w, ff1_b=ff1_b,
                ff2_w=ff2_w, ff2_b=ff2_b, n2_g=ones, n2_b=zeros,
                out_w=out_w, out_b=out_b)


def _head_params(key):
    ke, k1, k2, kpi, kv = jax.random.split(key, 5)
    e_w, e_b = _linear(ke, STATE_SIZE, HIDDEN)
    d1_w, d1_b = _linear(k1, 3 * HIDDEN, HIDDEN)
    d2_w, d2_b = _linear(k2, HIDDEN, HIDDEN)
    pi_w, pi_b = _linear(kpi, HIDDEN, ACTION_SIZE)
    v_w, v_b = _linear(kv, HIDDEN, 1)
    return dict(e_w=e_w, e_b=e_b, d1_w=d1_w, d1_b=d1_b, d2_w=d2_w, d2_b=d2_b,
                pi_w=pi_w, pi_b=pi_b, v_w=v_w, v_b=v_b)


def init_params(key):
    kp, ks, kh = jax.random.split(key, 3)
    return dict(power=_branch_params(kp, POWER_FEAT, POWER_CHAN),
                sword=_branch_params(ks, SWORD_FEAT, SWORD_CHAN),
                head=_head_params(kh))


def pack_params(params):
    """Pack all 42 per-layer tensors into one lane-dense (SLAB_ROWS, 128) slab."""
    E = EMBED_SIZE

    def w32(w):
        return jnp.pad(w, ((0, 0), (0, HIDDEN - E)))

    def branch_block(p, feat):
        # Pre-compose the token embed into the QKV projection.
        xqkv_w = p['in_w'] @ p['qkv_w']                         # (feat, 96)
        xqkv_b = p['in_b'] @ p['qkv_w'] + p['qkv_b']            # (1, 96)
        fused_w = jnp.concatenate([xqkv_w, p['in_w']], axis=1)  # (feat, 128)
        fused_w = jnp.pad(fused_w, ((0, 8 - feat), (0, 0)))     # (8, 128)
        fused_b = jnp.concatenate([xqkv_b, p['in_b']], axis=1)  # (1, 128)
        vec = jnp.concatenate([
            fused_b, p['out_b'],
            w32(p['ao_b']), w32(p['ff1_b']), w32(p['ff2_b']),
            w32(p['n1_g']), w32(p['n1_b']), w32(p['n2_g']), w32(p['n2_b']),
            jnp.zeros((7, HIDDEN), jnp.float32),
        ], axis=0)                                              # (16, 128)
        return jnp.concatenate([fused_w, w32(p['ao_w']), w32(p['ff1_w']),
                                w32(p['ff2_w']), p['out_w'], vec], axis=0)

    pb = branch_block(params['power'], POWER_FEAT)
    sb = branch_block(params['sword'], SWORD_FEAT)

    h = params['head']
    pv_w = jnp.zeros((HIDDEN, HIDDEN), jnp.float32)
    pv_w = pv_w.at[:, :ACTION_SIZE].set(h['pi_w'])
    pv_w = pv_w.at[:, ACTION_SIZE:ACTION_SIZE + 1].set(h['v_w'])
    pv_b = jnp.zeros((1, HIDDEN), jnp.float32)
    pv_b = pv_b.at[:, :ACTION_SIZE].set(h['pi_b'])
    pv_b = pv_b.at[:, ACTION_SIZE:ACTION_SIZE + 1].set(h['v_b'])
    hbias = jnp.concatenate([h['e_b'], h['d1_b'], h['d2_b'], pv_b,
                             jnp.zeros((4, HIDDEN), jnp.float32)], axis=0)
    hb = jnp.concatenate([h['e_w'], h['d1_w'], h['d2_w'], pv_w, hbias], axis=0)

    slab = jnp.concatenate([pb, sb, hb], axis=0)
    assert slab.shape == (SLAB_ROWS, HIDDEN), slab.shape
    return slab


# ---- wrapper --------------------------------------------------------------------
def attention_actor_critic(state, param_slab, *, block_batch=32):
    """state: (B, 30) float32 laid out [power(14) | sword(8) | p_state(8)]."""
    bsz = state.shape[0]
    p_len = POWER_CHAN * POWER_FEAT
    s_len = SWORD_CHAN * SWORD_FEAT
    power = state[:, :p_len].reshape(bsz, POWER_CHAN, POWER_FEAT)
    sword = state[:, p_len:p_len + s_len].reshape(bsz, SWORD_CHAN, SWORD_FEAT)
    p_state = state[:, p_len + s_len:]

    # Batch tile: power of two in [8, block_batch]; pad batch to a multiple of it.
    tb = min(block_batch, max(8, pl.next_power_of_2(bsz)))
    assert tb & (tb - 1) == 0
    b_pad = pl.cdiv(bsz, tb) * tb
    nb = b_pad // tb

    def pad_b(x):
        return jnp.pad(x, ((0, b_pad - bsz),) + ((0, 0),) * (x.ndim - 1))

    power, sword, p_state = pad_b(power), pad_b(sword), pad_b(p_state)

    def tile_tokens(tok, n_chan, feat):
        # (b_pad, C, F) -> rows ordered (tile, channel, batch-in-tile): each batch
        # tile is a contiguous (C*tb, F) block, channel-major within the tile.
        t = tok.reshape(nb, tb, n_chan, feat).transpose(0, 2, 1, 3)
        return t.reshape(nb * n_chan * tb, feat)

    ptok = tile_tokens(power, POWER_CHAN, POWER_FEAT)
    stok = tile_tokens(sword, SWORD_CHAN, SWORD_FEAT)

    out = pl.pallas_call(
        _aac_kernel,
        out_shape=jax.ShapeDtypeStruct((b_pad, HIDDEN), jnp.float32),
        grid=(nb,),
        in_specs=[
            pl.BlockSpec((POWER_CHAN * tb, POWER_FEAT), lambda i: (i, 0)),
            pl.BlockSpec((SWORD_CHAN * tb, SWORD_FEAT), lambda i: (i, 0)),
            pl.BlockSpec((tb, STATE_SIZE), lambda i: (i, 0)),
            pl.BlockSpec((SLAB_ROWS, HIDDEN), lambda i: (0, 0)),
        ],
        out_specs=pl.BlockSpec((tb, HIDDEN), lambda i: (i, 0)),
        compiler_params=pltpu.CompilerParams(dimension_semantics=("parallel",)),
    )(ptok, stok, p_state, param_slab)
    return out[:bsz, :ACTION_SIZE], out[:bsz, ACTION_SIZE:ACTION_SIZE + 1]


# ---- pure-JAX reference (mirrors the PyTorch forward) ---------------------------
def reference_forward(state, params):
    bsz = state.shape[0]
    p_len = POWER_CHAN * POWER_FEAT
    s_len = SWORD_CHAN * SWORD_FEAT
    power = state[:, :p_len].reshape(bsz, POWER_CHAN, POWER_FEAT)
    sword = state[:, p_len:p_len + s_len].reshape(bsz, SWORD_CHAN, SWORD_FEAT)
    p_state = state[:, p_len + s_len:]

    def ln(z, g, b):
        m = z.mean(-1, keepdims=True)
        v = ((z - m) ** 2).mean(-1, keepdims=True)
        return (z - m) / jnp.sqrt(v + LN_EPS) * g + b

    def branch(x, p, n_chan):
        E = EMBED_SIZE
        tok = x @ p['in_w'] + p['in_b']
        qkv = tok @ p['qkv_w'] + p['qkv_b']
        q, k, v = qkv[..., :E], qkv[..., E:2 * E], qkv[..., 2 * E:]

        def heads(t):
            return t.reshape(bsz, n_chan, NUM_HEADS, HEAD_DIM).transpose(0, 2, 1, 3)

        qh, kh, vh = heads(q), heads(k), heads(v)
        sc = jnp.einsum('bhqd,bhkd->bhqk', qh, kh) / math.sqrt(HEAD_DIM)
        pr = jax.nn.softmax(sc, axis=-1)
        ctx = jnp.einsum('bhqk,bhkd->bhqd', pr, vh)
        ctx = ctx.transpose(0, 2, 1, 3).reshape(bsz, n_chan, E)
        x1 = ln(tok + ctx @ p['ao_w'] + p['ao_b'], p['n1_g'], p['n1_b'])
        ff = jnp.maximum(x1 @ p['ff1_w'] + p['ff1_b'], 0.0) @ p['ff2_w'] + p['ff2_b']
        x2 = ln(x1 + ff, p['n2_g'], p['n2_b'])
        return jnp.maximum(x2.reshape(bsz, n_chan * E) @ p['out_w'] + p['out_b'], 0.0)

    pe = branch(power, params['power'], POWER_CHAN)
    se = branch(sword, params['sword'], SWORD_CHAN)
    h = params['head']
    st = jnp.maximum(p_state @ h['e_w'] + h['e_b'], 0.0)
    x = jnp.maximum(jnp.concatenate([pe, se, st], axis=-1) @ h['d1_w'] + h['d1_b'], 0.0)
    x = jnp.maximum(x @ h['d2_w'] + h['d2_b'], 0.0)
    return jax.nn.softmax(x @ h['pi_w'] + h['pi_b'], axis=-1), x @ h['v_w'] + h['v_b']


if __name__ == "__main__":
    key = jax.random.PRNGKey(0)
    pkey, xkey = jax.random.split(key)
    params = init_params(pkey)
    slab = pack_params(params)

    batch = 4
    state_dim = POWER_CHAN * POWER_FEAT + SWORD_CHAN * SWORD_FEAT + STATE_SIZE  # 30
    state = jax.random.normal(xkey, (batch, state_dim), jnp.float32)

    fwd = jax.jit(attention_actor_critic)
    pi, v = jax.block_until_ready(fwd(state, slab))

    assert pi.shape == (batch, ACTION_SIZE) and v.shape == (batch, 1)
    assert bool(jnp.all(jnp.isfinite(pi))) and bool(jnp.all(jnp.isfinite(v)))
    assert bool(jnp.allclose(jnp.sum(pi, axis=-1), 1.0, atol=1e-3))  # policy rows

    pi_ref, v_ref = reference_forward(state, params)
    assert bool(jnp.allclose(pi, pi_ref, atol=5e-2, rtol=5e-2))
    assert bool(jnp.allclose(v, v_ref, atol=5e-2, rtol=5e-2))
    print("KERNEL_OK")
</pallas_src>

<mosaic_0001>
module attributes {stable_mosaic.version = 11 : i64} {
  func.func @_aac_kernel(%arg0: i32, %arg1: memref<56x2xf32, #tpu.memory_space<vmem>>, %arg2: memref<16x4xf32, #tpu.memory_space<vmem>>, %arg3: memref<8x8xf32, #tpu.memory_space<vmem>>, %arg4: memref<1184x128xf32, #tpu.memory_space<vmem>>, %arg5: memref<8x128xf32, #tpu.memory_space<vmem>>) attributes {dimension_semantics = [#tpu.dimension_semantics<parallel>], iteration_bounds = array<i64: 1>, scalar_prefetch = 0 : i64, scratch_operands = 0 : i64, tpu.core_type = #tpu.core_type<tc>, window_params = [{transform_indices = @transform_0, window_bounds = array<i64: 56, 2>}, {transform_indices = @transform_1, window_bounds = array<i64: 16, 4>}, {transform_indices = @transform_2, window_bounds = array<i64: 8, 8>}, {pipeline_mode = #tpu.pipeline_mode<synchronous>, transform_indices = @transform_3, window_bounds = array<i64: 1184, 128>}, {transform_indices = @transform_4, window_bounds = array<i64: 8, 128>}]} {
    %c1176 = arith.constant 1176 : index
    %c0 = arith.constant 0 : index
    %0 = vector.load %arg4[%c1176, %c0] : memref<1184x128xf32, #tpu.memory_space<vmem>>, vector<8x128xf32>
    %1 = vector.extract_strided_slice %0 {offsets = [0, 0], sizes = [1, 128], strides = [1, 1]} : vector<8x128xf32> to vector<1x128xf32>
    %2 = vector.extract_strided_slice %0 {offsets = [1, 0], sizes = [1, 128], strides = [1, 1]} : vector<8x128xf32> to vector<1x128xf32>
    %3 = vector.extract_strided_slice %0 {offsets = [2, 0], sizes = [1, 128], strides = [1, 1]} : vector<8x128xf32> to vector<1x128xf32>
    %4 = vector.extract_strided_slice %0 {offsets = [3, 0], sizes = [1, 128], strides = [1, 1]} : vector<8x128xf32> to vector<1x128xf32>
    %c328 = arith.constant 328 : index
    %c0_0 = arith.constant 0 : index
    %5 = vector.load %arg4[%c328, %c0_0] : memref<1184x128xf32, #tpu.memory_space<vmem>>, vector<16x128xf32>
    %6 = vector.extract_strided_slice %5 {offsets = [0, 0], sizes = [1, 128], strides = [1, 1]} : vector<16x128xf32> to vector<1x128xf32>
    %7 = vector.extract_strided_slice %5 {offsets = [1, 0], sizes = [1, 128], strides = [1, 1]} : vector<16x128xf32> to vector<1x128xf32>
    %8 = vector.extract_strided_slice %5 {offsets = [2, 0], sizes = [1, 32], strides = [1, 1]} : vector<16x128xf32> to vector<1x32xf32>
    %9 = vector.extract_strided_slice %5 {offsets = [3, 0], sizes = [1, 32], strides = [1, 1]} : vector<16x128xf32> to vector<1x32xf32>
    %10 = vector.extract_strided_slice %5 {offsets = [4, 0], sizes = [1, 32], strides = [1, 1]} : vector<16x128xf32> to vector<1x32xf32>
    %11 = vector.extract_strided_slice %5 {offsets = [5, 0], sizes = [1, 32], strides = [1, 1]} : vector<16x128xf32> to vector<1x32xf32>
    %12 = vector.extract_strided_slice %5 {offsets = [6, 0], sizes = [1, 32], strides = [1, 1]} : vector<16x128xf32> to vector<1x32xf32>
    %13 = vector.extract_strided_slice %5 {offsets = [7, 0], sizes = [1, 32], strides = [1, 1]} : vector<16x128xf32> to vector<1x32xf32>
    %14 = vector.extract_strided_slice %5 {offsets = [8, 0], sizes = [1, 32], strides = [1, 1]} : vector<16x128xf32> to vector<1x32xf32>
    %c0_1 = arith.constant 0 : index
    %c0_2 = arith.constant 0 : index
    %15 = vector.load %arg1[%c0_1, %c0_2] : memref<56x2xf32, #tpu.memory_space<vmem>>, vector<56x2xf32>
    %c0_3 = arith.constant 0 : index
    %c0_4 = arith.constant 0 : index
    %16 = vector.load %arg4[%c0_3, %c0_4] : memref<1184x128xf32, #tpu.memory_space<vmem>>, vector<2x128xf32>
    %cst = arith.constant dense<0.000000e+00> : vector<56x128xf32>
    %17 = tpu.matmul %15, %16, %cst {dimension_numbers = #tpu.dot_dimension_numbers<[1], [0], [0], [1], [0, 0, 1, 1], [], []>} : vector<56x2xf32>, vector<2x128xf32>, vector<56x128xf32> -> vector<56x128xf32>
    %18 = vector.broadcast %6 : vector<1x128xf32> to vector<56x128xf32>
    %19 = arith.addf %17, %18 : vector<56x128xf32>
    %20 = vector.extract_strided_slice %19 {offsets = [0, 0], sizes = [56, 32], strides = [1, 1]} : vector<56x128xf32> to vector<56x32xf32>
    %21 = vector.extract_strided_slice %19 {offsets = [0, 32], sizes = [56, 32], strides = [1, 1]} : vector<56x128xf32> to vector<56x32xf32>
    %22 = vector.extract_strided_slice %19 {offsets = [0, 64], sizes = [56, 32], strides = [1, 1]} : vector<56x128xf32> to vector<56x32xf32>
    %23 = vector.extract_strided_slice %19 {offsets = [0, 96], sizes = [56, 32], strides = [1, 1]} : vector<56x128xf32> to vector<56x32xf32>
    %24 = tpu.iota {dimensions = array<i32: 0>} : vector<56x56xi32>
    %25 = tpu.iota {dimensions = array<i32: 1>} : vector<56x56xi32>
    %c7_i32 = arith.constant 7 : i32
    %26 = vector.broadcast %c7_i32 : i32 to vector<56x56xi32>
    %27 = arith.andi %24, %26 : vector<56x56xi32>
    %c7_i32_5 = arith.constant 7 : i32
    %28 = vector.broadcast %c7_i32_5 : i32 to vector<56x56xi32>
    %29 = arith.andi %25, %28 : vector<56x56xi32>
    %30 = arith.cmpi eq, %27, %29 : vector<56x56xi32>
    %cst_6 = arith.constant 0.000000e+00 : f32
    %cst_7 = arith.constant -1.000000e+09 : f32
    %31 = vector.broadcast %cst_6 : f32 to vector<56x56xf32>
    %32 = vector.broadcast %cst_7 : f32 to vector<56x56xf32>
    %33 = arith.select %30, %31, %32 : vector<56x56xi1>, vector<56x56xf32>
    %34 = tpu.iota {dimensions = array<i32: 1>} : vector<1x32xi32>
    %c0_i32 = arith.constant 0 : i32
    %35 = vector.broadcast %c0_i32 : i32 to vector<1x32xi32>
    %36 = arith.cmpi sge, %34, %35 : vector<1x32xi32>
    %c8_i32 = arith.constant 8 : i32
    %37 = vector.broadcast %c8_i32 : i32 to vector<1x32xi32>
    %38 = arith.cmpi slt, %34, %37 : vector<1x32xi32>
    %39 = arith.andi %36, %38 : vector<1x32xi1>
    %40 = arith.extui %39 : vector<1x32xi1> to vector<1x32xi32>
    %41 = arith.sitofp %40 : vector<1x32xi32> to vector<1x32xf32>
    %42 = vector.broadcast %41 : vector<1x32xf32> to vector<56x32xf32>
    %43 = arith.mulf %21, %42 : vector<56x32xf32>
    %cst_8 = arith.constant dense<0.000000e+00> : vector<56x56xf32>
    %44 = tpu.matmul %20, %43, %cst_8 {dimension_numbers = #tpu.dot_dimension_numbers<[1], [1], [0], [0], [0, 0, 1, 0], [], []>} : vector<56x32xf32>, vector<56x32xf32>, vector<56x56xf32> -> vector<56x56xf32>
    %cst_9 = arith.constant 0.353553385 : f32
    %45 = vector.broadcast %cst_9 : f32 to vector<56x56xf32>
    %46 = arith.mulf %44, %45 : vector<56x56xf32>
    %47 = arith.addf %46, %33 : vector<56x56xf32>
    %cst_10 = arith.constant dense<0xFF800000> : vector<56xf32>
    %48 = vector.multi_reduction <maximumf>, %47, %cst_10 [1] : vector<56x56xf32> to vector<56xf32>
    %49 = vector.shape_cast %48 : vector<56xf32> to vector<56x1xf32>
    %50 = vector.broadcast %49 : vector<56x1xf32> to vector<56x56xf32>
    %51 = arith.subf %47, %50 : vector<56x56xf32>
    %52 = math.exp %51 : vector<56x56xf32>
    %cst_11 = arith.constant dense<0.000000e+00> : vector<56xf32>
    %53 = vector.multi_reduction <add>, %52, %cst_11 [1] : vector<56x56xf32> to vector<56xf32>
    %54 = vector.shape_cast %53 : vector<56xf32> to vector<56x1xf32>
    %55 = tpu.reciprocal %54 {approx = true} : vector<56x1xf32> -> vector<56x1xf32>
    %56 = vector.broadcast %55 : vector<56x1xf32> to vector<56x56xf32>
    %57 = arith.mulf %52, %56 : vector<56x56xf32>
    %58 = vector.broadcast %41 : vector<1x32xf32> to vector<56x32xf32>
    %59 = arith.mulf %22, %58 : vector<56x32xf32>
    %cst_12 = arith.constant dense<0.000000e+00> : vector<56x32xf32>
    %60 = tpu.matmul %57, %59, %cst_12 {dimension_numbers = #tpu.dot_dimension_numbers<[1], [0], [0], [1], [0, 0, 1, 1], [], []>} : vector<56x56xf32>, vector<56x32xf32>, vector<56x32xf32> -> vector<56x32xf32>
    %c8_i32_13 = arith.constant 8 : i32
    %61 = vector.broadcast %c8_i32_13 : i32 to vector<1x32xi32>
    %62 = arith.cmpi sge, %34, %61 : vector<1x32xi32>
    %c16_i32 = arith.constant 16 : i32
    %63 = vector.broadcast %c16_i32 : i32 to vector<1x32xi32>
    %64 = arith.cmpi slt, %34, %63 : vector<1x32xi32>
    %65 = arith.andi %62, %64 : vector<1x32xi1>
    %66 = arith.extui %65 : vector<1x32xi1> to vector<1x32xi32>
    %67 = arith.sitofp %66 : vector<1x32xi32> to vector<1x32xf32>
    %68 = vector.broadcast %67 : vector<1x32xf32> to vector<56x32xf32>
    %69 = arith.mulf %21, %68 : vector<56x32xf32>
    %cst_14 = arith.constant dense<0.000000e+00> : vector<56x56xf32>
    %70 = tpu.matmul %20, %69, %cst_14 {dimension_numbers = #tpu.dot_dimension_numbers<[1], [1], [0], [0], [0, 0, 1, 0], [], []>} : vector<56x32xf32>, vector<56x32xf32>, vector<56x56xf32> -> vector<56x56xf32>
    %cst_15 = arith.constant 0.353553385 : f32
    %71 = vector.broadcast %cst_15 : f32 to vector<56x56xf32>
    %72 = arith.mulf %70, %71 : vector<56x56xf32>
    %73 = arith.addf %72, %33 : vector<56x56xf32>
    %cst_16 = arith.constant dense<0xFF800000> : vector<56xf32>
    %74 = vector.multi_reduction <maximumf>, %73, %cst_16 [1] : vector<56x56xf32> to vector<56xf32>
    %75 = vector.shape_cast %74 : vector<56xf32> to vector<56x1xf32>
    %76 = vector.broadcast %75 : vector<56x1xf32> to vector<56x56xf32>
    %77 = arith.subf %73, %76 : vector<56x56xf32>
    %78 = math.exp %77 : vector<56x56xf32>
    %cst_17 = arith.constant dense<0.000000e+00> : vector<56xf32>
    %79 = vector.multi_reduction <add>, %78, %cst_17 [1] : vector<56x56xf32> to vector<56xf32>
    %80 = vector.shape_cast %79 : vector<56xf32> to vector<56x1xf32>
    %81 = tpu.reciprocal %80 {approx = true} : vector<56x1xf32> -> vector<56x1xf32>
    %82 = vector.broadcast %81 : vector<56x1xf32> to vector<56x56xf32>
    %83 = arith.mulf %78, %82 : vector<56x56xf32>
    %84 = vector.broadcast %67 : vector<1x32xf32> to vector<56x32xf32>
    %85 = arith.mulf %22, %84 : vector<56x32xf32>
    %cst_18 = arith.constant dense<0.000000e+00> : vector<56x32xf32>
    %86 = tpu.matmul %83, %85, %cst_18 {dimension_numbers = #tpu.dot_dimension_numbers<[1], [0], [0], [1], [0, 0, 1, 1], [], []>} : vector<56x56xf32>, vector<56x32xf32>, vector<56x32xf32> -> vector<56x32xf32>
    %c16_i32_19 = arith.constant 16 : i32
    %87 = vector.broadcast %c16_i32_19 : i32 to vector<1x32xi32>
    %88 = arith.cmpi sge, %34, %87 : vector<1x32xi32>
    %c24_i32 = arith.constant 24 : i32
    %89 = vector.broadcast %c24_i32 : i32 to vector<1x32xi32>
    %90 = arith.cmpi slt, %34, %89 : vector<1x32xi32>
    %91 = arith.andi %88, %90 : vector<1x32xi1>
    %92 = arith.extui %91 : vector<1x32xi1> to vector<1x32xi32>
    %93 = arith.sitofp %92 : vector<1x32xi32> to vector<1x32xf32>
    %94 = vector.broadcast %93 : vector<1x32xf32> to vector<56x32xf32>
    %95 = arith.mulf %21, %94 : vector<56x32xf32>
    %cst_20 = arith.constant dense<0.000000e+00> : vector<56x56xf32>
    %96 = tpu.matmul %20, %95, %cst_20 {dimension_numbers = #tpu.dot_dimension_numbers<[1], [1], [0], [0], [0, 0, 1, 0], [], []>} : vector<56x32xf32>, vector<56x32xf32>, vector<56x56xf32> -> vector<56x56xf32>
    %cst_21 = arith.constant 0.353553385 : f32
    %97 = vector.broadcast %cst_21 : f32 to vector<56x56xf32>
    %98 = arith.mulf %96, %97 : vector<56x56xf32>
    %99 = arith.addf %98, %33 : vector<56x56xf32>
    %cst_22 = arith.constant dense<0xFF800000> : vector<56xf32>
    %100 = vector.multi_reduction <maximumf>, %99, %cst_22 [1] : vector<56x56xf32> to vector<56xf32>
    %101 = vector.shape_cast %100 : vector<56xf32> to vector<56x1xf32>
    %102 = vector.broadcast %101 : vector<56x1xf32> to vector<56x56xf32>
    %103 = arith.subf %99, %102 : vector<56x56xf32>
    %104 = math.exp %103 : vector<56x56xf32>
    %cst_23 = arith.constant dense<0.000000e+00> : vector<56xf32>
    %105 = vector.multi_reduction <add>, %104, %cst_23 [1] : vector<56x56xf32> to vector<56xf32>
    %106 = vector.shape_cast %105 : vector<56xf32> to vector<56x1xf32>
    %107 = tpu.reciprocal %106 {approx = true} : vector<56x1xf32> -> vector<56x1xf32>
    %108 = vector.broadcast %107 : vector<56x1xf32> to vector<56x56xf32>
    %109 = arith.mulf %104, %108 : vector<56x56xf32>
    %110 = vector.broadcast %93 : vector<1x32xf32> to vector<56x32xf32>
    %111 = arith.mulf %22, %110 : vector<56x32xf32>
    %cst_24 = arith.constant dense<0.000000e+00> : vector<56x32xf32>
    %112 = tpu.matmul %109, %111, %cst_24 {dimension_numbers = #tpu.dot_dimension_numbers<[1], [0], [0], [1], [0, 0, 1, 1], [], []>} : vector<56x56xf32>, vector<56x32xf32>, vector<56x32xf32> -> vector<56x32xf32>
    %c24_i32_25 = arith.constant 24 : i32
    %113 = vector.broadcast %c24_i32_25 : i32 to vector<1x32xi32>
    %114 = arith.cmpi sge, %34, %113 : vector<1x32xi32>
    %c32_i32 = arith.constant 32 : i32
    %115 = vector.broadcast %c32_i32 : i32 to vector<1x32xi32>
    %116 = arith.cmpi slt, %34, %115 : vector<1x32xi32>
    %117 = arith.andi %114, %116 : vector<1x32xi1>
    %118 = arith.extui %117 : vector<1x32xi1> to vector<1x32xi32>
    %119 = arith.sitofp %118 : vector<1x32xi32> to vector<1x32xf32>
    %120 = vector.broadcast %119 : vector<1x32xf32> to vector<56x32xf32>
    %121 = arith.mulf %21, %120 : vector<56x32xf32>
    %cst_26 = arith.constant dense<0.000000e+00> : vector<56x56xf32>
    %122 = tpu.matmul %20, %121, %cst_26 {dimension_numbers = #tpu.dot_dimension_numbers<[1], [1], [0], [0], [0, 0, 1, 0], [], []>} : vector<56x32xf32>, vector<56x32xf32>, vector<56x56xf32> -> vector<56x56xf32>
    %cst_27 = arith.constant 0.353553385 : f32
    %123 = vector.broadcast %cst_27 : f32 to vector<56x56xf32>
    %124 = arith.mulf %122, %123 : vector<56x56xf32>
    %125 = arith.addf %124, %33 : vector<56x56xf32>
    %cst_28 = arith.constant dense<0xFF800000> : vector<56xf32>
    %126 = vector.multi_reduction <maximumf>, %125, %cst_28 [1] : vector<56x56xf32> to vector<56xf32>
    %127 = vector.shape_cast %126 : vector<56xf32> to vector<56x1xf32>
    %128 = vector.broadcast %127 : vector<56x1xf32> to vector<56x56xf32>
    %129 = arith.subf %125, %128 : vector<56x56xf32>
    %130 = math.exp %129 : vector<56x56xf32>
    %cst_29 = arith.constant dense<0.000000e+00> : vector<56xf32>
    %131 = vector.multi_reduction <add>, %130, %cst_29 [1] : vector<56x56xf32> to vector<56xf32>
    %132 = vector.shape_cast %131 : vector<56xf32> to vector<56x1xf32>
    %133 = tpu.reciprocal %132 {approx = true} : vector<56x1xf32> -> vector<56x1xf32>
    %134 = vector.broadcast %133 : vector<56x1xf32> to vector<56x56xf32>
    %135 = arith.mulf %130, %134 : vector<56x56xf32>
    %136 = vector.broadcast %119 : vector<1x32xf32> to vector<56x32xf32>
    %137 = arith.mulf %22, %136 : vector<56x32xf32>
    %cst_30 = arith.constant dense<0.000000e+00> : vector<56x32xf32>
    %138 = tpu.matmul %135, %137, %cst_30 {dimension_numbers = #tpu.dot_dimension_numbers<[1], [0], [0], [1], [0, 0, 1, 1], [], []>} : vector<56x56xf32>, vector<56x32xf32>, vector<56x32xf32> -> vector<56x32xf32>
    %139 = arith.addf %60, %86 : vector<56x32xf32>
    %140 = arith.addf %112, %138 : vector<56x32xf32>
    %141 = arith.addf %139, %140 : vector<56x32xf32>
    %c8 = arith.constant 8 : index
    %c0_31 = arith.constant 0 : index
    %142 = vector.load %arg4[%c8, %c0_31] : memref<1184x128xf32, #tpu.memory_space<vmem>>, vector<32x32xf32>
    %cst_32 = arith.constant dense<0.000000e+00> : vector<56x32xf32>
    %143 = tpu.matmul %141, %142, %cst_32 {dimension_numbers = #tpu.dot_dimension_numbers<[1], [0], [0], [1], [0, 0, 1, 1], [], []>} : vector<56x32xf32>, vector<32x32xf32>, vector<56x32xf32> -> vector<56x32xf32>
    %144 = vector.broadcast %8 : vector<1x32xf32> to vector<56x32xf32>
    %145 = arith.addf %143, %144 : vector<56x32xf32>
    %146 = arith.addf %23, %145 : vector<56x32xf32>
    %cst_33 = arith.constant dense<0.000000e+00> : vector<56xf32>
    %147 = vector.multi_reduction <add>, %146, %cst_33 [1] : vector<56x32xf32> to vector<56xf32>
    %148 = vector.shape_cast %147 : vector<56xf32> to vector<56x1xf32>
    %cst_34 = arith.constant 3.200000e+01 : f32
    %149 = vector.broadcast %cst_34 : f32 to vector<56x1xf32>
    %150 = arith.divf %148, %149 : vector<56x1xf32>
    %151 = arith.mulf %146, %146 : vector<56x32xf32>
    %cst_35 = arith.constant dense<0.000000e+00> : vector<56xf32>
    %152 = vector.multi_reduction <add>, %151, %cst_35 [1] : vector<56x32xf32> to vector<56xf32>
    %153 = vector.shape_cast %152 : vector<56xf32> to vector<56x1xf32>
    %cst_36 = arith.constant 3.200000e+01 : f32
    %154 = vector.broadcast %cst_36 : f32 to vector<56x1xf32>
    %155 = arith.divf %153, %154 : vector<56x1xf32>
    %156 = arith.mulf %150, %150 : vector<56x1xf32>
    %157 = arith.subf %155, %156 : vector<56x1xf32>
    %158 = vector.broadcast %150 : vector<56x1xf32> to vector<56x32xf32>
    %159 = arith.subf %146, %158 : vector<56x32xf32>
    %cst_37 = arith.constant 9.99999974E-6 : f32
    %160 = vector.broadcast %cst_37 : f32 to vector<56x1xf32>
    %161 = arith.addf %157, %160 : vector<56x1xf32>
    %162 = math.rsqrt %161 : vector<56x1xf32>
    %163 = vector.broadcast %162 : vector<56x1xf32> to vector<56x32xf32>
    %164 = arith.mulf %159, %163 : vector<56x32xf32>
    %165 = vector.broadcast %11 : vector<1x32xf32> to vector<56x32xf32>
    %166 = arith.mulf %164, %165 : vector<56x32xf32>
    %167 = vector.broadcast %12 : vector<1x32xf32> to vector<56x32xf32>
    %168 = arith.addf %166, %167 : vector<56x32xf32>
    %c40 = arith.constant 40 : index
    %c0_38 = arith.constant 0 : index
    %169 = vector.load %arg4[%c40, %c0_38] : memref<1184x128xf32, #tpu.memory_space<vmem>>, vector<32x32xf32>
    %cst_39 = arith.constant dense<0.000000e+00> : vector<56x32xf32>
    %170 = tpu.matmul %168, %169, %cst_39 {dimension_numbers = #tpu.dot_dimension_numbers<[1], [0], [0], [1], [0, 0, 1, 1], [], []>} : vector<56x32xf32>, vector<32x32xf32>, vector<56x32xf32> -> vector<56x32xf32>
    %171 = vector.broadcast %9 : vector<1x32xf32> to vector<56x32xf32>
    %172 = arith.addf %170, %171 : vector<56x32xf32>
    %cst_40 = arith.constant 0.000000e+00 : f32
    %173 = vector.broadcast %cst_40 : f32 to vector<56x32xf32>
    %174 = arith.maximumf %172, %173 : vector<56x32xf32>
    %c72 = arith.constant 72 : index
    %c0_41 = arith.constant 0 : index
    %175 = vector.load %arg4[%c72, %c0_41] : memref<1184x128xf32, #tpu.memory_space<vmem>>, vector<32x32xf32>
    %cst_42 = arith.constant dense<0.000000e+00> : vector<56x32xf32>
    %176 = tpu.matmul %174, %175, %cst_42 {dimension_numbers = #tpu.dot_dimension_numbers<[1], [0], [0], [1], [0, 0, 1, 1], [], []>} : vector<56x32xf32>, vector<32x32xf32>, vector<56x32xf32> -> vector<56x32xf32>
    %177 = vector.broadcast %10 : vector<1x32xf32> to vector<56x32xf32>
    %178 = arith.addf %176, %177 : vector<56x32xf32>
    %179 = arith.addf %168, %178 : vector<56x32xf32>
    %cst_43 = arith.constant dense<0.000000e+00> : vector<56xf32>
    %180 = vector.multi_reduction <add>, %179, %cst_43 [1] : vector<56x32xf32> to vector<56xf32>
    %181 = vector.shape_cast %180 : vector<56xf32> to vector<56x1xf32>
    %cst_44 = arith.constant 3.200000e+01 : f32
    %182 = vector.broadcast %cst_44 : f32 to vector<56x1xf32>
    %183 = arith.divf %181, %182 : vector<56x1xf32>
    %184 = arith.mulf %179, %179 : vector<56x32xf32>
    %cst_45 = arith.constant dense<0.000000e+00> : vector<56xf32>
    %185 = vector.multi_reduction <add>, %184, %cst_45 [1] : vector<56x32xf32> to vector<56xf32>
    %186 = vector.shape_cast %185 : vector<56xf32> to vector<56x1xf32>
    %cst_46 = arith.constant 3.200000e+01 : f32
    %187 = vector.broadcast %cst_46 : f32 to vector<56x1xf32>
    %188 = arith.divf %186, %187 : vector<56x1xf32>
    %189 = arith.mulf %183, %183 : vector<56x1xf32>
    %190 = arith.subf %188, %189 : vector<56x1xf32>
    %191 = vector.broadcast %183 : vector<56x1xf32> to vector<56x32xf32>
    %192 = arith.subf %179, %191 : vector<56x32xf32>
    %cst_47 = arith.constant 9.99999974E-6 : f32
    %193 = vector.broadcast %cst_47 : f32 to vector<56x1xf32>
    %194 = arith.addf %190, %193 : vector<56x1xf32>
    %195 = math.rsqrt %194 : vector<56x1xf32>
    %196 = vector.broadcast %195 : vector<56x1xf32> to vector<56x32xf32>
    %197 = arith.mulf %192, %196 : vector<56x32xf32>
    %198 = vector.broadcast %13 : vector<1x32xf32> to vector<56x32xf32>
    %199 = arith.mulf %197, %198 : vector<56x32xf32>
    %200 = vector.broadcast %14 : vector<1x32xf32> to vector<56x32xf32>
    %201 = arith.addf %199, %200 : vector<56x32xf32>
    %202 = vector.extract_strided_slice %201 {offsets = [0, 0], sizes = [8, 32], strides = [1, 1]} : vector<56x32xf32> to vector<8x32xf32>
    %c104 = arith.constant 104 : index
    %c0_48 = arith.constant 0 : index
    %203 = vector.load %arg4[%c104, %c0_48] : memref<1184x128xf32, #tpu.memory_space<vmem>>, vector<32x128xf32>
    %cst_49 = arith.constant dense<0.000000e+00> : vector<8x128xf32>
    %204 = tpu.matmul %202, %203, %cst_49 {dimension_numbers = #tpu.dot_dimension_numbers<[1], [0], [0], [1], [0, 0, 1, 1], [], []>} : vector<8x32xf32>, vector<32x128xf32>, vector<8x128xf32> -> vector<8x128xf32>
    %205 = vector.extract_strided_slice %201 {offsets = [8, 0], sizes = [8, 32], strides = [1, 1]} : vector<56x32xf32> to vector<8x32xf32>
    %c136 = arith.constant 136 : index
    %c0_50 = arith.constant 0 : index
    %206 = vector.load %arg4[%c136, %c0_50] : memref<1184x128xf32, #tpu.memory_space<vmem>>, vector<32x128xf32>
    %cst_51 = arith.constant dense<0.000000e+00> : vector<8x128xf32>
    %207 = tpu.matmul %205, %206, %cst_51 {dimension_numbers = #tpu.dot_dimension_numbers<[1], [0], [0], [1], [0, 0, 1, 1], [], []>} : vector<8x32xf32>, vector<32x128xf32>, vector<8x128xf32> -> vector<8x128xf32>
    %208 = vector.extract_strided_slice %201 {offsets = [16, 0], sizes = [8, 32], strides = [1, 1]} : vector<56x32xf32> to vector<8x32xf32>
    %c168 = arith.constant 168 : index
    %c0_52 = arith.constant 0 : index
    %209 = vector.load %arg4[%c168, %c0_52] : memref<1184x128xf32, #tpu.memory_space<vmem>>, vector<32x128xf32>
    %cst_53 = arith.constant dense<0.000000e+00> : vector<8x128xf32>
    %210 = tpu.matmul %208, %209, %cst_53 {dimension_numbers = #tpu.dot_dimension_numbers<[1], [0], [0], [1], [0, 0, 1, 1], [], []>} : vector<8x32xf32>, vector<32x128xf32>, vector<8x128xf32> -> vector<8x128xf32>
    %211 = vector.extract_strided_slice %201 {offsets = [24, 0], sizes = [8, 32], strides = [1, 1]} : vector<56x32xf32> to vector<8x32xf32>
    %c200 = arith.constant 200 : index
    %c0_54 = arith.constant 0 : index
    %212 = vector.load %arg4[%c200, %c0_54] : memref<1184x128xf32, #tpu.memory_space<vmem>>, vector<32x128xf32>
    %cst_55 = arith.constant dense<0.000000e+00> : vector<8x128xf32>
    %213 = tpu.matmul %211, %212, %cst_55 {dimension_numbers = #tpu.dot_dimension_numbers<[1], [0], [0], [1], [0, 0, 1, 1], [], []>} : vector<8x32xf32>, vector<32x128xf32>, vector<8x128xf32> -> vector<8x128xf32>
    %214 = vector.extract_strided_slice %201 {offsets = [32, 0], sizes = [8, 32], strides = [1, 1]} : vector<56x32xf32> to vector<8x32xf32>
    %c232 = arith.constant 232 : index
    %c0_56 = arith.constant 0 : index
    %215 = vector.load %arg4[%c232, %c0_56] : memref<1184x128xf32, #tpu.memory_space<vmem>>, vector<32x128xf32>
    %cst_57 = arith.constant dense<0.000000e+00> : vector<8x128xf32>
    %216 = tpu.matmul %214, %215, %cst_57 {dimension_numbers = #tpu.dot_dimension_numbers<[1], [0], [0], [1], [0, 0, 1, 1], [], []>} : vector<8x32xf32>, vector<32x128xf32>, vector<8x128xf32> -> vector<8x128xf32>
    %217 = vector.extract_strided_slice %201 {offsets = [40, 0], sizes = [8, 32], strides = [1, 1]} : vector<56x32xf32> to vector<8x32xf32>
    %c264 = arith.constant 264 : index
    %c0_58 = arith.constant 0 : index
    %218 = vector.load %arg4[%c264, %c0_58] : memref<1184x128xf32, #tpu.memory_space<vmem>>, vector<32x128xf32>
    %cst_59 = arith.constant dense<0.000000e+00> : vector<8x128xf32>
    %219 = tpu.matmul %217, %218, %cst_59 {dimension_numbers = #tpu.dot_dimension_numbers<[1], [0], [0], [1], [0, 0, 1, 1], [], []>} : vector<8x32xf32>, vector<32x128xf32>, vector<8x128xf32> -> vector<8x128xf32>
    %220 = vector.extract_strided_slice %201 {offsets = [48, 0], sizes = [8, 32], strides = [1, 1]} : vector<56x32xf32> to vector<8x32xf32>
    %c296 = arith.constant 296 : index
    %c0_60 = arith.constant 0 : index
    %221 = vector.load %arg4[%c296, %c0_60] : memref<1184x128xf32, #tpu.memory_space<vmem>>, vector<32x128xf32>
    %cst_61 = arith.constant dense<0.000000e+00> : vector<8x128xf32>
    %222 = tpu.matmul %220, %221, %cst_61 {dimension_numbers = #tpu.dot_dimension_numbers<[1], [0], [0], [1], [0, 0, 1, 1], [], []>} : vector<8x32xf32>, vector<32x128xf32>, vector<8x128xf32> -> vector<8x128xf32>
    %223 = arith.addf %204, %207 : vector<8x128xf32>
    %224 = arith.addf %210, %213 : vector<8x128xf32>
    %225 = arith.addf %216, %219 : vector<8x128xf32>
    %226 = arith.addf %223, %224 : vector<8x128xf32>
    %227 = arith.addf %225, %222 : vector<8x128xf32>
    %228 = arith.addf %226, %227 : vector<8x128xf32>
    %229 = vector.broadcast %7 : vector<1x128xf32> to vector<8x128xf32>
    %230 = arith.addf %228, %229 : vector<8x128xf32>
    %cst_62 = arith.constant 0.000000e+00 : f32
    %231 = vector.broadcast %cst_62 : f32 to vector<8x128xf32>
    %232 = arith.maximumf %230, %231 : vector<8x128xf32>
    %c512 = arith.constant 512 : index
    %c0_63 = arith.constant 0 : index
    %233 = vector.load %arg4[%c512, %c0_63] : memref<1184x128xf32, #tpu.memory_space<vmem>>, vector<16x128xf32>
    %234 = vector.extract_strided_slice %233 {offsets = [0, 0], sizes = [1, 128], strides = [1, 1]} : vector<16x128xf32> to vector<1x128xf32>
    %235 = vector.extract_strided_slice %233 {offsets = [1, 0], sizes = [1, 128], strides = [1, 1]} : vector<16x128xf32> to vector<1x128xf32>
    %236 = vector.extract_strided_slice %233 {offsets = [2, 0], sizes = [1, 32], strides = [1, 1]} : vector<16x128xf32> to vector<1x32xf32>
    %237 = vector.extract_strided_slice %233 {offsets = [3, 0], sizes = [1, 32], strides = [1, 1]} : vector<16x128xf32> to vector<1x32xf32>
    %238 = vector.extract_strided_slice %233 {offsets = [4, 0], sizes = [1, 32], strides = [1, 1]} : vector<16x128xf32> to vector<1x32xf32>
    %239 = vector.extract_strided_slice %233 {offsets = [5, 0], sizes = [1, 32], strides = [1, 1]} : vector<16x128xf32> to vector<1x32xf32>
    %240 = vector.extract_strided_slice %233 {offsets = [6, 0], sizes = [1, 32], strides = [1, 1]} : vector<16x128xf32> to vector<1x32xf32>
    %241 = vector.extract_strided_slice %233 {offsets = [7, 0], sizes = [1, 32], strides = [1, 1]} : vector<16x128xf32> to vector<1x32xf32>
    %242 = vector.extract_strided_slice %233 {offsets = [8, 0], sizes = [1, 32], strides = [1, 1]} : vector<16x128xf32> to vector<1x32xf32>
    %c0_64 = arith.constant 0 : index
    %c0_65 = arith.constant 0 : index
    %243 = vector.load %arg2[%c0_64, %c0_65] : memref<16x4xf32, #tpu.memory_space<vmem>>, vector<16x4xf32>
    %c344 = arith.constant 344 : index
    %c0_66 = arith.constant 0 : index
    %244 = vector.load %arg4[%c344, %c0_66] : memref<1184x128xf32, #tpu.memory_space<vmem>>, vector<4x128xf32>
    %cst_67 = arith.constant dense<0.000000e+00> : vector<16x128xf32>
    %245 = tpu.matmul %243, %244, %cst_67 {dimension_numbers = #tpu.dot_dimension_numbers<[1], [0], [0], [1], [0, 0, 1, 1], [], []>} : vector<16x4xf32>, vector<4x128xf32>, vector<16x128xf32> -> vector<16x128xf32>
    %246 = vector.broadcast %234 : vector<1x128xf32> to vector<16x128xf32>
    %247 = arith.addf %245, %246 : vector<16x128xf32>
    %248 = vector.extract_strided_slice %247 {offsets = [0, 0], sizes = [16, 32], strides = [1, 1]} : vector<16x128xf32> to vector<16x32xf32>
    %249 = vector.extract_strided_slice %247 {offsets = [0, 32], sizes = [16, 32], strides = [1, 1]} : vector<16x128xf32> to vector<16x32xf32>
    %250 = vector.extract_strided_slice %247 {offsets = [0, 64], sizes = [16, 32], strides = [1, 1]} : vector<16x128xf32> to vector<16x32xf32>
    %251 = vector.extract_strided_slice %247 {offsets = [0, 96], sizes = [16, 32], strides = [1, 1]} : vector<16x128xf32> to vector<16x32xf32>
    %252 = tpu.iota {dimensions = array<i32: 0>} : vector<16x16xi32>
    %253 = tpu.iota {dimensions = array<i32: 1>} : vector<16x16xi32>
    %c7_i32_68 = arith.constant 7 : i32
    %254 = vector.broadcast %c7_i32_68 : i32 to vector<16x16xi32>
    %255 = arith.andi %252, %254 : vector<16x16xi32>
    %c7_i32_69 = arith.constant 7 : i32
    %256 = vector.broadcast %c7_i32_69 : i32 to vector<16x16xi32>
    %257 = arith.andi %253, %256 : vector<16x16xi32>
    %258 = arith.cmpi eq, %255, %257 : vector<16x16xi32>
    %cst_70 = arith.constant 0.000000e+00 : f32
    %cst_71 = arith.constant -1.000000e+09 : f32
    %259 = vector.broadcast %cst_70 : f32 to vector<16x16xf32>
    %260 = vector.broadcast %cst_71 : f32 to vector<16x16xf32>
    %261 = arith.select %258, %259, %260 : vector<16x16xi1>, vector<16x16xf32>
    %262 = tpu.iota {dimensions = array<i32: 1>} : vector<1x32xi32>
    %c0_i32_72 = arith.constant 0 : i32
    %263 = vector.broadcast %c0_i32_72 : i32 to vector<1x32xi32>
    %264 = arith.cmpi sge, %262, %263 : vector<1x32xi32>
    %c8_i32_73 = arith.constant 8 : i32
    %265 = vector.broadcast %c8_i32_73 : i32 to vector<1x32xi32>
    %266 = arith.cmpi slt, %262, %265 : vector<1x32xi32>
    %267 = arith.andi %264, %266 : vector<1x32xi1>
    %268 = arith.extui %267 : vector<1x32xi1> to vector<1x32xi32>
    %269 = arith.sitofp %268 : vector<1x32xi32> to vector<1x32xf32>
    %270 = vector.broadcast %269 : vector<1x32xf32> to vector<16x32xf32>
    %271 = arith.mulf %249, %270 : vector<16x32xf32>
    %cst_74 = arith.constant dense<0.000000e+00> : vector<16x16xf32>
    %272 = tpu.matmul %248, %271, %cst_74 {dimension_numbers = #tpu.dot_dimension_numbers<[1], [1], [0], [0], [0, 0, 1, 0], [], []>} : vector<16x32xf32>, vector<16x32xf32>, vector<16x16xf32> -> vector<16x16xf32>
    %cst_75 = arith.constant 0.353553385 : f32
    %273 = vector.broadcast %cst_75 : f32 to vector<16x16xf32>
    %274 = arith.mulf %272, %273 : vector<16x16xf32>
    %275 = arith.addf %274, %261 : vector<16x16xf32>
    %cst_76 = arith.constant dense<0xFF800000> : vector<16xf32>
    %276 = vector.multi_reduction <maximumf>, %275, %cst_76 [1] : vector<16x16xf32> to vector<16xf32>
    %277 = vector.shape_cast %276 : vector<16xf32> to vector<16x1xf32>
    %278 = vector.broadcast %277 : vector<16x1xf32> to vector<16x16xf32>
    %279 = arith.subf %275, %278 : vector<16x16xf32>
    %280 = math.exp %279 : vector<16x16xf32>
    %cst_77 = arith.constant dense<0.000000e+00> : vector<16xf32>
    %281 = vector.multi_reduction <add>, %280, %cst_77 [1] : vector<16x16xf32> to vector<16xf32>
    %282 = vector.shape_cast %281 : vector<16xf32> to vector<16x1xf32>
    %283 = tpu.reciprocal %282 {approx = true} : vector<16x1xf32> -> vector<16x1xf32>
    %284 = vector.broadcast %283 : vector<16x1xf32> to vector<16x16xf32>
    %285 = arith.mulf %280, %284 : vector<16x16xf32>
    %286 = vector.broadcast %269 : vector<1x32xf32> to vector<16x32xf32>
    %287 = arith.mulf %250, %286 : vector<16x32xf32>
    %cst_78 = arith.constant dense<0.000000e+00> : vector<16x32xf32>
    %288 = tpu.matmul %285, %287, %cst_78 {dimension_numbers = #tpu.dot_dimension_numbers<[1], [0], [0], [1], [0, 0, 1, 1], [], []>} : vector<16x16xf32>, vector<16x32xf32>, vector<16x32xf32> -> vector<16x32xf32>
    %c8_i32_79 = arith.constant 8 : i32
    %289 = vector.broadcast %c8_i32_79 : i32 to vector<1x32xi32>
    %290 = arith.cmpi sge, %262, %289 : vector<1x32xi32>
    %c16_i32_80 = arith.constant 16 : i32
    %291 = vector.broadcast %c16_i32_80 : i32 to vector<1x32xi32>
    %292 = arith.cmpi slt, %262, %291 : vector<1x32xi32>
    %293 = arith.andi %290, %292 : vector<1x32xi1>
    %294 = arith.extui %293 : vector<1x32xi1> to vector<1x32xi32>
    %295 = arith.sitofp %294 : vector<1x32xi32> to vector<1x32xf32>
    %296 = vector.broadcast %295 : vector<1x32xf32> to vector<16x32xf32>
    %297 = arith.mulf %249, %296 : vector<16x32xf32>
    %cst_81 = arith.constant dense<0.000000e+00> : vector<16x16xf32>
    %298 = tpu.matmul %248, %297, %cst_81 {dimension_numbers = #tpu.dot_dimension_numbers<[1], [1], [0], [0], [0, 0, 1, 0], [], []>} : vector<16x32xf32>, vector<16x32xf32>, vector<16x16xf32> -> vector<16x16xf32>
    %cst_82 = arith.constant 0.353553385 : f32
    %299 = vector.broadcast %cst_82 : f32 to vector<16x16xf32>
    %300 = arith.mulf %298, %299 : vector<16x16xf32>
    %301 = arith.addf %300, %261 : vector<16x16xf32>
    %cst_83 = arith.constant dense<0xFF800000> : vector<16xf32>
    %302 = vector.multi_reduction <maximumf>, %301, %cst_83 [1] : vector<16x16xf32> to vector<16xf32>
    %303 = vector.shape_cast %302 : vector<16xf32> to vector<16x1xf32>
    %304 = vector.broadcast %303 : vector<16x1xf32> to vector<16x16xf32>
    %305 = arith.subf %301, %304 : vector<16x16xf32>
    %306 = math.exp %305 : vector<16x16xf32>
    %cst_84 = arith.constant dense<0.000000e+00> : vector<16xf32>
    %307 = vector.multi_reduction <add>, %306, %cst_84 [1] : vector<16x16xf32> to vector<16xf32>
    %308 = vector.shape_cast %307 : vector<16xf32> to vector<16x1xf32>
    %309 = tpu.reciprocal %308 {approx = true} : vector<16x1xf32> -> vector<16x1xf32>
    %310 = vector.broadcast %309 : vector<16x1xf32> to vector<16x16xf32>
    %311 = arith.mulf %306, %310 : vector<16x16xf32>
    %312 = vector.broadcast %295 : vector<1x32xf32> to vector<16x32xf32>
    %313 = arith.mulf %250, %312 : vector<16x32xf32>
    %cst_85 = arith.constant dense<0.000000e+00> : vector<16x32xf32>
    %314 = tpu.matmul %311, %313, %cst_85 {dimension_numbers = #tpu.dot_dimension_numbers<[1], [0], [0], [1], [0, 0, 1, 1], [], []>} : vector<16x16xf32>, vector<16x32xf32>, vector<16x32xf32> -> vector<16x32xf32>
    %c16_i32_86 = arith.constant 16 : i32
    %315 = vector.broadcast %c16_i32_86 : i32 to vector<1x32xi32>
    %316 = arith.cmpi sge, %262, %315 : vector<1x32xi32>
    %c24_i32_87 = arith.constant 24 : i32
    %317 = vector.broadcast %c24_i32_87 : i32 to vector<1x32xi32>
    %318 = arith.cmpi slt, %262, %317 : vector<1x32xi32>
    %319 = arith.andi %316, %318 : vector<1x32xi1>
    %320 = arith.extui %319 : vector<1x32xi1> to vector<1x32xi32>
    %321 = arith.sitofp %320 : vector<1x32xi32> to vector<1x32xf32>
    %322 = vector.broadcast %321 : vector<1x32xf32> to vector<16x32xf32>
    %323 = arith.mulf %249, %322 : vector<16x32xf32>
    %cst_88 = arith.constant dense<0.000000e+00> : vector<16x16xf32>
    %324 = tpu.matmul %248, %323, %cst_88 {dimension_numbers = #tpu.dot_dimension_numbers<[1], [1], [0], [0], [0, 0, 1, 0], [], []>} : vector<16x32xf32>, vector<16x32xf32>, vector<16x16xf32> -> vector<16x16xf32>
    %cst_89 = arith.constant 0.353553385 : f32
    %325 = vector.broadcast %cst_89 : f32 to vector<16x16xf32>
    %326 = arith.mulf %324, %325 : vector<16x16xf32>
    %327 = arith.addf %326, %261 : vector<16x16xf32>
    %cst_90 = arith.constant dense<0xFF800000> : vector<16xf32>
    %328 = vector.multi_reduction <maximumf>, %327, %cst_90 [1] : vector<16x16xf32> to vector<16xf32>
    %329 = vector.shape_cast %328 : vector<16xf32> to vector<16x1xf32>
    %330 = vector.broadcast %329 : vector<16x1xf32> to vector<16x16xf32>
    %331 = arith.subf %327, %330 : vector<16x16xf32>
    %332 = math.exp %331 : vector<16x16xf32>
    %cst_91 = arith.constant dense<0.000000e+00> : vector<16xf32>
    %333 = vector.multi_reduction <add>, %332, %cst_91 [1] : vector<16x16xf32> to vector<16xf32>
    %334 = vector.shape_cast %333 : vector<16xf32> to vector<16x1xf32>
    %335 = tpu.reciprocal %334 {approx = true} : vector<16x1xf32> -> vector<16x1xf32>
    %336 = vector.broadcast %335 : vector<16x1xf32> to vector<16x16xf32>
    %337 = arith.mulf %332, %336 : vector<16x16xf32>
    %338 = vector.broadcast %321 : vector<1x32xf32> to vector<16x32xf32>
    %339 = arith.mulf %250, %338 : vector<16x32xf32>
    %cst_92 = arith.constant dense<0.000000e+00> : vector<16x32xf32>
    %340 = tpu.matmul %337, %339, %cst_92 {dimension_numbers = #tpu.dot_dimension_numbers<[1], [0], [0], [1], [0, 0, 1, 1], [], []>} : vector<16x16xf32>, vector<16x32xf32>, vector<16x32xf32> -> vector<16x32xf32>
    %c24_i32_93 = arith.constant 24 : i32
    %341 = vector.broadcast %c24_i32_93 : i32 to vector<1x32xi32>
    %342 = arith.cmpi sge, %262, %341 : vector<1x32xi32>
    %c32_i32_94 = arith.constant 32 : i32
    %343 = vector.broadcast %c32_i32_94 : i32 to vector<1x32xi32>
    %344 = arith.cmpi slt, %262, %343 : vector<1x32xi32>
    %345 = arith.andi %342, %344 : vector<1x32xi1>
    %346 = arith.extui %345 : vector<1x32xi1> to vector<1x32xi32>
    %347 = arith.sitofp %346 : vector<1x32xi32> to vector<1x32xf32>
    %348 = vector.broadcast %347 : vector<1x32xf32> to vector<16x32xf32>
    %349 = arith.mulf %249, %348 : vector<16x32xf32>
    %cst_95 = arith.constant dense<0.000000e+00> : vector<16x16xf32>
    %350 = tpu.matmul %248, %349, %cst_95 {dimension_numbers = #tpu.dot_dimension_numbers<[1], [1], [0], [0], [0, 0, 1, 0], [], []>} : vector<16x32xf32>, vector<16x32xf32>, vector<16x16xf32> -> vector<16x16xf32>
    %cst_96 = arith.constant 0.353553385 : f32
    %351 = vector.broadcast %cst_96 : f32 to vector<16x16xf32>
    %352 = arith.mulf %350, %351 : vector<16x16xf32>
    %353 = arith.addf %352, %261 : vector<16x16xf32>
    %cst_97 = arith.constant dense<0xFF800000> : vector<16xf32>
    %354 = vector.multi_reduction <maximumf>, %353, %cst_97 [1] : vector<16x16xf32> to vector<16xf32>
    %355 = vector.shape_cast %354 : vector<16xf32> to vector<16x1xf32>
    %356 = vector.broadcast %355 : vector<16x1xf32> to vector<16x16xf32>
    %357 = arith.subf %353, %356 : vector<16x16xf32>
    %358 = math.exp %357 : vector<16x16xf32>
    %cst_98 = arith.constant dense<0.000000e+00> : vector<16xf32>
    %359 = vector.multi_reduction <add>, %358, %cst_98 [1] : vector<16x16xf32> to vector<16xf32>
    %360 = vector.shape_cast %359 : vector<16xf32> to vector<16x1xf32>
    %361 = tpu.reciprocal %360 {approx = true} : vector<16x1xf32> -> vector<16x1xf32>
    %362 = vector.broadcast %361 : vector<16x1xf32> to vector<16x16xf32>
    %363 = arith.mulf %358, %362 : vector<16x16xf32>
    %364 = vector.broadcast %347 : vector<1x32xf32> to vector<16x32xf32>
    %365 = arith.mulf %250, %364 : vector<16x32xf32>
    %cst_99 = arith.constant dense<0.000000e+00> : vector<16x32xf32>
    %366 = tpu.matmul %363, %365, %cst_99 {dimension_numbers = #tpu.dot_dimension_numbers<[1], [0], [0], [1], [0, 0, 1, 1], [], []>} : vector<16x16xf32>, vector<16x32xf32>, vector<16x32xf32> -> vector<16x32xf32>
    %367 = arith.addf %288, %314 : vector<16x32xf32>
    %368 = arith.addf %340, %366 : vector<16x32xf32>
    %369 = arith.addf %367, %368 : vector<16x32xf32>
    %c352 = arith.constant 352 : index
    %c0_100 = arith.constant 0 : index
    %370 = vector.load %arg4[%c352, %c0_100] : memref<1184x128xf32, #tpu.memory_space<vmem>>, vector<32x32xf32>
    %cst_101 = arith.constant dense<0.000000e+00> : vector<16x32xf32>
    %371 = tpu.matmul %369, %370, %cst_101 {dimension_numbers = #tpu.dot_dimension_numbers<[1], [0], [0], [1], [0, 0, 1, 1], [], []>} : vector<16x32xf32>, vector<32x32xf32>, vector<16x32xf32> -> vector<16x32xf32>
    %372 = vector.broadcast %236 : vector<1x32xf32> to vector<16x32xf32>
    %373 = arith.addf %371, %372 : vector<16x32xf32>
    %374 = arith.addf %251, %373 : vector<16x32xf32>
    %cst_102 = arith.constant dense<0.000000e+00> : vector<16xf32>
    %375 = vector.multi_reduction <add>, %374, %cst_102 [1] : vector<16x32xf32> to vector<16xf32>
    %376 = vector.shape_cast %375 : vector<16xf32> to vector<16x1xf32>
    %cst_103 = arith.constant 3.200000e+01 : f32
    %377 = vector.broadcast %cst_103 : f32 to vector<16x1xf32>
    %378 = arith.divf %376, %377 : vector<16x1xf32>
    %379 = arith.mulf %374, %374 : vector<16x32xf32>
    %cst_104 = arith.constant dense<0.000000e+00> : vector<16xf32>
    %380 = vector.multi_reduction <add>, %379, %cst_104 [1] : vector<16x32xf32> to vector<16xf32>
    %381 = vector.shape_cast %380 : vector<16xf32> to vector<16x1xf32>
    %cst_105 = arith.constant 3.200000e+01 : f32
    %382 = vector.broadcast %cst_105 : f32 to vector<16x1xf32>
    %383 = arith.divf %381, %382 : vector<16x1xf32>
    %384 = arith.mulf %378, %378 : vector<16x1xf32>
    %385 = arith.subf %383, %384 : vector<16x1xf32>
    %386 = vector.broadcast %378 : vector<16x1xf32> to vector<16x32xf32>
    %387 = arith.subf %374, %386 : vector<16x32xf32>
    %cst_106 = arith.constant 9.99999974E-6 : f32
    %388 = vector.broadcast %cst_106 : f32 to vector<16x1xf32>
    %389 = arith.addf %385, %388 : vector<16x1xf32>
    %390 = math.rsqrt %389 : vector<16x1xf32>
    %391 = vector.broadcast %390 : vector<16x1xf32> to vector<16x32xf32>
    %392 = arith.mulf %387, %391 : vector<16x32xf32>
    %393 = vector.broadcast %239 : vector<1x32xf32> to vector<16x32xf32>
    %394 = arith.mulf %392, %393 : vector<16x32xf32>
    %395 = vector.broadcast %240 : vector<1x32xf32> to vector<16x32xf32>
    %396 = arith.addf %394, %395 : vector<16x32xf32>
    %c384 = arith.constant 384 : index
    %c0_107 = arith.constant 0 : index
    %397 = vector.load %arg4[%c384, %c0_107] : memref<1184x128xf32, #tpu.memory_space<vmem>>, vector<32x32xf32>
    %cst_108 = arith.constant dense<0.000000e+00> : vector<16x32xf32>
    %398 = tpu.matmul %396, %397, %cst_108 {dimension_numbers = #tpu.dot_dimension_numbers<[1], [0], [0], [1], [0, 0, 1, 1], [], []>} : vector<16x32xf32>, vector<32x32xf32>, vector<16x32xf32> -> vector<16x32xf32>
    %399 = vector.broadcast %237 : vector<1x32xf32> to vector<16x32xf32>
    %400 = arith.addf %398, %399 : vector<16x32xf32>
    %cst_109 = arith.constant 0.000000e+00 : f32
    %401 = vector.broadcast %cst_109 : f32 to vector<16x32xf32>
    %402 = arith.maximumf %400, %401 : vector<16x32xf32>
    %c416 = arith.constant 416 : index
    %c0_110 = arith.constant 0 : index
    %403 = vector.load %arg4[%c416, %c0_110] : memref<1184x128xf32, #tpu.memory_space<vmem>>, vector<32x32xf32>
    %cst_111 = arith.constant dense<0.000000e+00> : vector<16x32xf32>
    %404 = tpu.matmul %402, %403, %cst_111 {dimension_numbers = #tpu.dot_dimension_numbers<[1], [0], [0], [1], [0, 0, 1, 1], [], []>} : vector<16x32xf32>, vector<32x32xf32>, vector<16x32xf32> -> vector<16x32xf32>
    %405 = vector.broadcast %238 : vector<1x32xf32> to vector<16x32xf32>
    %406 = arith.addf %404, %405 : vector<16x32xf32>
    %407 = arith.addf %396, %406 : vector<16x32xf32>
    %cst_112 = arith.constant dense<0.000000e+00> : vector<16xf32>
    %408 = vector.multi_reduction <add>, %407, %cst_112 [1] : vector<16x32xf32> to vector<16xf32>
    %409 = vector.shape_cast %408 : vector<16xf32> to vector<16x1xf32>
    %cst_113 = arith.constant 3.200000e+01 : f32
    %410 = vector.broadcast %cst_113 : f32 to vector<16x1xf32>
    %411 = arith.divf %409, %410 : vector<16x1xf32>
    %412 = arith.mulf %407, %407 : vector<16x32xf32>
    %cst_114 = arith.constant dense<0.000000e+00> : vector<16xf32>
    %413 = vector.multi_reduction <add>, %412, %cst_114 [1] : vector<16x32xf32> to vector<16xf32>
    %414 = vector.shape_cast %413 : vector<16xf32> to vector<16x1xf32>
    %cst_115 = arith.constant 3.200000e+01 : f32
    %415 = vector.broadcast %cst_115 : f32 to vector<16x1xf32>
    %416 = arith.divf %414, %415 : vector<16x1xf32>
    %417 = arith.mulf %411, %411 : vector<16x1xf32>
    %418 = arith.subf %416, %417 : vector<16x1xf32>
    %419 = vector.broadcast %411 : vector<16x1xf32> to vector<16x32xf32>
    %420 = arith.subf %407, %419 : vector<16x32xf32>
    %cst_116 = arith.constant 9.99999974E-6 : f32
    %421 = vector.broadcast %cst_116 : f32 to vector<16x1xf32>
    %422 = arith.addf %418, %421 : vector<16x1xf32>
    %423 = math.rsqrt %422 : vector<16x1xf32>
    %424 = vector.broadcast %423 : vector<16x1xf32> to vector<16x32xf32>
    %425 = arith.mulf %420, %424 : vector<16x32xf32>
    %426 = vector.broadcast %241 : vector<1x32xf32> to vector<16x32xf32>
    %427 = arith.mulf %425, %426 : vector<16x32xf32>
    %428 = vector.broadcast %242 : vector<1x32xf32> to vector<16x32xf32>
    %429 = arith.addf %427, %428 : vector<16x32xf32>
    %430 = vector.extract_strided_slice %429 {offsets = [0, 0], sizes = [8, 32], strides = [1, 1]} : vector<16x32xf32> to vector<8x32xf32>
    %c448 = arith.constant 448 : index
    %c0_117 = arith.constant 0 : index
    %431 = vector.load %arg4[%c448, %c0_117] : memref<1184x128xf32, #tpu.memory_space<vmem>>, vector<32x128xf32>
    %cst_118 = arith.constant dense<0.000000e+00> : vector<8x128xf32>
    %432 = tpu.matmul %430, %431, %cst_118 {dimension_numbers = #tpu.dot_dimension_numbers<[1], [0], [0], [1], [0, 0, 1, 1], [], []>} : vector<8x32xf32>, vector<32x128xf32>, vector<8x128xf32> -> vector<8x128xf32>
    %433 = vector.extract_strided_slice %429 {offsets = [8, 0], sizes = [8, 32], strides = [1, 1]} : vector<16x32xf32> to vector<8x32xf32>
    %c480 = arith.constant 480 : index
    %c0_119 = arith.constant 0 : index
    %434 = vector.load %arg4[%c480, %c0_119] : memref<1184x128xf32, #tpu.memory_space<vmem>>, vector<32x128xf32>
    %cst_120 = arith.constant dense<0.000000e+00> : vector<8x128xf32>
    %435 = tpu.matmul %433, %434, %cst_120 {dimension_numbers = #tpu.dot_dimension_numbers<[1], [0], [0], [1], [0, 0, 1, 1], [], []>} : vector<8x32xf32>, vector<32x128xf32>, vector<8x128xf32> -> vector<8x128xf32>
    %436 = arith.addf %432, %435 : vector<8x128xf32>
    %437 = vector.broadcast %235 : vector<1x128xf32> to vector<8x128xf32>
    %438 = arith.addf %436, %437 : vector<8x128xf32>
    %cst_121 = arith.constant 0.000000e+00 : f32
    %439 = vector.broadcast %cst_121 : f32 to vector<8x128xf32>
    %440 = arith.maximumf %438, %439 : vector<8x128xf32>
    %c0_122 = arith.constant 0 : index
    %c0_123 = arith.constant 0 : index
    %441 = vector.load %arg3[%c0_122, %c0_123] : memref<8x8xf32, #tpu.memory_space<vmem>>, vector<8x8xf32>
    %c528 = arith.constant 528 : index
    %c0_124 = arith.constant 0 : index
    %442 = vector.load %arg4[%c528, %c0_124] : memref<1184x128xf32, #tpu.memory_space<vmem>>, vector<8x128xf32>
    %cst_125 = arith.constant dense<0.000000e+00> : vector<8x128xf32>
    %443 = tpu.matmul %441, %442, %cst_125 {dimension_numbers = #tpu.dot_dimension_numbers<[1], [0], [0], [1], [0, 0, 1, 1], [], []>} : vector<8x8xf32>, vector<8x128xf32>, vector<8x128xf32> -> vector<8x128xf32>
    %444 = vector.broadcast %1 : vector<1x128xf32> to vector<8x128xf32>
    %445 = arith.addf %443, %444 : vector<8x128xf32>
    %cst_126 = arith.constant 0.000000e+00 : f32
    %446 = vector.broadcast %cst_126 : f32 to vector<8x128xf32>
    %447 = arith.maximumf %445, %446 : vector<8x128xf32>
    %c536 = arith.constant 536 : index
    %c0_127 = arith.constant 0 : index
    %448 = vector.load %arg4[%c536, %c0_127] : memref<1184x128xf32, #tpu.memory_space<vmem>>, vector<128x128xf32>
    %cst_128 = arith.constant dense<0.000000e+00> : vector<8x128xf32>
    %449 = tpu.matmul %232, %448, %cst_128 {dimension_numbers = #tpu.dot_dimension_numbers<[1], [0], [0], [1], [0, 0, 1, 1], [], []>} : vector<8x128xf32>, vector<128x128xf32>, vector<8x128xf32> -> vector<8x128xf32>
    %c664 = arith.constant 664 : index
    %c0_129 = arith.constant 0 : index
    %450 = vector.load %arg4[%c664, %c0_129] : memref<1184x128xf32, #tpu.memory_space<vmem>>, vector<128x128xf32>
    %cst_130 = arith.constant dense<0.000000e+00> : vector<8x128xf32>
    %451 = tpu.matmul %440, %450, %cst_130 {dimension_numbers = #tpu.dot_dimension_numbers<[1], [0], [0], [1], [0, 0, 1, 1], [], []>} : vector<8x128xf32>, vector<128x128xf32>, vector<8x128xf32> -> vector<8x128xf32>
    %452 = arith.addf %449, %451 : vector<8x128xf32>
    %c792 = arith.constant 792 : index
    %c0_131 = arith.constant 0 : index
    %453 = vector.load %arg4[%c792, %c0_131] : memref<1184x128xf32, #tpu.memory_space<vmem>>, vector<128x128xf32>
    %cst_132 = arith.constant dense<0.000000e+00> : vector<8x128xf32>
    %454 = tpu.matmul %447, %453, %cst_132 {dimension_numbers = #tpu.dot_dimension_numbers<[1], [0], [0], [1], [0, 0, 1, 1], [], []>} : vector<8x128xf32>, vector<128x128xf32>, vector<8x128xf32> -> vector<8x128xf32>
    %455 = vector.broadcast %2 : vector<1x128xf32> to vector<8x128xf32>
    %456 = arith.addf %454, %455 : vector<8x128xf32>
    %457 = arith.addf %452, %456 : vector<8x128xf32>
    %cst_133 = arith.constant 0.000000e+00 : f32
    %458 = vector.broadcast %cst_133 : f32 to vector<8x128xf32>
    %459 = arith.maximumf %457, %458 : vector<8x128xf32>
    %c920 = arith.constant 920 : index
    %c0_134 = arith.constant 0 : index
    %460 = vector.load %arg4[%c920, %c0_134] : memref<1184x128xf32, #tpu.memory_space<vmem>>, vector<128x128xf32>
    %cst_135 = arith.constant dense<0.000000e+00> : vector<8x128xf32>
    %461 = tpu.matmul %459, %460, %cst_135 {dimension_numbers = #tpu.dot_dimension_numbers<[1], [0], [0], [1], [0, 0, 1, 1], [], []>} : vector<8x128xf32>, vector<128x128xf32>, vector<8x128xf32> -> vector<8x128xf32>
    %462 = vector.broadcast %3 : vector<1x128xf32> to vector<8x128xf32>
    %463 = arith.addf %461, %462 : vector<8x128xf32>
    %cst_136 = arith.constant 0.000000e+00 : f32
    %464 = vector.broadcast %cst_136 : f32 to vector<8x128xf32>
    %465 = arith.maximumf %463, %464 : vector<8x128xf32>
    %c1048 = arith.constant 1048 : index
    %c0_137 = arith.constant 0 : index
    %466 = vector.load %arg4[%c1048, %c0_137] : memref<1184x128xf32, #tpu.memory_space<vmem>>, vector<128x128xf32>
    %cst_138 = arith.constant dense<0.000000e+00> : vector<8x128xf32>
    %467 = tpu.matmul %465, %466, %cst_138 {dimension_numbers = #tpu.dot_dimension_numbers<[1], [0], [0], [1], [0, 0, 1, 1], [], []>} : vector<8x128xf32>, vector<128x128xf32>, vector<8x128xf32> -> vector<8x128xf32>
    %468 = vector.broadcast %4 : vector<1x128xf32> to vector<8x128xf32>
    %469 = arith.addf %467, %468 : vector<8x128xf32>
    %470 = tpu.iota {dimensions = array<i32: 1>} : vector<8x128xi32>
    %c7_i32_139 = arith.constant 7 : i32
    %471 = vector.broadcast %c7_i32_139 : i32 to vector<8x128xi32>
    %472 = arith.cmpi slt, %470, %471 : vector<8x128xi32>
    %cst_140 = arith.constant -1.000000e+30 : f32
    %473 = vector.broadcast %cst_140 : f32 to vector<8x128xf32>
    %474 = arith.select %472, %469, %473 : vector<8x128xi1>, vector<8x128xf32>
    %cst_141 = arith.constant dense<0xFF800000> : vector<8xf32>
    %475 = vector.multi_reduction <maximumf>, %474, %cst_141 [1] : vector<8x128xf32> to vector<8xf32>
    %476 = vector.shape_cast %475 : vector<8xf32> to vector<8x1xf32>
    %477 = vector.broadcast %476 : vector<8x1xf32> to vector<8x128xf32>
    %478 = arith.subf %474, %477 : vector<8x128xf32>
    %479 = math.exp %478 : vector<8x128xf32>
    %cst_142 = arith.constant dense<0.000000e+00> : vector<8xf32>
    %480 = vector.multi_reduction <add>, %479, %cst_142 [1] : vector<8x128xf32> to vector<8xf32>
    %481 = vector.shape_cast %480 : vector<8xf32> to vector<8x1xf32>
    %482 = vector.broadcast %481 : vector<8x1xf32> to vector<8x128xf32>
    %483 = arith.divf %479, %482 : vector<8x128xf32>
    %484 = arith.select %472, %483, %469 : vector<8x128xi1>, vector<8x128xf32>
    %c0_143 = arith.constant 0 : index
    %c0_144 = arith.constant 0 : index
    %485 = vector.load %arg5[%c0_143, %c0_144] : memref<8x128xf32, #tpu.memory_space<vmem>>, vector<8x128xf32>
    tpu.vector_store %arg5[%c0_143, %c0_144], %484 {strides = array<i32>} : memref<8x128xf32, #tpu.memory_space<vmem>>, vector<8x128xf32>,
    return
  }
  func.func @transform_0(%arg0: i32) -> (i32, i32) {
    %c0_i32 = arith.constant 0 : i32
    %c0_i32_0 = arith.constant 0 : i32
    return %arg0, %c0_i32 : i32, i32
  }
  func.func @transform_1(%arg0: i32) -> (i32, i32) {
    %c0_i32 = arith.constant 0 : i32
    %c0_i32_0 = arith.constant 0 : i32
    return %arg0, %c0_i32 : i32, i32
  }
  func.func @transform_2(%arg0: i32) -> (i32, i32) {
    %c0_i32 = arith.constant 0 : i32
    %c0_i32_0 = arith.constant 0 : i32
    return %arg0, %c0_i32 : i32, i32
  }
  func.func @transform_3(%arg0: i32) -> (i32, i32) {
    %c0_i32 = arith.constant 0 : i32
    %c0_i32_0 = arith.constant 0 : i32
    %c0_i32_1 = arith.constant 0 : i32
    return %c0_i32, %c0_i32_0 : i32, i32
  }
  func.func @transform_4(%arg0: i32) -> (i32, i32) {
    %c0_i32 = arith.constant 0 : i32
    %c0_i32_0 = arith.constant 0 : i32
    return %arg0, %c0_i32 : i32, i32
  }
}

</mosaic_0001>

<bundles_post_ra>
// kernel: attention_actor_critic.1
= control target key start
LH: loop header
LB: loop body
LE: loop exit
PB: predicated region body
PF: predicated region fallthrough
CT: control target
= control target key end

     0   :  { %9 = vsyncpa [#allocation3], 0  ;;  %s6817_s15 = smov [#allocation2]   ;;  %s8633_s0 = inlined_call_operand.vmem [shape: f32[56,2], index: 0, kind: input, shape index: {}]   ;;  %s8634_s1 = inlined_call_operand.vmem [shape: f32[16,4], index: 1, kind: input, shape index: {}]   ;;  %s8635_s2 = inlined_call_operand.vmem [shape: f32[8,8], index: 2, kind: input, shape index: {}]   ;;  %s8636_s3 = inlined_call_operand.hbm [shape: f32[1184,128], index: 3, kind: input, shape index: {}]   ;;  %s8637_s4 = inlined_call_operand.vmem [shape: f32[8,128], index: 4, kind: output, shape index: {}]  }
   0x1   :  { %s21_s16 = sshll.u32 %s6817_s15, 4  ;;  %s22_s16 = int_to_ptr.vmem [resolvable:$true] %s21_s16 }
   0x2   :  { %s6803_s17 = scalar_lea.vmem %s22_s16, 18944  ;;  %p6808_p1 = scmp.lt.s32.totalorder %s22_s16, %s22_s16 }
   0x3   :  { %p6804_p0 = scmp.ne.s32.totalorder %s22_s16, %s6803_s17  ;;  %p6809_p2 = scmp.lt.s32.totalorder %s6803_s17, %s6803_s17 }
   0x5   :  { %p6810_p3 = por %p6809_p2, %p6808_p1 }
   0x7   :  { %p6811_p4 = pnand %p6810_p3, %p6804_p0 }
   0x9   :  { %6814 = shalt.err (!%p6811_p4)
}
   0xa   :  { %s6818_s18 = smov 128   ;;  %s6819_s19 = smov 8  }
   0xb   :  { %27 = dma.hbm_to_vmem [thread:$0]  %s8636_s3, 18944, %s22_s16, [#allocation3], %s6818_s18, %s6818_s18, %s6819_s19  }
   0xc   :  { %6815 = dma.done.wait [#allocation3], 18944  }
   0xd   :  { %6816 = vsyncadd [#allocation3], 4294948352  ;;  %v8638_v0 = vmov 0.0   ;;  %vm6821_vm0 = vmmov 0   ;;  %v42_v1 = vlaneseq  ;;  %vm68_vm1 = vcmask 1041408   ;;  %v34_v4 = vld [vmem:[%s8633_s0] sm:$0xff] }
   0xe   :  { %5812 = vmatprep.subr.mxu1 %v8638_v0  ;;  %5814 = vmatprep.mubr.msk.f32.mxu1 %vm6821_vm0, %v8638_v0  ;;  %vm46_vm4 = vcmask 15360   ;;  %v41_v3 = vld [vmem:[#allocation2] sm:$0x3]  ;;  %s6822_s23 = smov 32   ;;  %v35_v6 = vld [vmem:[%s8633_s0 + $0x8] sm:$0xff]  ;;  %v36_v7 = vld [vmem:[%s8633_s0 + $0x10] sm:$0xff] }
   0xf   :  { %5870 = vmatprep.subr.mxu0 %v8638_v0  ;;  %5884 = vmatprep.mubr.msk.f32.mxu0 %vm6821_vm0, %v8638_v0  ;;  %v6860_v2 = vand.u32 127, %v42_v1  ;;  %v37_v8 = vld [vmem:[%s8633_s0 + $0x18] sm:$0xff]  ;;  %v38_v9 = vld [vmem:[%s8633_s0 + $0x20] sm:$0xff]  ;;  %v39_v10 = vld [vmem:[%s8633_s0 + $0x28] sm:$0xff]  ;;  %v6912_v18 = vshrl.u32 %v42_v1, 7  ;;  %s6824_s10 = smov 64  }
  0x10   :  { %5813 = vmatpush3.msk.msra.mxu1 %vm68_vm1, %v41_v3  ;;  %v40_v11 = vld [vmem:[%s8633_s0 + $0x30] sm:$0xff]  ;;  %v32_v22 = vld [vmem:[#allocation2 + $0x148] sm:$0xff]  ;;  %s6823_s0 = smov 96   ;;  %vm241_vm10 = vcmask 261120  }
  0x11   :  { %8667 = vst [vmem:[#allocation5_spill] sm:$0xff] %v6860_v2  ;;  %vm479_vm2 = vcmp.ge.s32.totalorder %v6860_v2, 8  ;;  %vm480_vm3 = vcmp.lt.s32.totalorder %v6860_v2, 16  ;;  %5815 = vmatmul.mubr.msk.f32.vlgmr.msra.gmra.mxu1 %vm46_vm4, %v34_v4  ;;  %5835 = vmatprep.subr.mxu1 %v8638_v0  ;;  %8668 = vst [vmem:[#allocation6_spill] sm:$0xff] %v6912_v18  ;;  %v6915_v21 = vsub.s32 0, %v6912_v18  ;;  %vm1132_vm6 = vcmp.ge.s32.totalorder %v6860_v2, 24 }
  0x12   :  { %vm481_vm5 = vmand %vm479_vm2, %vm480_vm3  ;;  %5817 = vmatprep.mubr.msk.f32.mxu1 %vm6821_vm0, %v8638_v0  ;;  %vm1133_vm7 = vcmp.lt.s32.totalorder %v6860_v2, 32  ;;  %vm205_vm8 = vcmp.lt.s32.totalorder %v6860_v2, 8  ;;  %vm880_vm11 = vcmp.ge.s32.totalorder %v6860_v2, 16  ;;  %vm881_vm12 = vcmp.lt.s32.totalorder %v6860_v2, 24 }
  0x13   :  { %v6868_v5 = vsel %vm481_vm5, 1.0, %v8638_v0  ;;  %8669 = vst [vmem:[#allocation7_spill] sm:$0xff] %v6915_v21  ;;  %v45_v25 = vrot.slane %v32_v22, %v6915_v21  ;;  %vm1134_vm9 = vmand %vm1132_vm6, %vm1133_vm7  ;;  %v6953_v43 = vsel %vm205_vm8, 1.0, %v8638_v0  ;;  %vm391_vm2 = vcmask 457728  }
  0x14   :  { %485 = vrot.lane.b32.xlu0 %v6868_v5, %s6822_s23  ;;  %v6956_v44 = vsel %vm1134_vm9, 1.0, %v8638_v0  ;;  %vm882_vm13 = vmand %vm880_vm11, %vm881_vm12  ;;  %vm3277_vm7 = vcmask 1043456   ;;  %vm3270_vm8 = vcmask 31744   ;;  %vm3453_vm9 = vcmask 130048  }
  0x15   :  { %5818 = vmatmul.mubr.msk.f32.gmra.mxu1 %vm46_vm4, %v35_v6  ;;  %v6598_v47 = vpack.i.bf16 %v6956_v44, %v6953_v43  ;;  %v7000_v62 = vsel %vm882_vm13, 1.0, %v8638_v0  ;;  %vm4776_vm11 = vcmask 64512  }
  0x16   :  { %5820 = vmatprep.mubr.msk.f32.mxu1 %vm6821_vm0, %v8638_v0 }
  0x19   :  { %5821 = vmatmul.mubr.msk.f32.gmra.mxu1 %vm46_vm4, %v36_v7 }
  0x1a   :  { %5823 = vmatprep.mubr.msk.f32.mxu1 %vm6821_vm0, %v8638_v0 }
  0x1d   :  { %5824 = vmatmul.mubr.msk.f32.gmra.mxu1 %vm46_vm4, %v37_v8 }
  0x1e   :  { %5826 = vmatprep.mubr.msk.f32.mxu1 %vm6821_vm0, %v8638_v0 }
  0x21   :  { %5827 = vmatmul.mubr.msk.f32.gmra.mxu1 %vm46_vm4, %v38_v9 }
  0x22   :  { %5829 = vmatprep.mubr.msk.f32.mxu1 %vm6821_vm0, %v8638_v0 }
  0x25   :  { %5830 = vmatmul.mubr.msk.f32.gmra.mxu1 %vm46_vm4, %v39_v10 }
  0x26   :  { %5832 = vmatprep.mubr.msk.f32.mxu1 %vm6821_vm0, %v8638_v0 }
  0x29   :  { %5833 = vmatmul.mubr.msk.f32.gmra.mxu1 %vm46_vm4, %v40_v11 }
  0x2a   :  { %5849 = vmatprep.mubr.msk.f32.mxu1 %vm6821_vm0, %v8638_v0 }
  0x86   :  { %v6920_v28 = vpop.permute.xlu0 %485 }
  0x87   :  { %8671 = vst [vmem:[#allocation9_spill] sm:$0xff] %v6920_v28 }
  0xd1   :  { %v138_v12 = vpop.f32.mrf.mxu1 }
  0xd2   :  { %v6942_v39 = vadd.f32 %v138_v12, %v45_v25 }
  0xd3   :  { %v5816_v13 = vpop.f32.mrf.mxu1 }
  0xd4   :  { %v488_v46 = vmul.f32 %v6920_v28, %v6942_v39 }
  0xd5   :  { %v143_v14 = vpop.f32.mrf.mxu1 }
  0xd6   :  { %v6944_v40 = vadd.f32 %v143_v14, %v45_v25  ;;  %v179_v14 = vadd.s32 48, %v6912_v18 }
  0xd7   :  { %v5819_v15 = vpop.f32.mrf.mxu1 }
  0xd8   :  { %8676 = vst [vmem:[#allocation14_spill] sm:$0xff] %v6944_v40  ;;  %v489_v45 = vmul.f32 %v6920_v28, %v6944_v40  ;;  %v7074_v15 = vand.u32 7, %v6860_v2 }
  0xd9   :  { %v148_v16 = vpop.f32.mrf.mxu1 }
  0xda   :  { %v6929_v35 = vadd.f32 %v148_v16, %v45_v25  ;;  %v188_v16 = vand.u32 7, %v179_v14 }
  0xdb   :  { %v5822_v17 = vpop.f32.mrf.mxu1 }
  0xdc   :  { %8674 = vst [vmem:[#allocation12_spill] sm:$0xff] %v6929_v35  ;;  %v490_v42 = vmul.f32 %v6920_v28, %v6929_v35  ;;  %vm196_vm14 = vcmp.eq.s32.totalorder %v188_v16, %v7074_v15  ;;  %v6825_v17 = vmov -1e+09  }
  0xdd   :  { %v153_v19 = vpop.f32.mrf.mxu1 }
  0xde   :  { %v6931_v36 = vadd.f32 %v153_v19, %v45_v25  ;;  %v7078_v19 = vsel %vm196_vm14, 0.0, %v6825_v17 }
  0xdf   :  { %v5825_v20 = vpop.f32.mrf.mxu1 }
  0xe0   :  { %8675 = vst [vmem:[#allocation13_spill] sm:$0xff] %v6931_v36  ;;  %v491_v41 = vmul.f32 %v6920_v28, %v6931_v36 }
  0xe1   :  { %v158_v23 = vpop.f32.mrf.mxu1 }
  0xe2   :  { %v6922_v30 = vadd.f32 %v158_v23, %v45_v25 }
  0xe3   :  { %v5828_v24 = vpop.f32.mrf.mxu1 }
  0xe4   :  { %8672 = vst [vmem:[#allocation10_spill] sm:$0xff] %v6922_v30  ;;  %v492_v38 = vmul.f32 %v6920_v28, %v6922_v30 }
  0xe5   :  { %v163_v26 = vpop.f32.mrf.mxu1 }
  0xe6   :  { %v6918_v27 = vadd.f32 %v163_v26, %v45_v25 }
  0xe7   :  { %v5831_v29 = vpop.f32.mrf.mxu1 }
  0xe8   :  { %8670 = vst [vmem:[#allocation8_spill] sm:$0xff] %v6918_v27  ;;  %v493_v31 = vmul.f32 %v6920_v28, %v6918_v27 }
  0xe9   :  { %v168_v32 = vpop.f32.mrf.mxu1 }
  0xea   :  { %v6926_v33 = vadd.f32 %v168_v32, %v45_v25  ;;  %512 = vrot.lane.b32.xlu1 %v493_v31, %s6823_s0 }
  0xeb   :  { %v5834_v34 = vpop.f32.mrf.mxu1 }
  0xec   :  { %8673 = vst [vmem:[#allocation11_spill] sm:$0xff] %v6926_v33  ;;  %v494_v37 = vmul.f32 %v6920_v28, %v6926_v33 }
  0xee   :  { %514 = vrot.lane.b32.xlu0 %v494_v37, %s6823_s0  ;;  %510 = vrot.lane.b32.xlu1 %v492_v38, %s6823_s0 }
  0xf2   :  { %508 = vrot.lane.b32.xlu0 %v491_v41, %s6823_s0  ;;  %506 = vrot.lane.b32.xlu1 %v490_v42, %s6823_s0 }
  0xf6   :  { %504 = vrot.lane.b32.xlu0 %v489_v45, %s6823_s0  ;;  %502 = vrot.lane.b32.xlu1 %v488_v46, %s6823_s0  ;;  %v182_v46 = vand.u32 7, %v6912_v18 }
  0xf8   :  { %vm190_vm15 = vcmp.eq.s32.totalorder %v182_v46, %v7074_v15 }
  0xfa   :  { %6599 = vrot.lane.b32.xlu1 %v6598_v47, %s6822_s23  ;;  %v174_v47 = vadd.s32 8, %v6912_v18 }
  0xfe   :  { %721 = vrot.lane.b32.xlu1 %v6868_v5, %s6824_s10 }
 0x15c   :  { %v513_v48 = vpop.permute.xlu1 %512 }
 0x160   :  { %v515_v49 = vpop.permute.xlu0 %514  ;;  %v511_v50 = vpop.permute.xlu1 %510 }
 0x161   :  { %5871 = vmatpush3.xpose.msk.msra.mxu0 %vm241_vm10, %v515_v49  ;;  %v175_v49 = vadd.s32 16, %v6912_v18 }
 0x162   :  { %5872 = vmatprep.subr.mxu0 %v8638_v0 }
 0x164   :  { %v507_v51 = vpop.permute.xlu1 %506  ;;  %v509_v53 = vpop.permute.xlu0 %508 }
 0x165   :  { %5873 = vmatpush3.xpose.msk.msra.mxu0 %vm241_vm10, %v513_v48  ;;  %v183_v48 = vand.u32 7, %v174_v47 }
 0x166   :  { %5874 = vmatprep.subr.mxu0 %v8638_v0 }
 0x167   :  { %vm191_vm1 = vcmp.eq.s32.totalorder %v183_v48, %v7074_v15 }
 0x168   :  { %v503_v52 = vpop.permute.xlu1 %502  ;;  %v505_v59 = vpop.permute.xlu0 %504 }
 0x169   :  { %5875 = vmatpush3.xpose.msk.msra.mxu0 %vm241_vm10, %v511_v50 }
 0x16a   :  { %5876 = vmatprep.subr.mxu0 %v8638_v0 }
 0x16c   :  { %v6600_v54 = vpop.permute.xlu1 %6599 }
 0x16d   :  { %v6975_v55 = vunpack.i.l.bf16 %v6600_v54  ;;  %5877 = vmatpush3.xpose.msk.msra.mxu0 %vm241_vm10, %v509_v53  ;;  %v7029_v6 = vunpack.i.h.bf16 %v6600_v54  ;;  %v184_v54 = vand.u32 7, %v175_v49 }
 0x16e   :  { %5878 = vmatprep.subr.mxu0 %v8638_v0 }
 0x16f   :  { %8677 = vst [vmem:[#allocation15_spill] sm:$0xff] %v6975_v55  ;;  %v218_v56 = vmul.f32 %v6975_v55, %v6918_v27  ;;  %v216_v57 = vmul.f32 %v6975_v55, %v6931_v36  ;;  %v217_v58 = vmul.f32 %v6975_v55, %v6922_v30  ;;  %v214_v60 = vmul.f32 %v6975_v55, %v6944_v40 }
 0x170   :  { %v215_v61 = vmul.f32 %v6975_v55, %v6929_v35  ;;  %v7002_v63 = vpop.permute.xlu1 %721  ;;  %v213_v1 = vmul.f32 %v6975_v55, %v6942_v39  ;;  %8679 = vst [vmem:[#allocation17_spill] sm:$0xff] %v7029_v6  ;;  %v1146_v9 = vmul.f32 %v7029_v6, %v6918_v27  ;;  %v1147_v11 = vmul.f32 %v7029_v6, %v6926_v33 }
 0x171   :  { %5879 = vmatpush3.xpose.msk.msra.mxu0 %vm241_vm10, %v507_v51  ;;  %237 = vrot.lane.b32.xlu1 %v218_v56, %s6823_s0  ;;  %8678 = vst [vmem:[#allocation16_spill] sm:$0xff] %v7002_v63  ;;  %v728_v3 = vmul.f32 %v7002_v63, %v6922_v30  ;;  %v729_v4 = vmul.f32 %v7002_v63, %v6918_v27  ;;  %v7136_v51 = vsel %vm190_vm15, 0.0, %v6825_v17 }
 0x172   :  { %233 = vrot.lane.b32.xlu0 %v216_v57, %s6823_s0  ;;  %5880 = vmatprep.subr.mxu0 %v8638_v0  ;;  %v727_v5 = vmul.f32 %v7002_v63, %v6931_v36  ;;  %v725_v7 = vmul.f32 %v7002_v63, %v6944_v40  ;;  %v726_v8 = vmul.f32 %v7002_v63, %v6929_v35 }
 0x173   :  { %v724_v10 = vmul.f32 %v7002_v63, %v6942_v39  ;;  %v219_v12 = vmul.f32 %v6975_v55, %v6926_v33  ;;  %v730_v13 = vmul.f32 %v7002_v63, %v6926_v33  ;;  %8681 = vst [vmem:[#allocation19_spill] sm:$0xff] %v7136_v51  ;;  %vm192_vm3 = vcmp.eq.s32.totalorder %v184_v54, %v7074_v15 }
 0x175   :  { %5881 = vmatpush3.xpose.msk.msra.mxu0 %vm241_vm10, %v505_v59  ;;  %235 = vrot.lane.b32.xlu1 %v217_v58, %s6823_s0  ;;  %v7144_v59 = vsel %vm191_vm1, 0.0, %v6825_v17 }
 0x176   :  { %229 = vrot.lane.b32.xlu0 %v214_v60, %s6823_s0  ;;  %5882 = vmatprep.subr.mxu0 %v8638_v0  ;;  %8682 = vst [vmem:[#allocation20_spill] sm:$0xff] %v7144_v59 }
 0x179   :  { %5883 = vmatpush3.xpose.msk.msra.mxu0 %vm241_vm10, %v503_v52  ;;  %231 = vrot.lane.b32.xlu1 %v215_v61, %s6823_s0  ;;  %v176_v52 = vadd.s32 24, %v6912_v18 }
 0x17a   :  { %886 = vrot.lane.b32.xlu0 %v7000_v62, %s6822_s23  ;;  %5940 = vmatprep.subr.mxu0 %v8638_v0 }
 0x17b   :  { %v185_v60 = vand.u32 7, %v176_v52 }
 0x17c   :  { %5885 = vmatmul.mubr.msk.f32.vlgmr.msra.gmra.mxu0 %vm241_vm10, %v6942_v39 }
 0x17d   :  { %227 = vrot.lane.b32.xlu1 %v213_v1, %s6823_s0  ;;  %5887 = vmatprep.mubr.msk.f32.mxu0 %vm6821_vm0, %v8638_v0  ;;  %vm193_vm4 = vcmp.eq.s32.totalorder %v185_v60, %v7074_v15  ;;  %v1142_v60 = vmul.f32 %v7029_v6, %v6944_v40 }
 0x17e   :  { %746 = vrot.lane.b32.xlu0 %v728_v3, %s6824_s10  ;;  %v177_v3 = vadd.s32 32, %v6912_v18 }
 0x180   :  { %5888 = vmatmul.mubr.msk.f32.gmra.mxu0 %vm241_vm10, %v6944_v40 }
 0x181   :  { %748 = vrot.lane.b32.xlu1 %v729_v4, %s6824_s10  ;;  %5890 = vmatprep.mubr.msk.f32.mxu0 %vm6821_vm0, %v8638_v0 }
 0x182   :  { %744 = vrot.lane.b32.xlu0 %v727_v5, %s6824_s10 }
 0x184   :  { %5891 = vmatmul.mubr.msk.f32.gmra.mxu0 %vm241_vm10, %v6929_v35 }
 0x185   :  { %740 = vrot.lane.b32.xlu1 %v725_v7, %s6824_s10  ;;  %5893 = vmatprep.mubr.msk.f32.mxu0 %vm6821_vm0, %v8638_v0 }
 0x186   :  { %742 = vrot.lane.b32.xlu0 %v726_v8, %s6824_s10  ;;  %v7152_v8 = vsel %vm192_vm3, 0.0, %v6825_v17 }
 0x188   :  { %5894 = vmatmul.mubr.msk.f32.gmra.mxu0 %vm241_vm10, %v6931_v36 }
 0x189   :  { %1165 = vrot.lane.b32.xlu1 %v1146_v9, %s6823_s0  ;;  %5896 = vmatprep.mubr.msk.f32.mxu0 %vm6821_vm0, %v8638_v0 }
 0x18a   :  { %738 = vrot.lane.b32.xlu0 %v724_v10, %s6824_s10 }
 0x18c   :  { %5897 = vmatmul.mubr.msk.f32.gmra.mxu0 %vm241_vm10, %v6922_v30 }
 0x18d   :  { %1167 = vrot.lane.b32.xlu1 %v1147_v11, %s6823_s0  ;;  %5899 = vmatprep.mubr.msk.f32.mxu0 %vm6821_vm0, %v8638_v0  ;;  %v186_v11 = vand.u32 7, %v177_v3 }
 0x18e   :  { %239 = vrot.lane.b32.xlu0 %v219_v12, %s6823_s0  ;;  %v178_v12 = vadd.s32 40, %v6912_v18 }
 0x18f   :  { %vm194_vm5 = vcmp.eq.s32.totalorder %v186_v11, %v7074_v15 }
 0x190   :  { %5900 = vmatmul.mubr.msk.f32.gmra.mxu0 %vm241_vm10, %v6918_v27 }
 0x191   :  { %5902 = vmatprep.mubr.msk.f32.mxu0 %vm6821_vm0, %v8638_v0 }
 0x192   :  { %750 = vrot.lane.b32.xlu0 %v730_v13, %s6824_s10 }
 0x194   :  { %5903 = vmatmul.mubr.msk.f32.gmra.mxu0 %vm241_vm10, %v6926_v33 }
 0x195   :  { %5954 = vmatprep.mubr.msk.f32.mxu0 %vm6821_vm0, %v8638_v0 }
 0x1e3   :  { %v238_v32 = vpop.permute.xlu1 %237 }
 0x1e4   :  { %v234_v20 = vpop.permute.xlu0 %233 }
 0x1e7   :  { %v236_v34 = vpop.permute.xlu1 %235 }
 0x1e8   :  { %v230_v22 = vpop.permute.xlu0 %229 }
 0x1eb   :  { %v232_v37 = vpop.permute.xlu1 %231 }
 0x1ec   :  { %v7080_v23 = vpop.permute.xlu0 %886 }
 0x1ed   :  { %8680 = vst [vmem:[#allocation18_spill] sm:$0xff] %v7080_v23 }
 0x1ef   :  { %v228_v38 = vpop.permute.xlu1 %227 }
 0x1f0   :  { %v747_v24 = vpop.permute.xlu0 %746 }
 0x1f3   :  { %v749_v42 = vpop.permute.xlu1 %748 }
 0x1f4   :  { %v745_v25 = vpop.permute.xlu0 %744 }
 0x1f7   :  { %v741_v45 = vpop.permute.xlu1 %740 }
 0x1f8   :  { %v743_v26 = vpop.permute.xlu0 %742 }
 0x1fc   :  { %v739_v29 = vpop.permute.xlu0 %738 }
 0x200   :  { %v240_v31 = vpop.permute.xlu0 %239 }
 0x201   :  { %5836 = vmatpush3.xpose.msk.msra.mxu1 %vm241_vm10, %v240_v31 }
 0x202   :  { %5837 = vmatprep.subr.mxu1 %v8638_v0 }
 0x204   :  { %v751_v41 = vpop.permute.xlu0 %750 }
 0x205   :  { %5838 = vmatpush3.xpose.msk.msra.mxu1 %vm241_vm10, %v238_v32  ;;  %v7167_v32 = vsel %vm194_vm5, 0.0, %v6825_v17 }
 0x206   :  { %5839 = vmatprep.subr.mxu1 %v8638_v0 }
 0x209   :  { %5840 = vmatpush3.xpose.msk.msra.mxu1 %vm241_vm10, %v236_v34 }
 0x20a   :  { %5841 = vmatprep.subr.mxu1 %v8638_v0 }
 0x20d   :  { %5842 = vmatpush3.xpose.msk.msra.mxu1 %vm241_vm10, %v234_v20  ;;  %v7159_v20 = vsel %vm193_vm4, 0.0, %v6825_v17 }
 0x20e   :  { %5843 = vmatprep.subr.mxu1 %v8638_v0 }
 0x211   :  { %5844 = vmatpush3.xpose.msk.msra.mxu1 %vm241_vm10, %v232_v37 }
 0x212   :  { %5845 = vmatprep.subr.mxu1 %v8638_v0 }
 0x215   :  { %5846 = vmatpush3.xpose.msk.msra.mxu1 %vm241_vm10, %v230_v22 }
 0x216   :  { %5847 = vmatprep.subr.mxu1 %v8638_v0 }
 0x219   :  { %5848 = vmatpush3.xpose.msk.msra.mxu1 %vm241_vm10, %v228_v38 }
 0x21a   :  { %5905 = vmatprep.subr.mxu1 %v8638_v0 }
 0x21c   :  { %5850 = vmatmul.mubr.msk.f32.vlgmr.msra.gmra.mxu1 %vm241_vm10, %v6942_v39 }
 0x21d   :  { %5906 = vmatpush3.msra.mxu1 %v751_v41  ;;  %5852 = vmatprep.mubr.msk.f32.mxu1 %vm6821_vm0, %v8638_v0 }
 0x21e   :  { %5907 = vmatprep.subr.mxu1 %v8638_v0 }
 0x21f   :  { %5908 = vmatpush3.msra.mxu1 %v749_v42 }
 0x220   :  { %5853 = vmatmul.mubr.msk.f32.gmra.mxu1 %vm241_vm10, %v6944_v40  ;;  %5909 = vmatprep.subr.mxu1 %v8638_v0 }
 0x221   :  { %5910 = vmatpush3.msra.mxu1 %v747_v24  ;;  %5855 = vmatprep.mubr.msk.f32.mxu1 %vm6821_vm0, %v8638_v0 }
 0x222   :  { %5911 = vmatprep.subr.mxu1 %v8638_v0 }
 0x223   :  { %5912 = vmatpush3.msra.mxu1 %v745_v25  ;;  %v187_v25 = vand.u32 7, %v178_v12 }
 0x224   :  { %5856 = vmatmul.mubr.msk.f32.gmra.mxu1 %vm241_vm10, %v6929_v35  ;;  %5913 = vmatprep.subr.mxu1 %v8638_v0 }
 0x225   :  { %5914 = vmatpush3.msra.mxu1 %v743_v26  ;;  %5858 = vmatprep.mubr.msk.f32.mxu1 %vm6821_vm0, %v8638_v0  ;;  %vm195_vm6 = vcmp.eq.s32.totalorder %v187_v25, %v7074_v15 }
 0x226   :  { %5915 = vmatprep.subr.mxu1 %v8638_v0 }
 0x227   :  { %5916 = vmatpush3.msra.mxu1 %v741_v45  ;;  %v7176_v45 = vsel %vm195_vm6, 0.0, %v6825_v17  ;;  %v1144_v17 = vmul.f32 %v7029_v6, %v6931_v36 }
 0x228   :  { %5859 = vmatmul.mubr.msk.f32.gmra.mxu1 %vm241_vm10, %v6931_v36  ;;  %5917 = vmatprep.subr.mxu1 %v8638_v0 }
 0x229   :  { %5918 = vmatpush3.msra.mxu1 %v739_v29  ;;  %5861 = vmatprep.mubr.msk.f32.mxu1 %vm6821_vm0, %v8638_v0 }
 0x22a   :  { %5975 = vmatprep.subr.mxu1 %v8638_v0 }
 0x22c   :  { %5862 = vmatmul.mubr.msk.f32.gmra.mxu1 %vm241_vm10, %v6922_v30 }
 0x22d   :  { %5864 = vmatprep.mubr.msk.f32.mxu1 %vm6821_vm0, %v8638_v0 }
 0x230   :  { %5865 = vmatmul.mubr.msk.f32.gmra.mxu1 %vm241_vm10, %v6918_v27 }
 0x231   :  { %5867 = vmatprep.mubr.msk.f32.mxu1 %vm6821_vm0, %v8638_v0 }
 0x234   :  { %5868 = vmatmul.mubr.msk.f32.gmra.mxu1 %vm241_vm10, %v6926_v33 }
 0x235   :  { %5919 = vmatprep.mubr.msk.f32.mxu1 %vm6821_vm0, %v8638_v0 }
 0x23c   :  { %v596_v50 = vpop.f32.mrf.mxu0 }
 0x23d   :  { %v630_v53 = vmul.f32 0.35355338, %v596_v50 }
 0x23e   :  { %v5886_v56 = vpop.f32.mrf.mxu0 }
 0x23f   :  { %v7141_v57 = vadd.f32 %v630_v53, %v7136_v51  ;;  %v1145_v53 = vmul.f32 %v7029_v6, %v6922_v30 }
 0x240   :  { %v601_v58 = vpop.f32.mrf.mxu0 }
 0x241   :  { %v631_v61 = vmul.f32 0.35355338, %v601_v58  ;;  %v644_v1 = vsel %vm391_vm2, %v7141_v57, -inf }
 0x242   :  { %v5889_v4 = vpop.f32.mrf.mxu0  ;;  %645 = vmax.xlane.f32.xlu0 %v644_v1 }
 0x243   :  { %v638_v5 = vadd.f32 %v631_v61, %v7144_v59  ;;  %v7199_v61 = vpop.permute.xlu1 %1165 }
 0x244   :  { %v606_v7 = vpop.f32.mrf.mxu0 }
 0x245   :  { %v632_v9 = vmul.f32 0.35355338, %v606_v7  ;;  %v647_v10 = vsel %vm391_vm2, %v638_v5, -inf }
 0x246   :  { %v5892_v13 = vpop.f32.mrf.mxu0  ;;  %648 = vmax.xlane.f32.xlu1 %v647_v10 }
 0x247   :  { %v639_v14 = vadd.f32 %v632_v9, %v7152_v8  ;;  %v7201_v1 = vpop.permute.xlu1 %1167 }
 0x248   :  { %v611_v16 = vpop.f32.mrf.mxu0 }
 0x249   :  { %v633_v22 = vmul.f32 0.35355338, %v611_v16  ;;  %v650_v24 = vsel %vm391_vm2, %v639_v14, -inf }
 0x24a   :  { %v5895_v26 = vpop.f32.mrf.mxu0  ;;  %651 = vmax.xlane.f32.xlu0 %v650_v24 }
 0x24b   :  { %v7164_v29 = vadd.f32 %v633_v22, %v7159_v20 }
 0x24c   :  { %v616_v31 = vpop.f32.mrf.mxu0 }
 0x24d   :  { %v634_v34 = vmul.f32 0.35355338, %v616_v31  ;;  %v653_v37 = vsel %vm391_vm2, %v7164_v29, -inf }
 0x24e   :  { %v5898_v38 = vpop.f32.mrf.mxu0  ;;  %654 = vmax.xlane.f32.xlu0 %v653_v37 }
 0x24f   :  { %v7173_v41 = vadd.f32 %v634_v34, %v7167_v32 }
 0x250   :  { %v621_v42 = vpop.f32.mrf.mxu0 }
 0x251   :  { %v635_v46 = vmul.f32 0.35355338, %v621_v42  ;;  %v656_v47 = vsel %vm391_vm2, %v7173_v41, -inf }
 0x252   :  { %v5901_v48 = vpop.f32.mrf.mxu0  ;;  %657 = vmax.xlane.f32.xlu0 %v656_v47 }
 0x253   :  { %v7181_v49 = vadd.f32 %v635_v46, %v7176_v45 }
 0x254   :  { %v626_v50 = vpop.f32.mrf.mxu0 }
 0x255   :  { %v659_v15 = vsel %vm391_vm2, %v7181_v49, -inf  ;;  %v636_v54 = vmul.f32 0.35355338, %v626_v50 }
 0x256   :  { %v5904_v52 = vpop.f32.mrf.mxu0  ;;  %660 = vmax.xlane.f32.xlu1 %v659_v15  ;;  %v1143_v15 = vmul.f32 %v7029_v6, %v6929_v35 }
 0x257   :  { %v7192_v56 = vadd.f32 %v636_v54, %v7078_v19 }
 0x259   :  { %v662_v58 = vsel %vm391_vm2, %v7192_v56, -inf }
 0x267   :  { %1163 = vrot.lane.b32.xlu1 %v1145_v53, %s6823_s0 }
 0x268   :  { %1161 = vrot.lane.b32.xlu0 %v1144_v17, %s6823_s0 }
 0x287   :  { %663 = vmax.xlane.f32.xlu0 %v662_v58 }
 0x29d   :  { %1157 = vrot.lane.b32.xlu0 %v1142_v60, %s6823_s0 }
 0x2cb   :  { %v646_v3 = vpop.xlane.xlu0 %645 }
 0x2cc   :  { %v665_v4 = vsub.f32 %v7141_v57, %v646_v3  ;;  %v895_v3 = vmul.f32 %v7080_v23, %v6926_v33 }
 0x2ce   :  { %v672_v7 = vmul.f32 1.442695, %v665_v4 }
 0x2cf   :  { %v649_v9 = vpop.xlane.xlu1 %648 }
 0x2d0   :  { %6608 = vpow2.f32 %v672_v7  ;;  %v666_v10 = vsub.f32 %v638_v5, %v649_v9 }
 0x2d2   :  { %v674_v11 = vmul.f32 1.442695, %v666_v10  ;;  %v893_v10 = vmul.f32 %v7080_v23, %v6922_v30 }
 0x2d3   :  { %v652_v12 = vpop.xlane.xlu0 %651 }
 0x2d4   :  { %6610 = vpow2.f32 %v674_v11  ;;  %v667_v13 = vsub.f32 %v639_v14, %v652_v12 }
 0x2d6   :  { %v676_v16 = vmul.f32 1.442695, %v667_v13 }
 0x2d7   :  { %v655_v54 = vpop.xlane.xlu0 %654 }
 0x2d8   :  { %6612 = vpow2.f32 %v676_v16  ;;  %v668_v60 = vsub.f32 %v7164_v29, %v655_v54  ;;  %v891_v29 = vmul.f32 %v7080_v23, %v6929_v35 }
 0x2da   :  { %v678_v7 = vmul.f32 1.442695, %v668_v60 }
 0x2db   :  { %v658_v4 = vpop.xlane.xlu0 %657 }
 0x2dc   :  { %v343_v22 = vpop.f32.mrf.mxu1  ;;  %v669_v9 = vsub.f32 %v7173_v41, %v658_v4  ;;  %6614 = vpow2.f32 %v678_v7  ;;  %v889_v41 = vmul.f32 %v7080_v23, %v6942_v39 }
 0x2dd   :  { %v7204_v24 = vpop.eup %6608 }
 0x2de   :  { %v5851_v25 = vpop.f32.mrf.mxu1  ;;  %v686_v26 = vsel %vm391_vm2, %v7204_v24, 0.0  ;;  %v680_v12 = vmul.f32 1.442695, %v669_v9 }
 0x2df   :  { %687 = vadd.xlane.f32.xlu1 %v686_v26  ;;  %v661_v11 = vpop.xlane.xlu1 %660  ;;  %v1162_v7 = vpop.permute.xlu0 %1161 }
 0x2e0   :  { %v348_v31 = vpop.f32.mrf.mxu1  ;;  %v670_v13 = vsub.f32 %v7181_v49, %v661_v11  ;;  %6616 = vpow2.f32 %v680_v12 }
 0x2e1   :  { %v7208_v57 = vpop.eup %6610  ;;  %v378_v54 = vmul.f32 0.35355338, %v348_v31 }
 0x2e2   :  { %v5854_v34 = vpop.f32.mrf.mxu1  ;;  %v689_v5 = vsel %vm391_vm2, %v7208_v57, 0.0  ;;  %v682_v16 = vmul.f32 1.442695, %v670_v13 }
 0x2e3   :  { %690 = vadd.xlane.f32.xlu0 %v689_v5  ;;  %v7266_v4 = vadd.f32 %v378_v54, %v7144_v59  ;;  %v1164_v31 = vpop.permute.xlu1 %1163 }
 0x2e4   :  { %v353_v37 = vpop.f32.mrf.mxu1  ;;  %6618 = vpow2.f32 %v682_v16 }
 0x2e5   :  { %v7212_v14 = vpop.eup %6612  ;;  %v379_v60 = vmul.f32 0.35355338, %v353_v37 }
 0x2e6   :  { %v5857_v38 = vpop.f32.mrf.mxu1  ;;  %v692_v42 = vsel %vm391_vm2, %v7212_v14, 0.0 }
 0x2e7   :  { %693 = vadd.xlane.f32.xlu0 %v692_v42  ;;  %v1141_v42 = vmul.f32 %v7029_v6, %v6942_v39  ;;  %v7271_v11 = vadd.f32 %v379_v60, %v7152_v8 }
 0x2e8   :  { %v358_v46 = vpop.f32.mrf.mxu1 }
 0x2e9   :  { %v7236_v25 = vpop.eup %6614  ;;  %v380_v9 = vmul.f32 0.35355338, %v358_v46  ;;  %v398_v12 = vsel %vm391_vm2, %v7271_v11, -inf }
 0x2ea   :  { %v5860_v47 = vpop.f32.mrf.mxu1  ;;  %v695_v26 = vsel %vm391_vm2, %v7236_v25, 0.0 }
 0x2eb   :  { %v894_v47 = vmul.f32 %v7080_v23, %v6918_v27  ;;  %v7278_v13 = vadd.f32 %v380_v9, %v7159_v20 }
 0x2ec   :  { %v363_v48 = vpop.f32.mrf.mxu1 }
 0x2ed   :  { %v7240_v34 = vpop.eup %6616  ;;  %v381_v37 = vmul.f32 0.35355338, %v363_v48 }
 0x2ee   :  { %v5863_v50 = vpop.f32.mrf.mxu1  ;;  %v698_v49 = vsel %vm391_vm2, %v7240_v34, 0.0 }
 0x2ef   :  { %v892_v50 = vmul.f32 %v7080_v23, %v6931_v36 }
 0x2f0   :  { %v368_v52 = vpop.f32.mrf.mxu1  ;;  %1159 = vrot.lane.b32.xlu1 %v1143_v15, %s6823_s0  ;;  %v890_v15 = vmul.f32 %v7080_v23, %v6944_v40 }
 0x2f1   :  { %v7244_v5 = vpop.eup %6618 }
 0x2f2   :  { %v5866_v53 = vpop.f32.mrf.mxu1  ;;  %v701_v38 = vsel %vm391_vm2, %v7244_v5, 0.0 }
 0x2f3   :  { %v377_v53 = vmul.f32 0.35355338, %v343_v22 }
 0x2f4   :  { %v7219_v17 = vpop.f32.mrf.mxu1 }
 0x2f5   :  { %v383_v48 = vmul.f32 0.35355338, %v7219_v17 }
 0x2f6   :  { %v5869_v58 = vpop.f32.mrf.mxu1 }
 0x2f7   :  { %v7261_v58 = vadd.f32 %v377_v53, %v7136_v51 }
 0x2fd   :  { %915 = vrot.lane.b32.xlu0 %v895_v3, %s6823_s0  ;;  %v392_v3 = vsel %vm391_vm2, %v7261_v58, -inf }
 0x301   :  { %911 = vrot.lane.b32.xlu0 %v893_v10, %s6823_s0  ;;  %v395_v10 = vsel %vm391_vm2, %v7266_v4, -inf }
 0x305   :  { %907 = vrot.lane.b32.xlu0 %v891_v29, %s6823_s0  ;;  %v382_v29 = vmul.f32 0.35355338, %v368_v52 }
 0x309   :  { %903 = vrot.lane.b32.xlu0 %v889_v41, %s6823_s0  ;;  %v401_v41 = vsel %vm391_vm2, %v7278_v13, -inf }
 0x310   :  { %v7273_v22 = vpop.xlane.xlu0 %663 }
 0x314   :  { %696 = vadd.xlane.f32.xlu1 %v695_v26  ;;  %v1158_v46 = vpop.permute.xlu0 %1157  ;;  %v7283_v26 = vadd.f32 %v381_v37, %v7167_v32 }
 0x318   :  { %699 = vadd.xlane.f32.xlu1 %v698_v49 }
 0x31c   :  { %702 = vadd.xlane.f32.xlu1 %v701_v38  ;;  %v404_v38 = vsel %vm391_vm2, %v7283_v26, -inf }
 0x32d   :  { %1155 = vrot.lane.b32.xlu1 %v1141_v42, %s6823_s0  ;;  %v7289_v42 = vadd.f32 %v382_v29, %v7176_v45 }
 0x331   :  { %913 = vrot.lane.b32.xlu1 %v894_v47, %s6823_s0  ;;  %v407_v47 = vsel %vm391_vm2, %v7289_v42, -inf }
 0x335   :  { %909 = vrot.lane.b32.xlu1 %v892_v50, %s6823_s0  ;;  %v7294_v50 = vadd.f32 %v383_v48, %v7078_v19 }
 0x337   :  { %v410_v17 = vsel %vm391_vm2, %v7294_v50, -inf }
 0x339   :  { %905 = vrot.lane.b32.xlu1 %v890_v15, %s6823_s0 }
 0x35d   :  { %393 = vmax.xlane.f32.xlu1 %v392_v3 }
 0x361   :  { %396 = vmax.xlane.f32.xlu1 %v395_v10 }
 0x365   :  { %399 = vmax.xlane.f32.xlu1 %v398_v12 }
 0x368   :  { %v688_v16 = vpop.xlane.xlu1 %687 }
 0x369   :  { %6620 = vrcp.f32 %v688_v16  ;;  %402 = vmax.xlane.f32.xlu1 %v401_v41 }
 0x36c   :  { %v691_v49 = vpop.xlane.xlu0 %690 }
 0x36d   :  { %6622 = vrcp.f32 %v691_v49  ;;  %405 = vmax.xlane.f32.xlu1 %v404_v38 }
 0x370   :  { %v694_v52 = vpop.xlane.xlu0 %693 }
 0x371   :  { %6624 = vrcp.f32 %v694_v52  ;;  %408 = vmax.xlane.f32.xlu1 %v407_v47 }
 0x374   :  { %v916_v15 = vpop.permute.xlu0 %915 }
 0x375   :  { %5941 = vmatpush3.xpose.msk.msra.mxu0 %vm241_vm10, %v916_v15  ;;  %411 = vmax.xlane.f32.xlu1 %v410_v17 }
 0x376   :  { %v6621_v53 = vpop.eup %6620  ;;  %5942 = vmatprep.subr.mxu0 %v8638_v0 }
 0x377   :  { %v714_v54 = vmul.f32 %v6621_v53, %v7204_v24  ;;  %v6603_v24 = vpack.i.bf16 %v6953_v43, %v6956_v44 }
 0x378   :  { %v912_v29 = vpop.permute.xlu0 %911 }
 0x379   :  { %5920 = vmatmul.mubr.msk.f32.vlgmr.msra.gmra.mxu1 %vm391_vm2, %v714_v54 }
 0x37a   :  { %v6623_v60 = vpop.eup %6622  ;;  %5976 = vmatpush3.xpose.msk.msra.mxu1 %vm241_vm10, %v7201_v1  ;;  %5922 = vmatprep.mubr.msk.f32.mxu1 %vm6821_vm0, %v8638_v0 }
 0x37b   :  { %5977 = vmatprep.subr.mxu1 %v8638_v0  ;;  %v715_v3 = vmul.f32 %v6623_v60, %v7208_v57 }
 0x37d   :  { %5923 = vmatmul.mubr.msk.f32.gmra.mxu1 %vm391_vm2, %v715_v3 }
 0x37e   :  { %v6625_v9 = vpop.eup %6624  ;;  %5978 = vmatpush3.xpose.msk.msra.mxu1 %vm241_vm10, %v7199_v61  ;;  %5925 = vmatprep.mubr.msk.f32.mxu1 %vm6821_vm0, %v8638_v0  ;;  %v1160_v61 = vpop.permute.xlu1 %1159 }
 0x37f   :  { %5979 = vmatprep.subr.mxu1 %v8638_v0  ;;  %v716_v1 = vmul.f32 %v6625_v9, %v7212_v14 }
 0x381   :  { %5926 = vmatmul.mubr.msk.f32.gmra.mxu1 %vm391_vm2, %v716_v1 }
 0x382   :  { %5980 = vmatpush3.xpose.msk.msra.mxu1 %vm241_vm10, %v1164_v31  ;;  %5928 = vmatprep.mubr.msk.f32.mxu1 %vm6821_vm0, %v8638_v0 }
 0x383   :  { %5981 = vmatprep.subr.mxu1 %v8638_v0 }
 0x386   :  { %5982 = vmatpush3.xpose.msk.msra.mxu1 %vm241_vm10, %v1162_v7  ;;  %6604 = vrot.lane.b32.xlu1 %v6603_v24, %s6824_s10 }
 0x387   :  { %5983 = vmatprep.subr.mxu1 %v8638_v0 }
 0x38a   :  { %5984 = vmatpush3.xpose.msk.msra.mxu1 %vm241_vm10, %v1160_v61 }
 0x38b   :  { %5985 = vmatprep.subr.mxu1 %v8638_v0 }
 0x38e   :  { %5986 = vmatpush3.xpose.msk.msra.mxu1 %vm241_vm10, %v1158_v46 }
 0x38f   :  { %5987 = vmatprep.subr.mxu1 %v8638_v0 }
 0x39d   :  { %v697_v43 = vpop.xlane.xlu1 %696 }
 0x39e   :  { %6626 = vrcp.f32 %v697_v43 }
 0x3a1   :  { %v700_v44 = vpop.xlane.xlu1 %699 }
 0x3a2   :  { %6628 = vrcp.f32 %v700_v44 }
 0x3a5   :  { %v703_v57 = vpop.xlane.xlu1 %702 }
 0x3a6   :  { %6630 = vrcp.f32 %v703_v57 }
 0x3a9   :  { %v1156_v14 = vpop.permute.xlu1 %1155 }
 0x3aa   :  { %5988 = vmatpush3.xpose.msk.msra.mxu1 %vm241_vm10, %v1156_v14 }
 0x3ab   :  { %v6627_v7 = vpop.eup %6626  ;;  %6575 = vmatprep.subr.mxu1 %v8638_v0 }
 0x3ac   :  { %v717_v10 = vmul.f32 %v6627_v7, %v7236_v25 }
 0x3ad   :  { %v914_v31 = vpop.permute.xlu1 %913 }
 0x3ae   :  { %5929 = vmatmul.mubr.msk.f32.gmra.mxu1 %vm391_vm2, %v717_v10  ;;  %5943 = vmatpush3.xpose.msk.msra.mxu0 %vm241_vm10, %v914_v31 }
 0x3af   :  { %v6629_v37 = vpop.eup %6628  ;;  %5931 = vmatprep.mubr.msk.f32.mxu1 %vm6821_vm0, %v8638_v0  ;;  %5944 = vmatprep.subr.mxu0 %v8638_v0 }
 0x3b0   :  { %v718_v12 = vmul.f32 %v6629_v37, %v7240_v34  ;;  %v908_v34 = vpop.permute.xlu0 %907 }
 0x3b1   :  { %v910_v16 = vpop.permute.xlu1 %909 }
 0x3b2   :  { %5932 = vmatmul.mubr.msk.f32.gmra.mxu1 %vm391_vm2, %v718_v12  ;;  %5945 = vmatpush3.xpose.msk.msra.mxu0 %vm241_vm10, %v912_v29 }
 0x3b3   :  { %v6631_v46 = vpop.eup %6630  ;;  %5934 = vmatprep.mubr.msk.f32.mxu1 %vm6821_vm0, %v8638_v0  ;;  %5946 = vmatprep.subr.mxu0 %v8638_v0 }
 0x3b4   :  { %v719_v25 = vmul.f32 %v6631_v46, %v7244_v5  ;;  %v904_v5 = vpop.permute.xlu0 %903 }
 0x3b5   :  { %v906_v41 = vpop.permute.xlu1 %905 }
 0x3b6   :  { %5935 = vmatmul.mubr.msk.f32.gmra.mxu1 %vm391_vm2, %v719_v25  ;;  %5947 = vmatpush3.xpose.msk.msra.mxu0 %vm241_vm10, %v910_v16  ;;  %v671_v16 = vsub.f32 %v7192_v56, %v7273_v22 }
 0x3b7   :  { %5948 = vmatprep.subr.mxu0 %v8638_v0  ;;  %5937 = vmatprep.mubr.msk.f32.mxu1 %vm6821_vm0, %v8638_v0 }
 0x3ba   :  { %5949 = vmatpush3.xpose.msk.msra.mxu0 %vm241_vm10, %v908_v34  ;;  %v684_v34 = vmul.f32 1.442695, %v671_v16 }
 0x3bb   :  { %5950 = vmatprep.subr.mxu0 %v8638_v0 }
 0x3be   :  { %5951 = vmatpush3.xpose.msk.msra.mxu0 %vm241_vm10, %v906_v41 }
 0x3bf   :  { %5952 = vmatprep.subr.mxu0 %v8638_v0 }
 0x3c2   :  { %5953 = vmatpush3.xpose.msk.msra.mxu0 %vm241_vm10, %v904_v5 }
 0x3c3   :  { %6010 = vmatprep.subr.mxu0 %v8638_v0 }
 0x3c5   :  { %5955 = vmatmul.mubr.msk.f32.vlgmr.msra.gmra.mxu0 %vm241_vm10, %v6942_v39 }
 0x3c6   :  { %5957 = vmatprep.mubr.msk.f32.mxu0 %vm6821_vm0, %v8638_v0 }
 0x3c9   :  { %5958 = vmatmul.mubr.msk.f32.gmra.mxu0 %vm241_vm10, %v6944_v40 }
 0x3ca   :  { %5960 = vmatprep.mubr.msk.f32.mxu0 %vm6821_vm0, %v8638_v0 }
 0x3cd   :  { %5961 = vmatmul.mubr.msk.f32.gmra.mxu0 %vm241_vm10, %v6929_v35 }
 0x3ce   :  { %5963 = vmatprep.mubr.msk.f32.mxu0 %vm6821_vm0, %v8638_v0 }
 0x3d1   :  { %5964 = vmatmul.mubr.msk.f32.gmra.mxu0 %vm241_vm10, %v6931_v36 }
 0x3d2   :  { %5966 = vmatprep.mubr.msk.f32.mxu0 %vm6821_vm0, %v8638_v0 }
 0x3d5   :  { %5967 = vmatmul.mubr.msk.f32.gmra.mxu0 %vm241_vm10, %v6922_v30 }
 0x3d6   :  { %5969 = vmatprep.mubr.msk.f32.mxu0 %vm6821_vm0, %v8638_v0 }
 0x3d9   :  { %5970 = vmatmul.mubr.msk.f32.gmra.mxu0 %vm241_vm10, %v6918_v27 }
 0x3da   :  { %5972 = vmatprep.mubr.msk.f32.mxu0 %vm6821_vm0, %v8638_v0 }
 0x3dd   :  { %5973 = vmatmul.mubr.msk.f32.gmra.mxu0 %vm241_vm10, %v6926_v33 }
 0x3de   :  { %6024 = vmatprep.mubr.msk.f32.mxu0 %vm6821_vm0, %v8638_v0 }
 0x3e6   :  { %v394_v48 = vpop.xlane.xlu1 %393 }
 0x3e7   :  { %v413_v49 = vsub.f32 %v7261_v58, %v394_v48 }
 0x3e9   :  { %v420_v38 = vmul.f32 1.442695, %v413_v49 }
 0x3ea   :  { %v7384_v52 = vpop.xlane.xlu1 %396 }
 0x3eb   :  { %6632 = vpow2.f32 %v420_v38 }
 0x3ec   :  { %6634 = vpow2.f32 %v684_v34 }
 0x3ee   :  { %v7386_v47 = vpop.xlane.xlu1 %399 }
 0x3f2   :  { %v7388_v15 = vpop.xlane.xlu1 %402 }
 0x3f6   :  { %v7390_v17 = vpop.xlane.xlu1 %405 }
 0x3f8   :  { %v7392_v53 = vpop.eup %6632 }
 0x3f9   :  { %v434_v54 = vsel %vm391_vm2, %v7392_v53, 0.0 }
 0x3fa   :  { %435 = vadd.xlane.f32.xlu1 %v434_v54  ;;  %v7396_v60 = vpop.xlane.xlu1 %408 }
 0x3fe   :  { %v7398_v3 = vpop.xlane.xlu1 %411 }
 0x402   :  { %v7400_v58 = vpop.permute.xlu1 %6604 }
 0x403   :  { %v7403_v9 = vunpack.i.l.bf16 %v7400_v58 }
 0x405   :  { %8683 = vst [vmem:[#allocation21_spill] sm:$0xff] %v7403_v9  ;;  %v1382_v1 = vmul.f32 %v7403_v9, %v6918_v27  ;;  %v1379_v24 = vmul.f32 %v7403_v9, %v6929_v35  ;;  %v1377_v61 = vmul.f32 %v7403_v9, %v6942_v39 }
 0x40b   :  { %1401 = vrot.lane.b32.xlu1 %v1382_v1, %s6824_s10 }
 0x40f   :  { %1395 = vrot.lane.b32.xlu1 %v1379_v24, %s6824_s10 }
 0x413   :  { %1391 = vrot.lane.b32.xlu1 %v1377_v61, %s6824_s10 }
 0x439   :  { %v7414_v43 = vpop.f32.mrf.mxu1 }
 0x43b   :  { %v5921_v44 = vpop.f32.mrf.mxu1 }
 0x43d   :  { %v7416_v57 = vpop.f32.mrf.mxu1 }
 0x43f   :  { %v5924_v14 = vpop.f32.mrf.mxu1 }
 0x440   :  { %v6635_v14 = vpop.eup %6634 }
 0x441   :  { %v7418_v7 = vpop.f32.mrf.mxu1 }
 0x443   :  { %v5927_v10 = vpop.f32.mrf.mxu1 }
 0x46e   :  { %v7420_v31 = vpop.f32.mrf.mxu1 }
 0x470   :  { %v5930_v37 = vpop.f32.mrf.mxu1 }
 0x472   :  { %v7422_v12 = vpop.f32.mrf.mxu1 }
 0x473   :  { %8684 = vst [vmem:[#allocation22_spill] sm:$0xff] %v7422_v12 }
 0x474   :  { %v5933_v29 = vpop.f32.mrf.mxu1 }
 0x476   :  { %v7424_v46 = vpop.f32.mrf.mxu1 }
 0x477   :  { %8685 = vst [vmem:[#allocation23_spill] sm:$0xff] %v7424_v46 }
 0x478   :  { %v5936_v25 = vpop.f32.mrf.mxu1 }
 0x479   :  { %v704_v25 = vsel %vm391_vm2, %v6635_v14, 0.0 }
 0x485   :  { %v997_v41 = vpop.f32.mrf.mxu0 }
 0x486   :  { %v1031_v5 = vmul.f32 0.35355338, %v997_v41 }
 0x487   :  { %v5956_v48 = vpop.f32.mrf.mxu0 }
 0x488   :  { %v7429_v49 = vadd.f32 %v1031_v5, %v7136_v51 }
 0x489   :  { %v1002_v38 = vpop.f32.mrf.mxu0 }
 0x48a   :  { %v1032_v54 = vmul.f32 0.35355338, %v1002_v38  ;;  %v1045_v1 = vsel %vm391_vm2, %v7429_v49, -inf }
 0x48b   :  { %1046 = vmax.xlane.f32.xlu0 %v1045_v1  ;;  %v5959_v24 = vpop.f32.mrf.mxu0 }
 0x48c   :  { %v7434_v61 = vadd.f32 %v1032_v54, %v7144_v59 }
 0x48d   :  { %v1007_v44 = vpop.f32.mrf.mxu0 }
 0x48e   :  { %v1033_v56 = vmul.f32 0.35355338, %v1007_v44  ;;  %v1048_v22 = vsel %vm391_vm2, %v7434_v61, -inf }
 0x48f   :  { %1049 = vmax.xlane.f32.xlu0 %v1048_v22  ;;  %v5962_v10 = vpop.f32.mrf.mxu0 }
 0x490   :  { %v7440_v16 = vadd.f32 %v1033_v56, %v7152_v8 }
 0x491   :  { %v1012_v37 = vpop.f32.mrf.mxu0 }
 0x492   :  { %v1034_v29 = vmul.f32 0.35355338, %v1012_v37  ;;  %v1051_v48 = vsel %vm391_vm2, %v7440_v16, -inf }
 0x493   :  { %705 = vadd.xlane.f32.xlu0 %v704_v25  ;;  %v5965_v34 = vpop.f32.mrf.mxu0 }
 0x494   :  { %v7445_v38 = vadd.f32 %v1034_v29, %v7159_v20 }
 0x495   :  { %v1017_v41 = vpop.f32.mrf.mxu0 }
 0x496   :  { %v1035_v5 = vmul.f32 0.35355338, %v1017_v41  ;;  %v1054_v44 = vsel %vm391_vm2, %v7445_v38, -inf }
 0x497   :  { %1052 = vmax.xlane.f32.xlu0 %v1051_v48  ;;  %v5968_v54 = vpop.f32.mrf.mxu0 }
 0x498   :  { %v7450_v56 = vadd.f32 %v1035_v5, %v7167_v32  ;;  %v1383_v54 = vmul.f32 %v7403_v9, %v6926_v33 }
 0x499   :  { %v1022_v1 = vpop.f32.mrf.mxu0 }
 0x49a   :  { %v1036_v24 = vmul.f32 0.35355338, %v1022_v1  ;;  %v1057_v25 = vsel %vm391_vm2, %v7450_v56, -inf  ;;  %v1381_v1 = vmul.f32 %v7403_v9, %v6922_v30 }
 0x49b   :  { %1055 = vmax.xlane.f32.xlu0 %v1054_v44  ;;  %v5971_v22 = vpop.f32.mrf.mxu0 }
 0x49c   :  { %v7455_v29 = vadd.f32 %v1036_v24, %v7176_v45  ;;  %v414_v24 = vsub.f32 %v7266_v4, %v7384_v52 }
 0x49d   :  { %v1027_v10 = vpop.f32.mrf.mxu0 }
 0x49e   :  { %v1037_v37 = vmul.f32 0.35355338, %v1027_v10  ;;  %v1060_v41 = vsel %vm391_vm2, %v7455_v29, -inf  ;;  %v422_v44 = vmul.f32 1.442695, %v414_v24  ;;  %v1380_v10 = vmul.f32 %v7403_v9, %v6931_v36 }
 0x49f   :  { %1058 = vmax.xlane.f32.xlu0 %v1057_v25  ;;  %v5974_v34 = vpop.f32.mrf.mxu0 }
 0x4a0   :  { %v7460_v48 = vadd.f32 %v1037_v37, %v7078_v19  ;;  %6636 = vpow2.f32 %v422_v44  ;;  %v415_v37 = vsub.f32 %v7271_v11, %v7386_v47 }
 0x4a2   :  { %v1063_v5 = vsel %vm391_vm2, %v7460_v48, -inf  ;;  %v424_v25 = vmul.f32 1.442695, %v415_v37  ;;  %v7507_v37 = vpop.xlane.xlu1 %435 }
 0x4a3   :  { %1061 = vmax.xlane.f32.xlu0 %v1060_v41 }
 0x4a4   :  { %6638 = vpow2.f32 %v424_v25  ;;  %v416_v25 = vsub.f32 %v7278_v13, %v7388_v15 }
 0x4a7   :  { %1064 = vmax.xlane.f32.xlu0 %v1063_v5 }
 0x4ad   :  { %v7474_v22 = vpop.eup %6636 }
 0x4b1   :  { %v7483_v4 = vpop.eup %6638 }
 0x4b2   :  { %v440_v41 = vsel %vm391_vm2, %v7483_v4, 0.0 }
 0x4bd   :  { %1122 = vrot.lane.b32.xlu0 %v7000_v62, %s6824_s10  ;;  %v437_v62 = vsel %vm391_vm2, %v7474_v22, 0.0 }
 0x4c1   :  { %1403 = vrot.lane.b32.xlu0 %v1383_v54, %s6824_s10 }
 0x4c5   :  { %1399 = vrot.lane.b32.xlu0 %v1381_v1, %s6824_s10 }
 0x4e4   :  { %438 = vadd.xlane.f32.xlu0 %v437_v62  ;;  %v1378_v62 = vmul.f32 %v7403_v9, %v6944_v40 }
 0x4fa   :  { %1397 = vrot.lane.b32.xlu0 %v1380_v10, %s6824_s10 }
 0x514   :  { %v1047_v34 = vpop.xlane.xlu0 %1046 }
 0x518   :  { %v7485_v52 = vpop.xlane.xlu0 %1049 }
 0x519   :  { %441 = vadd.xlane.f32.xlu0 %v440_v41 }
 0x51c   :  { %v706_v5 = vpop.xlane.xlu0 %705 }
 0x51d   :  { %6640 = vrcp.f32 %v706_v5 }
 0x520   :  { %v1053_v54 = vpop.xlane.xlu0 %1052 }
 0x524   :  { %v7489_v1 = vpop.xlane.xlu0 %1055 }
 0x528   :  { %v7491_v24 = vpop.xlane.xlu0 %1058 }
 0x52a   :  { %v6641_v44 = vpop.eup %6640 }
 0x52b   :  { %v720_v47 = vmul.f32 %v6641_v44, %v6635_v14  ;;  %v426_v44 = vmul.f32 1.442695, %v416_v25 }
 0x52c   :  { %v7493_v11 = vpop.xlane.xlu0 %1061 }
 0x52d   :  { %5938 = vmatmul.mubr.msk.f32.gmra.mxu1 %vm391_vm2, %v720_v47  ;;  %v1402_v47 = vpop.permute.xlu1 %1401  ;;  %6642 = vpow2.f32 %v426_v44 }
 0x52e   :  { %5989 = vmatprep.mubr.msk.f32.mxu1 %vm6821_vm0, %v8638_v0 }
 0x52f   :  { %1393 = vrot.lane.b32.xlu0 %v1378_v62, %s6824_s10 }
 0x530   :  { %v7501_v10 = vpop.xlane.xlu0 %1064 }
 0x531   :  { %5990 = vmatmul.mubr.msk.f32.vlgmr.msra.gmra.mxu1 %vm241_vm10, %v6942_v39 }
 0x532   :  { %5992 = vmatprep.mubr.msk.f32.mxu1 %vm6821_vm0, %v8638_v0 }
 0x534   :  { %v7509_v14 = vpop.permute.xlu0 %1122 }
 0x535   :  { %v1131_v41 = vmul.f32 %v7509_v14, %v6926_v33  ;;  %5993 = vmatmul.mubr.msk.f32.gmra.mxu1 %vm241_vm10, %v6944_v40  ;;  %v1130_v13 = vmul.f32 %v7509_v14, %v6918_v27  ;;  %v1129_v62 = vmul.f32 %v7509_v14, %v6922_v30 }
 0x536   :  { %5995 = vmatprep.mubr.msk.f32.mxu1 %vm6821_vm0, %v8638_v0 }
 0x537   :  { %1701 = vrot.lane.b32.xlu1 %v1131_v41, %s6824_s10  ;;  %v1066_v41 = vsub.f32 %v7429_v49, %v1047_v34  ;;  %v1069_v49 = vsub.f32 %v7445_v38, %v7489_v1 }
 0x538   :  { %v1404_v5 = vpop.permute.xlu0 %1403 }
 0x539   :  { %6011 = vmatpush3.msra.mxu0 %v1404_v5  ;;  %6582 = vmatpush3.msra.mxu1 %v1404_v5  ;;  %v1073_v44 = vmul.f32 1.442695, %v1066_v41  ;;  %v1079_v34 = vmul.f32 1.442695, %v1069_v49 }
 0x53a   :  { %5996 = vmatmul.mubr.msk.f32.gmra.mxu1 %vm241_vm10, %v6929_v35  ;;  %6012 = vmatprep.subr.mxu0 %v8638_v0  ;;  %v7548_v25 = vpop.eup %6642 }
 0x53b   :  { %6576 = vmatprep.subr.mxu1 %v8638_v0  ;;  %6013 = vmatpush3.msra.mxu0 %v1402_v47  ;;  %v443_v5 = vsel %vm391_vm2, %v7548_v25, 0.0  ;;  %6644 = vpow2.f32 %v1073_v44 }
 0x53c   :  { %6583 = vmatpush3.msra.mxu1 %v1402_v47  ;;  %1699 = vrot.lane.b32.xlu1 %v1130_v13, %s6824_s10  ;;  %v1400_v15 = vpop.permute.xlu0 %1399  ;;  %v1067_v47 = vsub.f32 %v7434_v61, %v7485_v52  ;;  %v1071_v61 = vsub.f32 %v7455_v29, %v7493_v11 }
 0x53d   :  { %5998 = vmatprep.mubr.msk.f32.mxu1 %vm6821_vm0, %v8638_v0  ;;  %6014 = vmatprep.subr.mxu0 %v8638_v0 }
 0x53e   :  { %6577 = vmatprep.subr.mxu1 %v8638_v0  ;;  %5999 = vmatmul.mubr.msk.f32.gmra.mxu1 %vm241_vm10, %v6931_v36  ;;  %v1075_v13 = vmul.f32 1.442695, %v1067_v47  ;;  %v1083_v38 = vmul.f32 1.442695, %v1071_v61 }
 0x53f   :  { %6015 = vmatpush3.msra.mxu0 %v1400_v15  ;;  %6584 = vmatpush3.msra.mxu1 %v1400_v15  ;;  %v1068_v15 = vsub.f32 %v7440_v16, %v1053_v54 }
 0x540   :  { %1697 = vrot.lane.b32.xlu1 %v1129_v62, %s6824_s10  ;;  %6001 = vmatprep.mubr.msk.f32.mxu1 %vm6821_vm0, %v8638_v0  ;;  %6646 = vpow2.f32 %v1075_v13 }
 0x541   :  { %6016 = vmatprep.subr.mxu0 %v8638_v0  ;;  %6578 = vmatprep.subr.mxu1 %v8638_v0  ;;  %v1077_v62 = vmul.f32 1.442695, %v1068_v15 }
 0x542   :  { %6002 = vmatmul.mubr.msk.f32.gmra.mxu1 %vm241_vm10, %v6922_v30 }
 0x543   :  { %6004 = vmatprep.mubr.msk.f32.mxu1 %vm6821_vm0, %v8638_v0  ;;  %6648 = vpow2.f32 %v1077_v62 }
 0x544   :  { %6650 = vpow2.f32 %v1079_v34 }
 0x546   :  { %6005 = vmatmul.mubr.msk.f32.gmra.mxu1 %vm241_vm10, %v6918_v27 }
 0x547   :  { %6007 = vmatprep.mubr.msk.f32.mxu1 %vm6821_vm0, %v8638_v0 }
 0x548   :  { %v7569_v52 = vpop.eup %6644 }
 0x549   :  { %v1087_v54 = vsel %vm391_vm2, %v7569_v52, 0.0 }
 0x54a   :  { %6008 = vmatmul.mubr.msk.f32.gmra.mxu1 %vm241_vm10, %v6926_v33 }
 0x54b   :  { %6036 = vmatprep.mubr.msk.f32.mxu1 %vm6821_vm0, %v8638_v0  ;;  %v1070_v0 = vsub.f32 %v7450_v56, %v7491_v24  ;;  %v417_v56 = vsub.f32 %v7283_v26, %v7390_v17  ;;  %v1396_v26 = vpop.permute.xlu1 %1395  ;;  %v8686_v17 = vmov 0.0  }
 0x54d   :  { %v1081_v41 = vmul.f32 1.442695, %v1070_v0  ;;  %v7575_v1 = vpop.eup %6646  ;;  %v428_v44 = vmul.f32 1.442695, %v417_v56 }
 0x54e   :  { %444 = vadd.xlane.f32.xlu0 %v443_v5  ;;  %v7565_v5 = vunpack.i.h.bf16 %v7400_v58  ;;  %v1090_v0 = vsel %vm391_vm2, %v7575_v1, 0.0 }
 0x54f   :  { %6652 = vpow2.f32 %v1081_v41 }
 0x550   :  { %v478_v16 = vmul.f32 %v7565_v5, %v6926_v33  ;;  %6654 = vpow2.f32 %v1083_v38  ;;  %v7580_v58 = vpop.eup %6648  ;;  %v476_v38 = vmul.f32 %v7565_v5, %v6922_v30 }
 0x551   :  { %v1093_v29 = vsel %vm391_vm2, %v7580_v58, 0.0  ;;  %v7586_v24 = vpop.eup %6650  ;;  %6656 = vpow2.f32 %v428_v44  ;;  %v1392_v44 = vpop.permute.xlu1 %1391 }
 0x552   :  { %v1096_v47 = vsel %vm391_vm2, %v7586_v24, 0.0 }
 0x55c   :  { %v7592_v13 = vpop.eup %6652 }
 0x55d   :  { %v1099_v62 = vsel %vm391_vm2, %v7592_v13, 0.0  ;;  %v7598_v49 = vpop.eup %6654 }
 0x55e   :  { %v1102_v34 = vsel %vm391_vm2, %v7598_v49, 0.0  ;;  %v7604_v41 = vpop.eup %6656 }
 0x55f   :  { %v446_v61 = vsel %vm391_vm2, %v7604_v41, 0.0 }
 0x564   :  { %1088 = vadd.xlane.f32.xlu1 %v1087_v54  ;;  %1552 = vrot.lane.b32.xlu0 %v478_v16, %s6824_s10  ;;  %v477_v16 = vmul.f32 %v7565_v5, %v6918_v27 }
 0x568   :  { %1091 = vadd.xlane.f32.xlu1 %v1090_v0  ;;  %v418_v0 = vsub.f32 %v7289_v42, %v7396_v60 }
 0x56c   :  { %1094 = vadd.xlane.f32.xlu1 %v1093_v29  ;;  %v430_v29 = vmul.f32 1.442695, %v418_v0 }
 0x56d   :  { %v7588_v11 = vpop.xlane.xlu0 %438 }
 0x56e   :  { %6658 = vpow2.f32 %v430_v29 }
 0x570   :  { %1097 = vadd.xlane.f32.xlu1 %v1096_v47 }
 0x571   :  { %v1398_v15 = vpop.permute.xlu0 %1397 }
 0x572   :  { %6017 = vmatpush3.msra.mxu0 %v1398_v15  ;;  %6585 = vmatpush3.msra.mxu1 %v1398_v15 }
 0x573   :  { %6018 = vmatprep.subr.mxu0 %v8686_v17  ;;  %6579 = vmatprep.subr.mxu1 %v8686_v17 }
 0x574   :  { %1100 = vadd.xlane.f32.xlu1 %v1099_v62  ;;  %6019 = vmatpush3.msra.mxu0 %v1396_v26 }
 0x575   :  { %6586 = vmatpush3.msra.mxu1 %v1396_v26  ;;  %6020 = vmatprep.subr.mxu0 %v8686_v17 }
 0x576   :  { %6580 = vmatprep.subr.mxu1 %v8686_v17 }
 0x578   :  { %1103 = vadd.xlane.f32.xlu1 %v1102_v34 }
 0x57b   :  { %v7622_v47 = vpop.eup %6658 }
 0x57c   :  { %v449_v42 = vsel %vm391_vm2, %v7622_v47, 0.0 }
 0x583   :  { %447 = vadd.xlane.f32.xlu0 %v446_v61 }
 0x599   :  { %1550 = vrot.lane.b32.xlu0 %v477_v16, %s6824_s10 }
 0x59d   :  { %1548 = vrot.lane.b32.xlu0 %v476_v38, %s6824_s10 }
 0x5a2   :  { %v7614_v54 = vpop.xlane.xlu0 %441 }
 0x5a6   :  { %v1394_v56 = vpop.permute.xlu0 %1393 }
 0x5a7   :  { %6021 = vmatpush3.msra.mxu0 %v1394_v56  ;;  %6587 = vmatpush3.msra.mxu1 %v1394_v56 }
 0x5a8   :  { %6022 = vmatprep.subr.mxu0 %v8686_v17  ;;  %6581 = vmatprep.subr.mxu1 %v8686_v17 }
 0x5a9   :  { %6023 = vmatpush3.msra.mxu0 %v1392_v44  ;;  %6588 = vmatpush3.msra.mxu1 %v1392_v44 }
 0x5aa   :  { %6080 = vmatprep.subr.mxu0 %v8686_v17  ;;  %6045 = vmatprep.subr.mxu1 %v8686_v17 }
 0x5bc   :  { %450 = vadd.xlane.f32.xlu0 %v449_v42 }
 0x5ed   :  { %v7626_v60 = vpop.f32.mrf.mxu1 }
 0x5ee   :  { %8687 = vst [vmem:[#allocation24_spill] sm:$0xff] %v7626_v60 }
 0x5ef   :  { %v5939_v15 = vpop.f32.mrf.mxu1 }
 0x5f1   :  { %v1249_v26 = vpop.f32.mrf.mxu1 }
 0x5f2   :  { %v1283_v62 = vmul.f32 0.35355338, %v1249_v26 }
 0x5f3   :  { %v5991_v34 = vpop.f32.mrf.mxu1 }
 0x5f4   :  { %v7629_v61 = vadd.f32 %v1283_v62, %v7136_v51 }
 0x5f5   :  { %v1254_v16 = vpop.f32.mrf.mxu1 }
 0x5f6   :  { %v1284_v38 = vmul.f32 0.35355338, %v1254_v16  ;;  %v1297_v0 = vsel %vm391_vm2, %v7629_v61, -inf }
 0x5f7   :  { %v5994_v56 = vpop.f32.mrf.mxu1  ;;  %1298 = vmax.xlane.f32.xlu1 %v1297_v0 }
 0x5f8   :  { %v7634_v29 = vadd.f32 %v1284_v38, %v7144_v59 }
 0x5fa   :  { %v1259_v44 = vpop.f32.mrf.mxu1  ;;  %v1300_v15 = vsel %vm391_vm2, %v7634_v29, -inf }
 0x5fb   :  { %v1285_v42 = vmul.f32 0.35355338, %v1259_v44  ;;  %1301 = vmax.xlane.f32.xlu0 %v1300_v15 }
 0x5fc   :  { %v5997_v26 = vpop.f32.mrf.mxu1 }
 0x5fd   :  { %v7639_v62 = vadd.f32 %v1285_v42, %v7152_v8 }
 0x5fe   :  { %v1264_v34 = vpop.f32.mrf.mxu1 }
 0x5ff   :  { %v1286_v16 = vmul.f32 0.35355338, %v1264_v34  ;;  %v1303_v2 = vsel %vm391_vm2, %v7639_v62, -inf }
 0x600   :  { %v6000_v56 = vpop.f32.mrf.mxu1  ;;  %1304 = vmax.xlane.f32.xlu1 %v1303_v2 }
 0x601   :  { %v1293_v38 = vadd.f32 %v1286_v16, %v7159_v20 }
 0x602   :  { %v1269_v0 = vpop.f32.mrf.mxu1 }
 0x603   :  { %v1287_v9 = vmul.f32 0.35355338, %v1269_v0  ;;  %v1306_v44 = vsel %vm391_vm2, %v1293_v38, -inf }
 0x604   :  { %v6003_v23 = vpop.f32.mrf.mxu1  ;;  %1307 = vmax.xlane.f32.xlu1 %v1306_v44  ;;  %v474_v44 = vmul.f32 %v7565_v5, %v6929_v35 }
 0x605   :  { %v1294_v15 = vadd.f32 %v1287_v9, %v7167_v32  ;;  %v1128_v32 = vmul.f32 %v7509_v14, %v6931_v36  ;;  %v1126_v9 = vmul.f32 %v7509_v14, %v6944_v40 }
 0x606   :  { %v1274_v26 = vpop.f32.mrf.mxu1 }
 0x607   :  { %v1288_v8 = vmul.f32 0.35355338, %v1274_v26  ;;  %v1309_v42 = vsel %vm391_vm2, %v1294_v15, -inf  ;;  %v473_v26 = vmul.f32 %v7565_v5, %v6944_v40 }
 0x608   :  { %v6006_v34 = vpop.f32.mrf.mxu1  ;;  %1310 = vmax.xlane.f32.xlu0 %v1309_v42 }
 0x609   :  { %v1295_v6 = vadd.f32 %v1288_v8, %v7176_v45  ;;  %v1127_v45 = vmul.f32 %v7509_v14, %v6929_v35  ;;  %v7672_v8 = vpop.permute.xlu1 %1701 }
 0x60a   :  { %v1279_v56 = vpop.f32.mrf.mxu1 }
 0x60b   :  { %v1289_v2 = vmul.f32 0.35355338, %v1279_v56  ;;  %v1312_v20 = vsel %vm391_vm2, %v1295_v6, -inf }
 0x60c   :  { %v6009_v16 = vpop.f32.mrf.mxu1  ;;  %1313 = vmax.xlane.f32.xlu0 %v1312_v20  ;;  %v7682_v20 = vpop.xlane.xlu0 %444 }
 0x60d   :  { %v7650_v0 = vadd.f32 %v1289_v2, %v7078_v19  ;;  %v475_v19 = vmul.f32 %v7565_v5, %v6931_v36  ;;  %v7674_v42 = vpop.permute.xlu1 %1699 }
 0x60f   :  { %v1315_v23 = vsel %vm391_vm2, %v7650_v0, -inf }
 0x610   :  { %1316 = vmax.xlane.f32.xlu0 %v1315_v23  ;;  %v7686_v23 = vpop.permute.xlu0 %1552 }
 0x611   :  { %v7676_v34 = vpop.permute.xlu1 %1697 }
 0x615   :  { %1695 = vrot.lane.b32.xlu1 %v1128_v32, %s6824_s10  ;;  %v7678_v56 = vpop.xlane.xlu1 %1088 }
 0x619   :  { %1693 = vrot.lane.b32.xlu1 %v1127_v45, %s6824_s10  ;;  %v7680_v2 = vpop.xlane.xlu1 %1091  ;;  %v7690_v45 = vpop.xlane.xlu0 %447 }
 0x61d   :  { %1691 = vrot.lane.b32.xlu1 %v1126_v9, %s6824_s10  ;;  %v7684_v16 = vpop.xlane.xlu1 %1094 }
 0x621   :  { %v7688_v32 = vpop.xlane.xlu1 %1097 }
 0x625   :  { %v7692_v9 = vpop.xlane.xlu1 %1100 }
 0x626   :  { %1546 = vrot.lane.b32.xlu0 %v475_v19, %s6824_s10  ;;  %v7694_v19 = vpop.permute.xlu0 %1550 }
 0x62a   :  { %1544 = vrot.lane.b32.xlu0 %v474_v44, %s6824_s10  ;;  %v7696_v44 = vpop.xlane.xlu1 %1103 }
 0x62e   :  { %1542 = vrot.lane.b32.xlu0 %v473_v26, %s6824_s10  ;;  %v7698_v26 = vpop.permute.xlu0 %1548 }
 0x645   :  { %v7700_v63 = vpop.xlane.xlu0 %450 }
 0x680   :  { %v1299_v55 = vpop.xlane.xlu1 %1298 }
 0x681   :  { %v1318_v51 = vsub.f32 %v7629_v61, %v1299_v55 }
 0x683   :  { %v1325_v59 = vmul.f32 1.442695, %v1318_v51 }
 0x684   :  { %v1302_v28 = vpop.xlane.xlu0 %1301 }
 0x685   :  { %6660 = vpow2.f32 %v1325_v59  ;;  %v1319_v21 = vsub.f32 %v7634_v29, %v1302_v28 }
 0x687   :  { %v1327_v33 = vmul.f32 1.442695, %v1319_v21 }
 0x689   :  { %v1305_v27 = vpop.xlane.xlu1 %1304  ;;  %6662 = vpow2.f32 %v1327_v33 }
 0x68a   :  { %v1320_v30 = vsub.f32 %v7639_v62, %v1305_v27 }
 0x68c   :  { %v1329_v36 = vmul.f32 1.442695, %v1320_v30 }
 0x68d   :  { %v1308_v35 = vpop.xlane.xlu1 %1307 }
 0x68e   :  { %6664 = vpow2.f32 %v1329_v36  ;;  %v1321_v40 = vsub.f32 %v1293_v38, %v1308_v35 }
 0x690   :  { %v1331_v18 = vmul.f32 1.442695, %v1321_v40 }
 0x691   :  { %v1311_v60 = vpop.xlane.xlu0 %1310 }
 0x692   :  { %6666 = vpow2.f32 %v1331_v18  ;;  %v1322_v46 = vsub.f32 %v1294_v15, %v1311_v60  ;;  %v7705_v12 = vpop.eup %6660 }
 0x693   :  { %v1339_v51 = vsel %vm391_vm2, %v7705_v12, 0.0 }
 0x694   :  { %v1333_v55 = vmul.f32 1.442695, %v1322_v46  ;;  %1340 = vadd.xlane.f32.xlu1 %v1339_v51  ;;  %v419_v51 = vsub.f32 %v7294_v50, %v7398_v3  ;;  %v1696_v50 = vpop.permute.xlu1 %1695 }
 0x695   :  { %v1314_v28 = vpop.xlane.xlu0 %1313 }
 0x696   :  { %6668 = vpow2.f32 %v1333_v55  ;;  %v1323_v21 = vsub.f32 %v1295_v6, %v1314_v28  ;;  %v7709_v33 = vpop.eup %6662  ;;  %v1125_v55 = vmul.f32 %v7509_v14, %v6942_v39  ;;  %v432_v28 = vmul.f32 1.442695, %v419_v51 }
 0x697   :  { %v1342_v30 = vsel %vm391_vm2, %v7709_v33, 0.0 }
 0x698   :  { %v1335_v27 = vmul.f32 1.442695, %v1323_v21  ;;  %1343 = vadd.xlane.f32.xlu1 %v1342_v30  ;;  %v1072_v21 = vsub.f32 %v7460_v48, %v7501_v10  ;;  %v1694_v3 = vpop.permute.xlu1 %1693 }
 0x699   :  { %v1317_v35 = vpop.xlane.xlu0 %1316 }
 0x69a   :  { %6670 = vpow2.f32 %v1335_v27  ;;  %v1324_v18 = vsub.f32 %v7650_v0, %v1317_v35  ;;  %v472_v0 = vmul.f32 %v7565_v5, %v6942_v39  ;;  %v1085_v27 = vmul.f32 1.442695, %v1072_v21 }
 0x69b   :  { %v7714_v36 = vpop.eup %6664 }
 0x69c   :  { %v1337_v40 = vmul.f32 1.442695, %v1324_v18  ;;  %v1345_v59 = vsel %vm391_vm2, %v7714_v36, 0.0 }
 0x69d   :  { %1346 = vadd.xlane.f32.xlu0 %v1345_v59  ;;  %v7752_v59 = vpop.permute.xlu0 %1546 }
 0x69e   :  { %6672 = vpow2.f32 %v1337_v40 }
 0x69f   :  { %v7718_v6 = vpop.eup %6666  ;;  %6674 = vpow2.f32 %v432_v28 }
 0x6a0   :  { %v1348_v46 = vsel %vm391_vm2, %v7718_v6, 0.0  ;;  %6676 = vpow2.f32 %v1085_v27 }
 0x6a1   :  { %1349 = vadd.xlane.f32.xlu0 %v1348_v46  ;;  %v1692_v46 = vpop.permute.xlu1 %1691  ;;  %v7754_v48 = vpop.permute.xlu0 %1544 }
 0x6a3   :  { %v7722_v60 = vpop.eup %6668 }
 0x6a4   :  { %v1351_v61 = vsel %vm391_vm2, %v7722_v60, 0.0 }
 0x6a5   :  { %1352 = vadd.xlane.f32.xlu0 %v1351_v61  ;;  %v7756_v61 = vpop.permute.xlu0 %1542 }
 0x6a7   :  { %v7726_v29 = vpop.eup %6670 }
 0x6a8   :  { %v1354_v62 = vsel %vm391_vm2, %v7726_v29, 0.0 }
 0x6a9   :  { %1355 = vadd.xlane.f32.xlu1 %v1354_v62 }
 0x6ab   :  { %v7730_v38 = vpop.eup %6672 }
 0x6ac   :  { %v1357_v15 = vsel %vm391_vm2, %v7730_v38, 0.0  ;;  %v7744_v30 = vpop.eup %6674 }
 0x6ad   :  { %1358 = vadd.xlane.f32.xlu1 %v1357_v15  ;;  %v452_v35 = vsel %vm391_vm2, %v7744_v30, 0.0  ;;  %v7748_v18 = vpop.eup %6676 }
 0x6ae   :  { %v1105_v40 = vsel %vm391_vm2, %v7748_v18, 0.0 }
 0x6bb   :  { %1540 = vrot.lane.b32.xlu0 %v472_v0, %s6824_s10 }
 0x6be   :  { %1689 = vrot.lane.b32.xlu1 %v1125_v55, %s6824_s10 }
 0x6da   :  { %453 = vadd.xlane.f32.xlu0 %v452_v35 }
 0x6e2   :  { %1106 = vadd.xlane.f32.xlu1 %v1105_v40 }
 0x71d   :  { %v1341_v10 = vpop.xlane.xlu1 %1340 }
 0x71e   :  { %6678 = vrcp.f32 %v1341_v10  ;;  %v1841_v10 = vld [vmem:[#allocation2 + $0x20] sm:$0xff] }
 0x721   :  { %v1344_v62 = vpop.xlane.xlu1 %1343 }
 0x722   :  { %6680 = vrcp.f32 %v1344_v62  ;;  %v1838_v62 = vld [vmem:[#allocation2 + $0x8] sm:$0xff] }
 0x726   :  { %v1347_v15 = vpop.xlane.xlu0 %1346 }
 0x727   :  { %6682 = vrcp.f32 %v1347_v15 }
 0x72a   :  { %v1350_v0 = vpop.xlane.xlu0 %1349 }
 0x72b   :  { %6684 = vrcp.f32 %v1350_v0  ;;  %v6679_v55 = vpop.eup %6678 }
 0x72c   :  { %6686 = vrcp.f32 %v7678_v56  ;;  %v1367_v51 = vmul.f32 %v6679_v55, %v7705_v12 }
 0x72e   :  { %v1353_v28 = vpop.xlane.xlu0 %1352  ;;  %6025 = vmatmul.mubr.msk.f32.vlgmr.msra.gmra.mxu0 %vm391_vm2, %v1367_v51 }
 0x72f   :  { %6688 = vrcp.f32 %v1353_v28  ;;  %v6681_v21 = vpop.eup %6680  ;;  %6081 = vmatpush3.msra.mxu0 %v7672_v8  ;;  %6027 = vmatprep.mubr.msk.f32.mxu0 %vm6821_vm0, %v8686_v17 }
 0x730   :  { %6082 = vmatprep.subr.mxu0 %v8686_v17  ;;  %v1368_v27 = vmul.f32 %v6681_v21, %v7709_v33  ;;  %6690 = vrcp.f32 %v7680_v2 }
 0x731   :  { %6083 = vmatpush3.msra.mxu0 %v7674_v42 }
 0x732   :  { %v1356_v56 = vpop.xlane.xlu1 %1355  ;;  %6084 = vmatprep.subr.mxu0 %v8686_v17  ;;  %6028 = vmatmul.mubr.msk.f32.gmra.mxu0 %vm391_vm2, %v1368_v27 }
 0x733   :  { %6692 = vrcp.f32 %v1356_v56  ;;  %6085 = vmatpush3.msra.mxu0 %v7676_v34  ;;  %6030 = vmatprep.mubr.msk.f32.mxu0 %vm6821_vm0, %v8686_v17 }
 0x734   :  { %v6683_v12 = vpop.eup %6682  ;;  %6086 = vmatprep.subr.mxu0 %v8686_v17  ;;  %6694 = vrcp.f32 %v7684_v16 }
 0x735   :  { %v1369_v8 = vmul.f32 %v6683_v12, %v7714_v36  ;;  %6087 = vmatpush3.msra.mxu0 %v1696_v50 }
 0x736   :  { %v1359_v42 = vpop.xlane.xlu1 %1358  ;;  %6088 = vmatprep.subr.mxu0 %v8686_v17 }
 0x737   :  { %6696 = vrcp.f32 %v1359_v42  ;;  %6031 = vmatmul.mubr.msk.f32.gmra.mxu0 %vm391_vm2, %v1369_v8 }
 0x738   :  { %v6685_v2 = vpop.eup %6684  ;;  %6089 = vmatpush3.msra.mxu0 %v1694_v3  ;;  %6033 = vmatprep.mubr.msk.f32.mxu0 %vm6821_vm0, %v8686_v17  ;;  %6698 = vrcp.f32 %v7688_v32 }
 0x739   :  { %6090 = vmatprep.subr.mxu0 %v8686_v17  ;;  %v1370_v34 = vmul.f32 %v6685_v2, %v7718_v6  ;;  %v6687_v33 = vpop.eup %6686  ;;  %6700 = vrcp.f32 %v7507_v37 }
 0x73a   :  { %6091 = vmatpush3.msra.mxu0 %v1692_v46  ;;  %v1690_v16 = vpop.permute.xlu1 %1689  ;;  %v1115_v35 = vmul.f32 %v6687_v33, %v7569_v52  ;;  %6702 = vrcp.f32 %v7692_v9 }
 0x73b   :  { %6092 = vmatprep.subr.mxu0 %v8686_v17  ;;  %6034 = vmatmul.mubr.msk.f32.gmra.mxu0 %vm391_vm2, %v1370_v34  ;;  %6704 = vrcp.f32 %v7588_v11 }
 0x73c   :  { %v6689_v36 = vpop.eup %6688  ;;  %6093 = vmatpush3.msra.mxu0 %v1690_v16  ;;  %6094 = vmatprep.mubr.msk.f32.mxu0 %vm6821_vm0, %v8686_v17  ;;  %6706 = vrcp.f32 %v7696_v44 }
 0x73d   :  { %v1371_v6 = vmul.f32 %v6689_v36, %v7722_v60  ;;  %6144 = vmatprep.subr.mxu0 %v8686_v17  ;;  %v6691_v32 = vpop.eup %6690  ;;  %6708 = vrcp.f32 %v7614_v54  ;;  %v1541_v60 = vpop.permute.xlu0 %1540 }
 0x73e   :  { %v1116_v11 = vmul.f32 %v6691_v32, %v7575_v1  ;;  %6710 = vrcp.f32 %v7682_v20 }
 0x73f   :  { %6037 = vmatmul.mubr.msk.f32.vlgmr.msra.gmra.mxu1 %vm391_vm2, %v1371_v6  ;;  %6095 = vmatmul.mubr.msk.f32.vlgmr.msra.gmra.mxu0 %vm391_vm2, %v1115_v35  ;;  %6712 = vrcp.f32 %v7690_v45 }
 0x740   :  { %v6693_v37 = vpop.eup %6692  ;;  %6046 = vmatpush3.msra.mxu1 %v7686_v23  ;;  %6039 = vmatprep.mubr.msk.f32.mxu1 %vm6821_vm0, %v8686_v17  ;;  %6714 = vrcp.f32 %v7700_v63 }
 0x741   :  { %6047 = vmatprep.subr.mxu1 %v8686_v17  ;;  %6097 = vmatprep.mubr.msk.f32.mxu0 %vm6821_vm0, %v8686_v17  ;;  %v1372_v52 = vmul.f32 %v6693_v37, %v7726_v29  ;;  %v6695_v9 = vpop.eup %6694 }
 0x742   :  { %6048 = vmatpush3.msra.mxu1 %v7694_v19  ;;  %v1117_v1 = vmul.f32 %v6695_v9, %v7580_v58 }
 0x743   :  { %6049 = vmatprep.subr.mxu1 %v8686_v17  ;;  %6040 = vmatmul.mubr.msk.f32.gmra.mxu1 %vm391_vm2, %v1372_v52 }
 0x744   :  { %v6697_v23 = vpop.eup %6696  ;;  %6050 = vmatpush3.msra.mxu1 %v7698_v26  ;;  %6098 = vmatmul.mubr.msk.f32.gmra.mxu0 %vm391_vm2, %v1116_v11 }
 0x745   :  { %6051 = vmatprep.subr.mxu1 %v8686_v17  ;;  %6042 = vmatprep.mubr.msk.f32.mxu1 %vm6821_vm0, %v8686_v17  ;;  %v1373_v19 = vmul.f32 %v6697_v23, %v7730_v38  ;;  %v6699_v54 = vpop.eup %6698 }
 0x746   :  { %6052 = vmatpush3.msra.mxu1 %v7752_v59  ;;  %6100 = vmatprep.mubr.msk.f32.mxu0 %vm6821_vm0, %v8686_v17  ;;  %v6701_v44 = vpop.eup %6700  ;;  %v1118_v58 = vmul.f32 %v6699_v54, %v7586_v24 }
 0x747   :  { %6053 = vmatprep.subr.mxu1 %v8686_v17  ;;  %6043 = vmatmul.mubr.msk.f32.gmra.mxu1 %vm391_vm2, %v1373_v19  ;;  %v6703_v20 = vpop.eup %6702  ;;  %v462_v26 = vmul.f32 %v6701_v44, %v7392_v53 }
 0x748   :  { %6054 = vmatpush3.msra.mxu1 %v7754_v48  ;;  %6101 = vmatmul.mubr.msk.f32.gmra.mxu0 %vm391_vm2, %v1117_v1  ;;  %v6705_v29 = vpop.eup %6704  ;;  %v1119_v24 = vmul.f32 %v6703_v20, %v7592_v13 }
 0x749   :  { %6055 = vmatprep.subr.mxu1 %v8686_v17  ;;  %6103 = vmatprep.mubr.msk.f32.mxu0 %vm6821_vm0, %v8686_v17  ;;  %v6707_v53 = vpop.eup %6706  ;;  %v463_v45 = vmul.f32 %v6705_v29, %v7474_v22 }
 0x74a   :  { %6056 = vmatpush3.msra.mxu1 %v7756_v61  ;;  %6059 = vmatprep.mubr.msk.f32.mxu1 %vm6821_vm0, %v8686_v17  ;;  %v6709_v38 = vpop.eup %6708  ;;  %v1120_v13 = vmul.f32 %v6707_v53, %v7598_v49  ;;  %v1840_v61 = vld [vmem:[#allocation2 + $0x18] sm:$0xff] }
 0x74b   :  { %6057 = vmatprep.subr.mxu1 %v8686_v17  ;;  %v464_v40 = vmul.f32 %v6709_v38, %v7483_v4  ;;  %v6711_v50 = vpop.eup %6710 }
 0x74c   :  { %6058 = vmatpush3.msra.mxu1 %v1541_v60  ;;  %6104 = vmatmul.mubr.msk.f32.gmra.mxu0 %vm391_vm2, %v1118_v58  ;;  %v465_v63 = vmul.f32 %v6711_v50, %v7548_v25  ;;  %v6713_v22 = vpop.eup %6712 }
 0x74d   :  { %6060 = vmatmul.mubr.msk.f32.vlgmr.msra.gmra.mxu1 %vm391_vm2, %v462_v26  ;;  %6106 = vmatprep.mubr.msk.f32.mxu0 %vm6821_vm0, %v8686_v17  ;;  %v466_v4 = vmul.f32 %v6713_v22, %v7604_v41  ;;  %v6715_v49 = vpop.eup %6714 }
 0x74e   :  { %6062 = vmatprep.mubr.msk.f32.mxu1 %vm6821_vm0, %v8686_v17  ;;  %6115 = vmatprep.subr.mxu1 %v8686_v17  ;;  %v467_v3 = vmul.f32 %v6715_v49, %v7622_v47 }
 0x74f   :  { %6116 = vmatpush3.msra.mxu1 %v1841_v10 }
 0x750   :  { %6107 = vmatmul.mubr.msk.f32.gmra.mxu0 %vm391_vm2, %v1119_v24  ;;  %6117 = vmatprep.subr.mxu1 %v8686_v17 }
 0x751   :  { %6063 = vmatmul.mubr.msk.f32.gmra.mxu1 %vm391_vm2, %v463_v45  ;;  %6109 = vmatprep.mubr.msk.f32.mxu0 %vm6821_vm0, %v8686_v17 }
 0x752   :  { %6065 = vmatprep.mubr.msk.f32.mxu1 %vm6821_vm0, %v8686_v17  ;;  %6118 = vmatpush3.msra.mxu1 %v1840_v61 }
 0x753   :  { %6119 = vmatprep.subr.mxu1 %v8686_v17 }
 0x754   :  { %6110 = vmatmul.mubr.msk.f32.gmra.mxu0 %vm391_vm2, %v1120_v13 }
 0x755   :  { %6066 = vmatmul.mubr.msk.f32.gmra.mxu1 %vm391_vm2, %v464_v40  ;;  %6112 = vmatprep.mubr.msk.f32.mxu0 %vm6821_vm0, %v8686_v17 }
 0x756   :  { %6068 = vmatprep.mubr.msk.f32.mxu1 %vm6821_vm0, %v8686_v17 }
 0x759   :  { %6069 = vmatmul.mubr.msk.f32.gmra.mxu1 %vm391_vm2, %v465_v63 }
 0x75a   :  { %6071 = vmatprep.mubr.msk.f32.mxu1 %vm6821_vm0, %v8686_v17 }
 0x75d   :  { %6072 = vmatmul.mubr.msk.f32.gmra.mxu1 %vm391_vm2, %v466_v4 }
 0x75e   :  { %6074 = vmatprep.mubr.msk.f32.mxu1 %vm6821_vm0, %v8686_v17 }
 0x761   :  { %6075 = vmatmul.mubr.msk.f32.gmra.mxu1 %vm391_vm2, %v467_v3  ;;  %v8688_v3 = vld [vmem:[#allocation22_spill] sm:$0xff] }
 0x762   :  { %6077 = vmatprep.mubr.msk.f32.mxu1 %vm6821_vm0, %v8686_v17 }
 0x763   :  { %v454_v25 = vpop.xlane.xlu0 %453 }
 0x764   :  { %6716 = vrcp.f32 %v454_v25 }
 0x76b   :  { %v1107_v59 = vpop.xlane.xlu1 %1106 }
 0x76c   :  { %6718 = vrcp.f32 %v1107_v59 }
 0x771   :  { %v6717_v46 = vpop.eup %6716 }
 0x772   :  { %v468_v41 = vmul.f32 %v6717_v46, %v7744_v30  ;;  %v1839_v30 = vld [vmem:[#allocation2 + $0x10] sm:$0xff] }
 0x773   :  { %6120 = vmatpush3.msra.mxu1 %v1839_v30 }
 0x774   :  { %6078 = vmatmul.mubr.msk.f32.gmra.mxu1 %vm391_vm2, %v468_v41  ;;  %6121 = vmatprep.subr.mxu1 %v8686_v17 }
 0x775   :  { %6123 = vmatprep.mubr.msk.f32.mxu1 %vm6821_vm0, %v8686_v17  ;;  %6122 = vmatpush3.msra.mxu1 %v1838_v62 }
 0x776   :  { %6173 = vmatprep.subr.mxu1 %v8686_v17 }
 0x779   :  { %v6719_v48 = vpop.eup %6718 }
 0x77a   :  { %v1121_v47 = vmul.f32 %v6719_v48, %v7748_v18  ;;  %v8689_v48 = vld [vmem:[#allocation23_spill] sm:$0xff] }
 0x77c   :  { %6113 = vmatmul.mubr.msk.f32.gmra.mxu0 %vm391_vm2, %v1121_v47 }
 0x77d   :  { %6152 = vmatprep.mubr.msk.f32.mxu0 %vm6821_vm0, %v8686_v17 }
 0x7ee   :  { %v1499_v18 = vpop.f32.mrf.mxu0 }
 0x7f0   :  { %v6026_v15 = vpop.f32.mrf.mxu0 }
 0x7f1   :  { %v8690_v15 = vld [vmem:[#allocation24_spill] sm:$0xff] }
 0x7f2   :  { %v1504_v0 = vpop.f32.mrf.mxu0 }
 0x7f4   :  { %v6029_v55 = vpop.f32.mrf.mxu0 }
 0x7f7   :  { %v1509_v51 = vpop.f32.mrf.mxu0 }
 0x7f9   :  { %v6032_v28 = vpop.f32.mrf.mxu0 }
 0x7fb   :  { %v1514_v21 = vpop.f32.mrf.mxu0 }
 0x7fd   :  { %v6035_v27 = vpop.f32.mrf.mxu0 }
 0x7ff   :  { %v1519_v56 = vpop.f32.mrf.mxu1  ;;  %v1797_v12 = vpop.f32.mrf.mxu0 }
 0x800   :  { %v1798_v11 = vadd.f32 %v1797_v12, %v1499_v18 }
 0x801   :  { %v6038_v8 = vpop.f32.mrf.mxu1  ;;  %v6096_v42 = vpop.f32.mrf.mxu0 }
 0x803   :  { %v1524_v2 = vpop.f32.mrf.mxu1 }
 0x804   :  { %v1802_v34 = vpop.f32.mrf.mxu0 }
 0x805   :  { %v6041_v33 = vpop.f32.mrf.mxu1  ;;  %v1803_v58 = vadd.f32 %v1802_v34, %v1504_v0 }
 0x806   :  { %v6099_v16 = vpop.f32.mrf.mxu0 }
 0x807   :  { %v1529_v36 = vpop.f32.mrf.mxu1 }
 0x808   :  { %v1807_v35 = vpop.f32.mrf.mxu0 }
 0x809   :  { %v6044_v6 = vpop.f32.mrf.mxu1  ;;  %v1808_v45 = vadd.f32 %v1807_v35, %v1509_v51 }
 0x80a   :  { %v6102_v32 = vpop.f32.mrf.mxu0 }
 0x80c   :  { %v1812_v37 = vpop.f32.mrf.mxu0 }
 0x80d   :  { %v1648_v52 = vpop.f32.mrf.mxu1  ;;  %v1813_v50 = vadd.f32 %v1812_v37, %v1514_v21  ;;  %v8691_v21 = vld [vmem:[#allocation6_spill] sm:$0xff] }
 0x80e   :  { %v1649_v9 = vadd.f32 %v1648_v52, %v7414_v43  ;;  %v6105_v23 = vpop.f32.mrf.mxu0  ;;  %v7910_v27 = vsub.s32 2, %v8691_v21 }
 0x80f   :  { %v6061_v19 = vpop.f32.mrf.mxu1 }
 0x810   :  { %v1831_v1 = vadd.f32 %v1798_v11, %v1649_v9  ;;  %v1817_v54 = vpop.f32.mrf.mxu0 }
 0x811   :  { %v1653_v44 = vpop.f32.mrf.mxu1  ;;  %v1818_v49 = vadd.f32 %v1817_v54, %v1519_v56  ;;  %v7912_v56 = vld [vmem:[#allocation2 + $0x148] sm:$0xff] }
 0x812   :  { %v1654_v20 = vadd.f32 %v1653_v44, %v7416_v57  ;;  %v6108_v26 = vpop.f32.mrf.mxu0  ;;  %6124 = vmatmul.mubr.msk.f32.vlgmr.msra.gmra.mxu1 %vm241_vm10, %v1831_v1  ;;  %v1845_v12 = vrot.slane %v7912_v56, %v7910_v27 }
 0x813   :  { %v6064_v60 = vpop.f32.mrf.mxu1  ;;  %6126 = vmatprep.mubr.msk.f32.mxu1 %vm6821_vm0, %v8686_v17 }
 0x814   :  { %v1832_v29 = vadd.f32 %v1803_v58, %v1654_v20  ;;  %v1822_v24 = vpop.f32.mrf.mxu0 }
 0x815   :  { %v1658_v53 = vpop.f32.mrf.mxu1 }
 0x816   :  { %v1659_v43 = vadd.f32 %v1658_v53, %v7418_v7  ;;  %v6111_v38 = vpop.f32.mrf.mxu0  ;;  %6127 = vmatmul.mubr.msk.f32.gmra.mxu1 %vm241_vm10, %v1832_v29  ;;  %v8692_v53 = vld [vmem:[#allocation14_spill] sm:$0xff] }
 0x817   :  { %v6067_v13 = vpop.f32.mrf.mxu1  ;;  %6129 = vmatprep.mubr.msk.f32.mxu1 %vm6821_vm0, %v8686_v17  ;;  %v8693_v38 = vld [vmem:[#allocation12_spill] sm:$0xff] }
 0x818   :  { %v1833_v57 = vadd.f32 %v1808_v45, %v1659_v43 }
 0x819   :  { %v1663_v40 = vpop.f32.mrf.mxu1 }
 0x81a   :  { %v1664_v63 = vadd.f32 %v1663_v40, %v7420_v31  ;;  %6130 = vmatmul.mubr.msk.f32.gmra.mxu1 %vm241_vm10, %v1833_v57  ;;  %v1823_v31 = vadd.f32 %v1822_v24, %v1524_v2 }
 0x81b   :  { %v6070_v22 = vpop.f32.mrf.mxu1  ;;  %6132 = vmatprep.mubr.msk.f32.mxu1 %vm6821_vm0, %v8686_v17 }
 0x81c   :  { %v1834_v4 = vadd.f32 %v1813_v50, %v1664_v63  ;;  %v8694_v50 = vld [vmem:[#allocation13_spill] sm:$0xff] }
 0x81d   :  { %v1668_v7 = vpop.f32.mrf.mxu1 }
 0x81e   :  { %v1669_v25 = vadd.f32 %v1668_v7, %v8688_v3  ;;  %6133 = vmatmul.mubr.msk.f32.gmra.mxu1 %vm241_vm10, %v1834_v4  ;;  %v8695_v7 = vld [vmem:[#allocation10_spill] sm:$0xff] }
 0x81f   :  { %v6073_v59 = vpop.f32.mrf.mxu1  ;;  %6135 = vmatprep.mubr.msk.f32.mxu1 %vm6821_vm0, %v8686_v17 }
 0x820   :  { %v1835_v46 = vadd.f32 %v1818_v49, %v1669_v25  ;;  %v8696_v59 = vld [vmem:[#allocation8_spill] sm:$0xff] }
 0x821   :  { %v1673_v41 = vpop.f32.mrf.mxu1 }
 0x822   :  { %v1674_v47 = vadd.f32 %v1673_v41, %v8689_v48  ;;  %6136 = vmatmul.mubr.msk.f32.gmra.mxu1 %vm241_vm10, %v1835_v46  ;;  %v8697_v48 = vld [vmem:[#allocation11_spill] sm:$0xff] }
 0x823   :  { %v6076_v10 = vpop.f32.mrf.mxu1  ;;  %6138 = vmatprep.mubr.msk.f32.mxu1 %vm6821_vm0, %v8686_v17 }
 0x824   :  { %v1836_v61 = vadd.f32 %v1823_v31, %v1674_v47 }
 0x826   :  { %6139 = vmatmul.mubr.msk.f32.gmra.mxu1 %vm241_vm10, %v1836_v61 }
 0x827   :  { %6141 = vmatprep.mubr.msk.f32.mxu1 %vm6821_vm0, %v8686_v17 }
 0x834   :  { %v1678_v30 = vpop.f32.mrf.mxu1 }
 0x835   :  { %v1679_v0 = vadd.f32 %v1678_v30, %v8690_v15 }
 0x836   :  { %v6079_v62 = vpop.f32.mrf.mxu1 }
 0x83c   :  { %v1827_v18 = vpop.f32.mrf.mxu0 }
 0x83d   :  { %v1828_v55 = vadd.f32 %v1827_v18, %v1529_v36 }
 0x83e   :  { %v6114_v51 = vpop.f32.mrf.mxu0 }
 0x83f   :  { %v1837_v28 = vadd.f32 %v1828_v55, %v1679_v0 }
 0x841   :  { %6142 = vmatmul.mubr.msk.f32.gmra.mxu1 %vm241_vm10, %v1837_v28 }
 0x842   :  { %6181 = vmatprep.mubr.msk.f32.mxu1 %vm6821_vm0, %v8686_v17 }
 0x8d2   :  { %v1933_v8 = vpop.f32.mrf.mxu1 }
 0x8d3   :  { %v1934_v42 = vadd.f32 %v1933_v8, %v1845_v12 }
 0x8d4   :  { %v6125_v2 = vpop.f32.mrf.mxu1 }
 0x8d5   :  { %1974 = vrot.lane.b32.xlu0 %v1934_v42, %s6823_s0 }
 0x8d6   :  { %v1938_v34 = vpop.f32.mrf.mxu1 }
 0x8d7   :  { %v1939_v33 = vadd.f32 %v1938_v34, %v1845_v12 }
 0x8d8   :  { %v6128_v16 = vpop.f32.mrf.mxu1 }
 0x8d9   :  { %1976 = vrot.lane.b32.xlu1 %v1939_v33, %s6823_s0 }
 0x8da   :  { %v1943_v36 = vpop.f32.mrf.mxu1 }
 0x8db   :  { %v1944_v35 = vadd.f32 %v1943_v36, %v1845_v12 }
 0x8dc   :  { %v6131_v6 = vpop.f32.mrf.mxu1 }
 0x8dd   :  { %1978 = vrot.lane.b32.xlu0 %v1944_v35, %s6823_s0 }
 0x8de   :  { %v1948_v32 = vpop.f32.mrf.mxu1 }
 0x8df   :  { %v1949_v37 = vadd.f32 %v1948_v32, %v1845_v12 }
 0x8e0   :  { %v6134_v52 = vpop.f32.mrf.mxu1 }
 0x8e1   :  { %1980 = vrot.lane.b32.xlu1 %v1949_v37, %s6823_s0 }
 0x8e2   :  { %v1953_v11 = vpop.f32.mrf.mxu1 }
 0x8e3   :  { %v1954_v9 = vadd.f32 %v1953_v11, %v1845_v12 }
 0x8e4   :  { %v6137_v23 = vpop.f32.mrf.mxu1 }
 0x8e5   :  { %1982 = vrot.lane.b32.xlu0 %v1954_v9, %s6823_s0 }
 0x8e6   :  { %v1958_v19 = vpop.f32.mrf.mxu1 }
 0x8e7   :  { %v1959_v1 = vadd.f32 %v1958_v19, %v1845_v12 }
 0x8e8   :  { %v6140_v54 = vpop.f32.mrf.mxu1 }
 0x8e9   :  { %1984 = vrot.lane.b32.xlu1 %v1959_v1, %s6823_s0 }
 0x901   :  { %v1963_v44 = vpop.f32.mrf.mxu1 }
 0x902   :  { %v1964_v58 = vadd.f32 %v1963_v44, %v1845_v12  ;;  %v2181_v44 = vsub.s32 6, %v8691_v21 }
 0x903   :  { %v6143_v20 = vpop.f32.mrf.mxu1 }
 0x904   :  { %1986 = vrot.lane.b32.xlu0 %v1964_v58, %s6823_s0  ;;  %v2166_v58 = vsub.s32 5, %v8691_v21  ;;  %v2182_v20 = vrot.slane %v7912_v56, %v2181_v44 }
 0x947   :  { %v1975_v26 = vpop.permute.xlu0 %1974 }
 0x948   :  { %v7924_v60 = vadd.f32 %v1975_v26, %v6942_v39  ;;  %v2167_v26 = vrot.slane %v7912_v56, %v2166_v58 }
 0x94a   :  { %v2059_v29 = vmul.f32 %v7924_v60, %v7924_v60  ;;  %2009 = vrot.lane.b32.xlu1 %v7924_v60, %s6822_s23 }
 0x94b   :  { %v1977_v24 = vpop.permute.xlu1 %1976 }
 0x94c   :  { %v7931_v45 = vadd.f32 %v1977_v24, %v8692_v53  ;;  %2073 = vrot.lane.b32.xlu0 %v2059_v29, %s6822_s23  ;;  %v2197_v29 = vld [vmem:[#allocation2 + $0x40] sm:$0xff]  ;;  %v2196_v24 = vld [vmem:[#allocation2 + $0x38] sm:$0xff]  ;;  %v2195_v53 = vld [vmem:[#allocation2 + $0x30] sm:$0xff] }
 0x94d   :  { %6145 = vmatpush3.msra.mxu0 %v2197_v29 }
 0x94e   :  { %v2060_v43 = vmul.f32 %v7931_v45, %v7931_v45  ;;  %2011 = vrot.lane.b32.xlu1 %v7931_v45, %s6822_s23  ;;  %6146 = vmatprep.subr.mxu0 %v8686_v17 }
 0x94f   :  { %v1979_v39 = vpop.permute.xlu0 %1978  ;;  %6147 = vmatpush3.msra.mxu0 %v2196_v24 }
 0x950   :  { %v7939_v13 = vadd.f32 %v1979_v39, %v8693_v38  ;;  %2075 = vrot.lane.b32.xlu0 %v2060_v43, %s6822_s23  ;;  %6148 = vmatprep.subr.mxu0 %v8686_v17  ;;  %v2194_v43 = vld [vmem:[#allocation2 + $0x28] sm:$0xff] }
 0x951   :  { %6149 = vmatpush3.msra.mxu0 %v2195_v53 }
 0x952   :  { %v2061_v57 = vmul.f32 %v7939_v13, %v7939_v13  ;;  %2013 = vrot.lane.b32.xlu1 %v7939_v13, %s6822_s23  ;;  %6150 = vmatprep.subr.mxu0 %v8686_v17 }
 0x953   :  { %v1981_v40 = vpop.permute.xlu1 %1980  ;;  %6151 = vmatpush3.msra.mxu0 %v2194_v43 }
 0x954   :  { %v7947_v63 = vadd.f32 %v1981_v40, %v8694_v50  ;;  %2077 = vrot.lane.b32.xlu0 %v2061_v57, %s6822_s23  ;;  %6202 = vmatprep.subr.mxu0 %v8686_v17 }
 0x956   :  { %v2062_v22 = vmul.f32 %v7947_v63, %v7947_v63  ;;  %2015 = vrot.lane.b32.xlu1 %v7947_v63, %s6822_s23 }
 0x957   :  { %v1983_v4 = vpop.permute.xlu0 %1982 }
 0x958   :  { %v7955_v49 = vadd.f32 %v1983_v4, %v8695_v7  ;;  %2079 = vrot.lane.b32.xlu0 %v2062_v22, %s6822_s23 }
 0x95a   :  { %v2063_v3 = vmul.f32 %v7955_v49, %v7955_v49  ;;  %2017 = vrot.lane.b32.xlu1 %v7955_v49, %s6822_s23 }
 0x95b   :  { %v1985_v25 = vpop.permute.xlu1 %1984 }
 0x95c   :  { %v7963_v46 = vadd.f32 %v1985_v25, %v8696_v59  ;;  %2081 = vrot.lane.b32.xlu0 %v2063_v3, %s6822_s23 }
 0x95e   :  { %v2064_v41 = vmul.f32 %v7963_v46, %v7963_v46  ;;  %2019 = vrot.lane.b32.xlu1 %v7963_v46, %s6822_s23 }
 0x960   :  { %2083 = vrot.lane.b32.xlu0 %v2064_v41, %s6822_s23 }
 0x976   :  { %v1987_v31 = vpop.permute.xlu0 %1986 }
 0x977   :  { %v7972_v47 = vadd.f32 %v1987_v31, %v8697_v48 }
 0x979   :  { %v2065_v10 = vmul.f32 %v7972_v47, %v7972_v47  ;;  %2021 = vrot.lane.b32.xlu1 %v7972_v47, %s6822_s23 }
 0x97b   :  { %2085 = vrot.lane.b32.xlu0 %v2065_v10, %s6822_s23 }
 0x9bc   :  { %v2010_v61 = vpop.permute.xlu1 %2009 }
 0x9bd   :  { %v2030_v30 = vsel %vm241_vm10, %v2010_v61, 0.0 }
 0x9be   :  { %v2074_v62 = vpop.permute.xlu0 %2073  ;;  %2031 = vadd.xlane.f32.xlu1 %v2030_v30 }
 0x9bf   :  { %v2094_v18 = vsel %vm241_vm10, %v2074_v62, 0.0 }
 0x9c0   :  { %2095 = vadd.xlane.f32.xlu0 %v2094_v18  ;;  %v2012_v15 = vpop.permute.xlu1 %2011 }
 0x9c1   :  { %v2033_v51 = vsel %vm241_vm10, %v2012_v15, 0.0 }
 0x9c2   :  { %v2076_v0 = vpop.permute.xlu0 %2075 }
 0x9c3   :  { %v2097_v55 = vsel %vm241_vm10, %v2076_v0, 0.0 }
 0x9c4   :  { %2098 = vadd.xlane.f32.xlu1 %v2097_v55  ;;  %2034 = vadd.xlane.f32.xlu0 %v2033_v51  ;;  %v2014_v28 = vpop.permute.xlu1 %2013 }
 0x9c5   :  { %v2036_v42 = vsel %vm241_vm10, %v2014_v28, 0.0 }
 0x9c6   :  { %v2078_v12 = vpop.permute.xlu0 %2077 }
 0x9c7   :  { %v2100_v8 = vsel %vm241_vm10, %v2078_v12, 0.0 }
 0x9c8   :  { %2101 = vadd.xlane.f32.xlu1 %v2100_v8  ;;  %2037 = vadd.xlane.f32.xlu0 %v2036_v42  ;;  %v2016_v2 = vpop.permute.xlu1 %2015 }
 0x9c9   :  { %v2039_v16 = vsel %vm241_vm10, %v2016_v2, 0.0 }
 0x9ca   :  { %v2080_v34 = vpop.permute.xlu0 %2079 }
 0x9cb   :  { %v2103_v33 = vsel %vm241_vm10, %v2080_v34, 0.0 }
 0x9cc   :  { %2104 = vadd.xlane.f32.xlu1 %v2103_v33  ;;  %2040 = vadd.xlane.f32.xlu0 %v2039_v16  ;;  %v2018_v36 = vpop.permute.xlu1 %2017 }
 0x9cd   :  { %v2042_v32 = vsel %vm241_vm10, %v2018_v36, 0.0 }
 0x9ce   :  { %v2082_v35 = vpop.permute.xlu0 %2081 }
 0x9cf   :  { %v2106_v6 = vsel %vm241_vm10, %v2082_v35, 0.0 }
 0x9d0   :  { %2107 = vadd.xlane.f32.xlu1 %v2106_v6  ;;  %2043 = vadd.xlane.f32.xlu0 %v2042_v32  ;;  %v2020_v37 = vpop.permute.xlu1 %2019 }
 0x9d1   :  { %v2045_v9 = vsel %vm241_vm10, %v2020_v37, 0.0 }
 0x9d2   :  { %v2084_v52 = vpop.permute.xlu0 %2083 }
 0x9d3   :  { %v2109_v11 = vsel %vm241_vm10, %v2084_v52, 0.0 }
 0x9d4   :  { %2110 = vadd.xlane.f32.xlu1 %v2109_v11  ;;  %2046 = vadd.xlane.f32.xlu0 %v2045_v9 }
 0x9eb   :  { %v2022_v23 = vpop.permute.xlu1 %2021 }
 0x9ec   :  { %v2048_v19 = vsel %vm241_vm10, %v2022_v23, 0.0 }
 0x9ed   :  { %v2086_v1 = vpop.permute.xlu0 %2085  ;;  %2049 = vadd.xlane.f32.xlu0 %v2048_v19 }
 0x9ee   :  { %v2112_v54 = vsel %vm241_vm10, %v2086_v1, 0.0 }
 0x9ef   :  { %2113 = vadd.xlane.f32.xlu1 %v2112_v54 }
 0xa00   :  { %2184 = vrot.lane.b32.xlu1 %v2182_v20, %s6823_s0 }
 0xa03   :  { %2169 = vrot.lane.b32.xlu0 %v2167_v26, %s6823_s0 }
 0xa47   :  { %v2032_v39 = vpop.xlane.xlu1 %2031 }
 0xa48   :  { %v2052_v3 = vmul.f32 0.03125, %v2032_v39 }
 0xa49   :  { %v2096_v38 = vpop.xlane.xlu0 %2095 }
 0xa4a   :  { %v2122_v48 = vmul.f32 %v2052_v3, %v2052_v3  ;;  %v2115_v10 = vmul.f32 0.03125, %v2096_v38  ;;  %v2136_v24 = vsub.f32 %v7924_v60, %v2052_v3 }
 0xa4c   :  { %v2129_v28 = vsub.f32 %v2115_v10, %v2122_v48 }
 0xa4d   :  { %v2035_v57 = vpop.xlane.xlu0 %2034  ;;  %v2099_v40 = vpop.xlane.xlu1 %2098 }
 0xa4e   :  { %v2053_v25 = vmul.f32 0.03125, %v2035_v57  ;;  %v2116_v0 = vmul.f32 0.03125, %v2099_v40  ;;  %v2143_v35 = vadd.f32 1e-05, %v2129_v28 }
 0xa50   :  { %v2123_v30 = vmul.f32 %v2053_v25, %v2053_v25  ;;  %6720 = vrsqrt.f32 %v2143_v35  ;;  %v2137_v53 = vsub.f32 %v7931_v45, %v2053_v25  ;;  %v2344_v35 = vld [vmem:[#allocation2 + $0x48] sm:$0xff] }
 0xa51   :  { %v2038_v50 = vpop.xlane.xlu0 %2037  ;;  %v2102_v22 = vpop.xlane.xlu1 %2101 }
 0xa52   :  { %v2054_v31 = vmul.f32 0.03125, %v2038_v50  ;;  %v2130_v8 = vsub.f32 %v2116_v0, %v2123_v30  ;;  %v2117_v42 = vmul.f32 0.03125, %v2102_v22 }
 0xa54   :  { %v2124_v55 = vmul.f32 %v2054_v31, %v2054_v31  ;;  %v2144_v32 = vadd.f32 1e-05, %v2130_v8  ;;  %v2138_v38 = vsub.f32 %v7939_v13, %v2054_v31 }
 0xa55   :  { %v2041_v4 = vpop.xlane.xlu0 %2040  ;;  %v2105_v7 = vpop.xlane.xlu1 %2104 }
 0xa56   :  { %v2055_v41 = vmul.f32 0.03125, %v2041_v4  ;;  %v2118_v12 = vmul.f32 0.03125, %v2105_v7  ;;  %v2131_v16 = vsub.f32 %v2117_v42, %v2124_v55  ;;  %6722 = vrsqrt.f32 %v2144_v32  ;;  %v2347_v42 = vld [vmem:[#allocation2 + $0x60] sm:$0xff] }
 0xa57   :  { %6174 = vmatpush3.msra.mxu1 %v2347_v42 }
 0xa58   :  { %v2125_v18 = vmul.f32 %v2055_v41, %v2055_v41  ;;  %v2145_v9 = vadd.f32 1e-05, %v2131_v16  ;;  %v2139_v57 = vsub.f32 %v7947_v63, %v2055_v41  ;;  %6175 = vmatprep.subr.mxu1 %v8686_v17  ;;  %v2345_v16 = vld [vmem:[#allocation2 + $0x50] sm:$0xff] }
 0xa59   :  { %v2044_v59 = vpop.xlane.xlu0 %2043  ;;  %v2108_v61 = vpop.xlane.xlu1 %2107 }
 0xa5a   :  { %v8007_v15 = vmul.f32 0.03125, %v2044_v59  ;;  %v2132_v2 = vsub.f32 %v2118_v12, %v2125_v18  ;;  %v2119_v6 = vmul.f32 0.03125, %v2108_v61 }
 0xa5c   :  { %v2126_v34 = vmul.f32 %v8007_v15, %v8007_v15  ;;  %v2146_v52 = vadd.f32 1e-05, %v2132_v2  ;;  %v2140_v45 = vsub.f32 %v7955_v49, %v8007_v15  ;;  %v2346_v2 = vld [vmem:[#allocation2 + $0x58] sm:$0xff] }
 0xa5d   :  { %v2047_v62 = vpop.xlane.xlu0 %2046  ;;  %v2111_v33 = vpop.xlane.xlu1 %2110  ;;  %6176 = vmatpush3.msra.mxu1 %v2346_v2 }
 0xa5e   :  { %v2057_v51 = vmul.f32 0.03125, %v2047_v62  ;;  %v2120_v37 = vmul.f32 0.03125, %v2111_v33  ;;  %v2133_v11 = vsub.f32 %v2119_v6, %v2126_v34  ;;  %6724 = vrsqrt.f32 %v2146_v52  ;;  %v6721_v54 = vpop.eup %6720  ;;  %6177 = vmatprep.subr.mxu1 %v8686_v17 }
 0xa5f   :  { %6726 = vrsqrt.f32 %v2145_v9  ;;  %v2157_v7 = vmul.f32 %v6721_v54, %v2136_v24  ;;  %6178 = vmatpush3.msra.mxu1 %v2345_v16 }
 0xa60   :  { %v2127_v36 = vmul.f32 %v2057_v51, %v2057_v51  ;;  %v2147_v19 = vadd.f32 1e-05, %v2133_v11  ;;  %v2141_v13 = vsub.f32 %v7963_v46, %v2057_v51  ;;  %6179 = vmatprep.subr.mxu1 %v8686_v17 }
 0xa61   :  { %6180 = vmatpush3.msra.mxu1 %v2344_v35 }
 0xa62   :  { %v2134_v23 = vsub.f32 %v2120_v37, %v2127_v36  ;;  %6728 = vrsqrt.f32 %v2147_v19  ;;  %6246 = vmatprep.subr.mxu1 %v8686_v17 }
 0xa63   :  { %v6723_v20 = vpop.eup %6722 }
 0xa64   :  { %v2148_v1 = vadd.f32 1e-05, %v2134_v23  ;;  %v2158_v4 = vmul.f32 %v6723_v20, %v2137_v53 }
 0xa66   :  { %6730 = vrsqrt.f32 %v2148_v1  ;;  %v8073_v1 = vsub.s32 3, %v8691_v21 }
 0xa68   :  { %v2201_v54 = vrot.slane %v7912_v56, %v8073_v1 }
 0xa6b   :  { %v6725_v29 = vpop.eup %6724 }
 0xa6c   :  { %v6727_v39 = vpop.eup %6726  ;;  %v2160_v48 = vmul.f32 %v6725_v29, %v2139_v57 }
 0xa6d   :  { %v2159_v60 = vmul.f32 %v6727_v39, %v2138_v38 }
 0xa6f   :  { %v6729_v10 = vpop.eup %6728 }
 0xa70   :  { %v2161_v28 = vmul.f32 %v6729_v10, %v2140_v45 }
 0xa73   :  { %v6731_v3 = vpop.eup %6730 }
 0xa74   :  { %v2162_v55 = vmul.f32 %v6731_v3, %v2141_v13 }
 0xa76   :  { %v2050_v26 = vpop.xlane.xlu0 %2049 }
 0xa77   :  { %v2058_v43 = vmul.f32 0.03125, %v2050_v26 }
 0xa78   :  { %v2114_v40 = vpop.xlane.xlu1 %2113 }
 0xa79   :  { %v2128_v50 = vmul.f32 %v2058_v43, %v2058_v43  ;;  %v2121_v22 = vmul.f32 0.03125, %v2114_v40  ;;  %v2142_v34 = vsub.f32 %v7972_v47, %v2058_v43 }
 0xa7a   :  { %v2170_v59 = vpop.permute.xlu0 %2169 }
 0xa7b   :  { %v2135_v61 = vsub.f32 %v2121_v22, %v2128_v50  ;;  %v2173_v30 = vmul.f32 %v2170_v59, %v2158_v4  ;;  %v2172_v62 = vmul.f32 %v2170_v59, %v2157_v7  ;;  %v2175_v63 = vmul.f32 %v2170_v59, %v2160_v48 }
 0xa7c   :  { %v2185_v25 = vpop.permute.xlu1 %2184  ;;  %v2174_v0 = vmul.f32 %v2170_v59, %v2159_v60  ;;  %v2177_v15 = vmul.f32 %v2170_v59, %v2162_v55  ;;  %v2176_v51 = vmul.f32 %v2170_v59, %v2161_v28  ;;  %v2350_v55 = vsub.s32 4, %v8691_v21 }
 0xa7d   :  { %v2149_v41 = vadd.f32 1e-05, %v2135_v61  ;;  %v8018_v31 = vadd.f32 %v2185_v25, %v2173_v30  ;;  %v8020_v18 = vadd.f32 %v2185_v25, %v2172_v62  ;;  %v8026_v49 = vadd.f32 %v2185_v25, %v2175_v63 }
 0xa7e   :  { %v8028_v46 = vadd.f32 %v2185_v25, %v2174_v0  ;;  %v8034_v12 = vadd.f32 %v2185_v25, %v2177_v15  ;;  %v8036_v8 = vadd.f32 %v2185_v25, %v2176_v51  ;;  %v2351_v28 = vrot.slane %v7912_v56, %v2350_v55 }
 0xa7f   :  { %6732 = vrsqrt.f32 %v2149_v41  ;;  %2211 = vrot.lane.b32.xlu0 %v8018_v31, %s6822_s23  ;;  %2209 = vrot.lane.b32.xlu1 %v8020_v18, %s6822_s23 }
 0xa83   :  { %2215 = vrot.lane.b32.xlu0 %v8026_v49, %s6822_s23  ;;  %2213 = vrot.lane.b32.xlu1 %v8028_v46, %s6822_s23 }
 0xa87   :  { %2219 = vrot.lane.b32.xlu0 %v8034_v12, %s6822_s23  ;;  %2217 = vrot.lane.b32.xlu1 %v8036_v8, %s6822_s23 }
 0xa8c   :  { %v6733_v33 = vpop.eup %6732 }
 0xa8d   :  { %v2163_v36 = vmul.f32 %v6733_v33, %v2142_v34 }
 0xa8f   :  { %v2178_v6 = vmul.f32 %v2170_v59, %v2163_v36 }
 0xa91   :  { %v8046_v32 = vadd.f32 %v2185_v25, %v2178_v6 }
 0xa93   :  { %2221 = vrot.lane.b32.xlu1 %v8046_v32, %s6822_s23 }
 0xaf1   :  { %v2210_v47 = vpop.permute.xlu1 %2209  ;;  %v2212_v37 = vpop.permute.xlu0 %2211 }
 0xaf2   :  { %6153 = vmatmul.mubr.msk.f32.vlgmr.msra.gmra.mxu0 %vm241_vm10, %v2210_v47 }
 0xaf3   :  { %6155 = vmatprep.mubr.msk.f32.mxu0 %vm6821_vm0, %v8686_v17 }
 0xaf5   :  { %v2214_v52 = vpop.permute.xlu1 %2213  ;;  %v2216_v11 = vpop.permute.xlu0 %2215 }
 0xaf6   :  { %6156 = vmatmul.mubr.msk.f32.gmra.mxu0 %vm241_vm10, %v2212_v37 }
 0xaf7   :  { %6158 = vmatprep.mubr.msk.f32.mxu0 %vm6821_vm0, %v8686_v17 }
 0xaf9   :  { %v2218_v9 = vpop.permute.xlu1 %2217  ;;  %v2220_v23 = vpop.permute.xlu0 %2219 }
 0xafa   :  { %6159 = vmatmul.mubr.msk.f32.gmra.mxu0 %vm241_vm10, %v2214_v52 }
 0xafb   :  { %6161 = vmatprep.mubr.msk.f32.mxu0 %vm6821_vm0, %v8686_v17 }
 0xafe   :  { %6162 = vmatmul.mubr.msk.f32.gmra.mxu0 %vm241_vm10, %v2216_v11 }
 0xaff   :  { %6164 = vmatprep.mubr.msk.f32.mxu0 %vm6821_vm0, %v8686_v17 }
 0xb02   :  { %6165 = vmatmul.mubr.msk.f32.gmra.mxu0 %vm241_vm10, %v2218_v9 }
 0xb03   :  { %6167 = vmatprep.mubr.msk.f32.mxu0 %vm6821_vm0, %v8686_v17 }
 0xb05   :  { %v2222_v19 = vpop.permute.xlu1 %2221 }
 0xb06   :  { %6168 = vmatmul.mubr.msk.f32.gmra.mxu0 %vm241_vm10, %v2220_v23 }
 0xb07   :  { %6170 = vmatprep.mubr.msk.f32.mxu0 %vm6821_vm0, %v8686_v17 }
 0xb0a   :  { %6171 = vmatmul.mubr.msk.f32.gmra.mxu0 %vm241_vm10, %v2222_v19 }
 0xb0b   :  { %6210 = vmatprep.mubr.msk.f32.mxu0 %vm6821_vm0, %v8686_v17 }
 0xbb2   :  { %v2303_v20 = vpop.f32.mrf.mxu0 }
 0xbb3   :  { %v2304_v26 = vadd.f32 %v2303_v20, %v2201_v54 }
 0xbb4   :  { %v6154_v29 = vpop.f32.mrf.mxu0 }
 0xbb5   :  { %v2337_v24 = vmax.f32 %v2304_v26, 0.0 }
 0xbb6   :  { %v2308_v53 = vpop.f32.mrf.mxu0 }
 0xbb7   :  { %v2309_v43 = vadd.f32 %v2308_v53, %v2201_v54  ;;  %6182 = vmatmul.mubr.msk.f32.vlgmr.msra.gmra.mxu1 %vm241_vm10, %v2337_v24 }
 0xbb8   :  { %v6157_v39 = vpop.f32.mrf.mxu0  ;;  %6184 = vmatprep.mubr.msk.f32.mxu1 %vm6821_vm0, %v8686_v17 }
 0xbb9   :  { %v2338_v38 = vmax.f32 %v2309_v43, 0.0 }
 0xbba   :  { %v2313_v57 = vpop.f32.mrf.mxu0 }
 0xbbb   :  { %v2314_v40 = vadd.f32 %v2313_v57, %v2201_v54  ;;  %6185 = vmatmul.mubr.msk.f32.gmra.mxu1 %vm241_vm10, %v2338_v38 }
 0xbbc   :  { %v6160_v50 = vpop.f32.mrf.mxu0  ;;  %6187 = vmatprep.mubr.msk.f32.mxu1 %vm6821_vm0, %v8686_v17 }
 0xbbd   :  { %v2339_v22 = vmax.f32 %v2314_v40, 0.0 }
 0xbbe   :  { %v2318_v4 = vpop.f32.mrf.mxu0 }
 0xbbf   :  { %v2319_v7 = vadd.f32 %v2318_v4, %v2201_v54  ;;  %6188 = vmatmul.mubr.msk.f32.gmra.mxu1 %vm241_vm10, %v2339_v22 }
 0xbc0   :  { %v6163_v59 = vpop.f32.mrf.mxu0  ;;  %6190 = vmatprep.mubr.msk.f32.mxu1 %vm6821_vm0, %v8686_v17 }
 0xbc1   :  { %v2340_v48 = vmax.f32 %v2319_v7, 0.0 }
 0xbc2   :  { %v2323_v10 = vpop.f32.mrf.mxu0 }
 0xbc3   :  { %v2324_v61 = vadd.f32 %v2323_v10, %v2201_v54  ;;  %6191 = vmatmul.mubr.msk.f32.gmra.mxu1 %vm241_vm10, %v2340_v48 }
 0xbc4   :  { %v6166_v30 = vpop.f32.mrf.mxu0  ;;  %6193 = vmatprep.mubr.msk.f32.mxu1 %vm6821_vm0, %v8686_v17 }
 0xbc5   :  { %v2341_v62 = vmax.f32 %v2324_v61, 0.0 }
 0xbc6   :  { %v2328_v60 = vpop.f32.mrf.mxu0 }
 0xbc7   :  { %v2329_v3 = vadd.f32 %v2328_v60, %v2201_v54  ;;  %6194 = vmatmul.mubr.msk.f32.gmra.mxu1 %vm241_vm10, %v2341_v62 }
 0xbc8   :  { %v6169_v45 = vpop.f32.mrf.mxu0  ;;  %6196 = vmatprep.mubr.msk.f32.mxu1 %vm6821_vm0, %v8686_v17 }
 0xbc9   :  { %v2342_v13 = vmax.f32 %v2329_v3, 0.0 }
 0xbca   :  { %v2333_v25 = vpop.f32.mrf.mxu0 }
 0xbcb   :  { %v2334_v63 = vadd.f32 %v2333_v25, %v2201_v54  ;;  %6197 = vmatmul.mubr.msk.f32.gmra.mxu1 %vm241_vm10, %v2342_v13 }
 0xbcc   :  { %v6172_v41 = vpop.f32.mrf.mxu0  ;;  %6199 = vmatprep.mubr.msk.f32.mxu1 %vm6821_vm0, %v8686_v17 }
 0xbcd   :  { %v2343_v0 = vmax.f32 %v2334_v63, 0.0 }
 0xbcf   :  { %6200 = vmatmul.mubr.msk.f32.gmra.mxu1 %vm241_vm10, %v2343_v0 }
 0xbd0   :  { %6254 = vmatprep.mubr.msk.f32.mxu1 %vm6821_vm0, %v8686_v17 }
 0xc77   :  { %v2439_v15 = vpop.f32.mrf.mxu1 }
 0xc78   :  { %v8102_v51 = vadd.f32 %v2439_v15, %v2351_v28 }
 0xc79   :  { %v6183_v42 = vpop.f32.mrf.mxu1 }
 0xc7b   :  { %v2444_v2 = vpop.f32.mrf.mxu1 }
 0xc7c   :  { %v2445_v34 = vadd.f32 %v2444_v2, %v2351_v28 }
 0xc7d   :  { %v6186_v33 = vpop.f32.mrf.mxu1 }
 0xc7e   :  { %2482 = vrot.lane.b32.xlu0 %v2445_v34, %s6823_s0  ;;  %v33_v33 = vld [vmem:[#allocation2 + $0x150] sm:$0xff] }
 0xc7f   :  { %v2449_v16 = vpop.f32.mrf.mxu1 }
 0xc80   :  { %v2450_v20 = vadd.f32 %v2449_v16, %v2351_v28  ;;  %v8698_v16 = vld [vmem:[#allocation7_spill] sm:$0xff] }
 0xc81   :  { %v6189_v36 = vpop.f32.mrf.mxu1 }
 0xc82   :  { %v2687_v36 = vrot.slane %v33_v33, %v8698_v16 }
 0xc83   :  { %v2454_v35 = vpop.f32.mrf.mxu1 }
 0xc84   :  { %v2455_v6 = vadd.f32 %v2454_v35, %v2351_v28  ;;  %v2671_v35 = vsub.s32 7, %v8691_v21 }
 0xc85   :  { %v6192_v47 = vpop.f32.mrf.mxu1 }
 0xc86   :  { %2486 = vrot.lane.b32.xlu1 %v2455_v6, %s6823_s0  ;;  %v2672_v6 = vrot.slane %v7912_v56, %v2671_v35  ;;  %v2706_v47 = vld [vmem:[#allocation2 + $0xa0] sm:$0xff] }
 0xc87   :  { %v2459_v37 = vpop.f32.mrf.mxu1  ;;  %6203 = vmatpush3.msra.mxu0 %v2706_v47 }
 0xc88   :  { %v8106_v52 = vadd.f32 %v2459_v37, %v2351_v28  ;;  %v2705_v37 = vld [vmem:[#allocation2 + $0x98] sm:$0xff]  ;;  %6204 = vmatprep.subr.mxu0 %v8686_v17 }
 0xc89   :  { %v6195_v11 = vpop.f32.mrf.mxu1  ;;  %6205 = vmatpush3.msra.mxu0 %v2705_v37 }
 0xc8a   :  { %v2704_v11 = vld [vmem:[#allocation2 + $0x90] sm:$0xff]  ;;  %6206 = vmatprep.subr.mxu0 %v8686_v17 }
 0xc8b   :  { %v2464_v9 = vpop.f32.mrf.mxu1  ;;  %6207 = vmatpush3.msra.mxu0 %v2704_v11 }
 0xc8c   :  { %v2465_v23 = vadd.f32 %v2464_v9, %v2351_v28  ;;  %v2703_v9 = vld [vmem:[#allocation2 + $0x88] sm:$0xff]  ;;  %6208 = vmatprep.subr.mxu0 %v8686_v17 }
 0xc8d   :  { %v6198_v19 = vpop.f32.mrf.mxu1  ;;  %6209 = vmatpush3.msra.mxu0 %v2703_v9 }
 0xc8e   :  { %2490 = vrot.lane.b32.xlu0 %v2465_v23, %s6823_s0  ;;  %6213 = vmatprep.subr.mxu0 %v8686_v17 }
 0xc8f   :  { %v2469_v54 = vpop.f32.mrf.mxu1 }
 0xc90   :  { %v2470_v26 = vadd.f32 %v2469_v54, %v2351_v28 }
 0xc91   :  { %v6201_v29 = vpop.f32.mrf.mxu1 }
 0xc92   :  { %2484 = vrot.lane.b32.xlu0 %v2450_v20, %s6823_s0  ;;  %2492 = vrot.lane.b32.xlu1 %v2470_v26, %s6823_s0 }
 0xcf0   :  { %v2483_v24 = vpop.permute.xlu0 %2482 }
 0xcf1   :  { %v8112_v53 = vadd.f32 %v2483_v24, %v8018_v31 }
 0xcf3   :  { %v2565_v43 = vmul.f32 %v8112_v53, %v8112_v53  ;;  %2517 = vrot.lane.b32.xlu1 %v8112_v53, %s6822_s23 }
 0xcf5   :  { %2580 = vrot.lane.b32.xlu0 %v2565_v43, %s6822_s23 }
 0xcf8   :  { %v2487_v39 = vpop.permute.xlu1 %2486 }
 0xcf9   :  { %v8120_v38 = vadd.f32 %v2487_v39, %v8026_v49 }
 0xcfb   :  { %v2567_v57 = vmul.f32 %v8120_v38, %v8120_v38  ;;  %2521 = vrot.lane.b32.xlu1 %v8120_v38, %s6822_s23 }
 0xcfd   :  { %2584 = vrot.lane.b32.xlu0 %v2567_v57, %s6822_s23 }
 0xd00   :  { %v2491_v31 = vpop.permute.xlu0 %2490 }
 0xd01   :  { %v8128_v40 = vadd.f32 %v2491_v31, %v8034_v12 }
 0xd03   :  { %v2569_v50 = vmul.f32 %v8128_v40, %v8128_v40  ;;  %2525 = vrot.lane.b32.xlu1 %v8128_v40, %s6822_s23 }
 0xd04   :  { %v2485_v49 = vpop.permute.xlu0 %2484  ;;  %v2493_v22 = vpop.permute.xlu1 %2492 }
 0xd05   :  { %v8135_v4 = vadd.f32 %v2485_v49, %v8028_v46  ;;  %v8138_v7 = vadd.f32 %v2493_v22, %v8046_v32  ;;  %2588 = vrot.lane.b32.xlu0 %v2569_v50, %s6822_s23 }
 0xd07   :  { %v2566_v12 = vmul.f32 %v8135_v4, %v8135_v4  ;;  %2527 = vrot.lane.b32.xlu1 %v8138_v7, %s6822_s23  ;;  %v2570_v59 = vmul.f32 %v8138_v7, %v8138_v7 }
 0xd09   :  { %2582 = vrot.lane.b32.xlu0 %v2566_v12, %s6822_s23 }
 0xd0b   :  { %2519 = vrot.lane.b32.xlu1 %v8135_v4, %s6822_s23 }
 0xd0d   :  { %2590 = vrot.lane.b32.xlu0 %v2570_v59, %s6822_s23 }
 0xd65   :  { %v2518_v46 = vpop.permute.xlu1 %2517 }
 0xd66   :  { %v2539_v32 = vsel %vm241_vm10, %v2518_v46, 0.0 }
 0xd67   :  { %v2581_v48 = vpop.permute.xlu0 %2580  ;;  %2540 = vadd.xlane.f32.xlu1 %v2539_v32 }
 0xd68   :  { %v2602_v10 = vsel %vm241_vm10, %v2581_v48, 0.0 }
 0xd69   :  { %2603 = vadd.xlane.f32.xlu0 %v2602_v10 }
 0xd6d   :  { %v2522_v61 = vpop.permute.xlu1 %2521 }
 0xd6e   :  { %v2545_v0 = vsel %vm241_vm10, %v2522_v61, 0.0 }
 0xd6f   :  { %v2585_v30 = vpop.permute.xlu0 %2584 }
 0xd70   :  { %v2608_v41 = vsel %vm241_vm10, %v2585_v30, 0.0 }
 0xd75   :  { %v2526_v62 = vpop.permute.xlu1 %2525 }
 0xd76   :  { %v2551_v42 = vsel %vm241_vm10, %v2526_v62, 0.0 }
 0xd77   :  { %v2589_v60 = vpop.permute.xlu0 %2588 }
 0xd78   :  { %v2614_v28 = vsel %vm241_vm10, %v2589_v60, 0.0 }
 0xd79   :  { %v2528_v3 = vpop.permute.xlu1 %2527 }
 0xd7a   :  { %v2554_v34 = vsel %vm241_vm10, %v2528_v3, 0.0 }
 0xd7b   :  { %v2583_v45 = vpop.permute.xlu0 %2582 }
 0xd7c   :  { %v2605_v13 = vsel %vm241_vm10, %v2583_v45, 0.0 }
 0xd7d   :  { %2606 = vadd.xlane.f32.xlu1 %v2605_v13  ;;  %v2520_v25 = vpop.permute.xlu1 %2519 }
 0xd7e   :  { %v2542_v63 = vsel %vm241_vm10, %v2520_v25, 0.0 }
 0xd7f   :  { %2543 = vadd.xlane.f32.xlu0 %v2542_v63  ;;  %v2591_v15 = vpop.permute.xlu0 %2590 }
 0xd80   :  { %v2617_v2 = vsel %vm241_vm10, %v2591_v15, 0.0 }
 0xd81   :  { %2609 = vadd.xlane.f32.xlu1 %v2608_v41 }
 0xd83   :  { %2546 = vadd.xlane.f32.xlu0 %v2545_v0 }
 0xd85   :  { %2615 = vadd.xlane.f32.xlu1 %v2614_v28 }
 0xd87   :  { %2552 = vadd.xlane.f32.xlu0 %v2551_v42 }
 0xd89   :  { %2618 = vadd.xlane.f32.xlu1 %v2617_v2 }
 0xd8b   :  { %2555 = vadd.xlane.f32.xlu0 %v2554_v34 }
 0xd9a   :  { %2689 = vrot.lane.b32.xlu1 %v2687_v36, %s6823_s0 }
 0xda1   :  { %2674 = vrot.lane.b32.xlu0 %v2672_v6, %s6823_s0 }
 0xdf0   :  { %v2541_v23 = vpop.xlane.xlu1 %2540 }
 0xdf1   :  { %v2558_v56 = vmul.f32 0.03125, %v2541_v23 }
 0xdf2   :  { %v2604_v19 = vpop.xlane.xlu0 %2603 }
 0xdf3   :  { %v2628_v54 = vmul.f32 %v2558_v56, %v2558_v56  ;;  %v2621_v20 = vmul.f32 0.03125, %v2604_v19  ;;  %v2642_v13 = vsub.f32 %v8112_v53, %v2558_v56 }
 0xdf5   :  { %v2635_v26 = vsub.f32 %v2621_v20, %v2628_v54 }
 0xdf7   :  { %v2649_v29 = vadd.f32 1e-05, %v2635_v26 }
 0xdf9   :  { %6734 = vrsqrt.f32 %v2649_v29 }
 0xe06   :  { %v2607_v24 = vpop.xlane.xlu1 %2606  ;;  %v6735_v30 = vpop.eup %6734 }
 0xe07   :  { %v2622_v49 = vmul.f32 0.03125, %v2607_v24  ;;  %v2663_v28 = vmul.f32 %v6735_v30, %v2642_v13  ;;  %v2869_v30 = vld [vmem:[#allocation2 + $0x108] sm:$0xff] }
 0xe08   :  { %v2544_v43 = vpop.xlane.xlu0 %2543  ;;  %v2948_v13 = vld [vmem:[#allocation2 + $0x128] sm:$0xff] }
 0xe09   :  { %v2559_v39 = vmul.f32 0.03125, %v2544_v43 }
 0xe0a   :  { %v2610_v57 = vpop.xlane.xlu1 %2609 }
 0xe0b   :  { %v2629_v31 = vmul.f32 %v2559_v39, %v2559_v39  ;;  %v2623_v46 = vmul.f32 0.03125, %v2610_v57  ;;  %v2643_v56 = vsub.f32 %v8135_v4, %v2559_v39 }
 0xe0c   :  { %v2547_v50 = vpop.xlane.xlu0 %2546 }
 0xe0d   :  { %v2560_v22 = vmul.f32 0.03125, %v2547_v50  ;;  %v2636_v59 = vsub.f32 %v2622_v49, %v2629_v31 }
 0xe0e   :  { %v2616_v12 = vpop.xlane.xlu1 %2615 }
 0xe0f   :  { %v2630_v32 = vmul.f32 %v2560_v22, %v2560_v22  ;;  %v2650_v62 = vadd.f32 1e-05, %v2636_v59  ;;  %v2625_v3 = vmul.f32 0.03125, %v2616_v12  ;;  %v2644_v37 = vsub.f32 %v8120_v38, %v2560_v22  ;;  %v2788_v12 = vld [vmem:[#allocation2 + $0xd8] sm:$0xff]  ;;  %v2787_v59 = vld [vmem:[#allocation2 + $0xd0] sm:$0xff] }
 0xe10   :  { %v2553_v48 = vpop.xlane.xlu0 %2552 }
 0xe11   :  { %v2637_v10 = vsub.f32 %v2623_v46, %v2630_v32  ;;  %v2562_v61 = vmul.f32 0.03125, %v2553_v48  ;;  %v2786_v46 = vld [vmem:[#allocation2 + $0xc8] sm:$0xff]  ;;  %v2872_v32 = vld [vmem:[#allocation2 + $0x120] sm:$0xff] }
 0xe12   :  { %v2619_v25 = vpop.xlane.xlu1 %2618 }
 0xe13   :  { %v2651_v60 = vadd.f32 1e-05, %v2637_v10  ;;  %v2632_v45 = vmul.f32 %v2562_v61, %v2562_v61  ;;  %v2626_v42 = vmul.f32 0.03125, %v2619_v25  ;;  %v2646_v19 = vsub.f32 %v8128_v40, %v2562_v61  ;;  %v2871_v10 = vld [vmem:[#allocation2 + $0x118] sm:$0xff]  ;;  %v2870_v61 = vld [vmem:[#allocation2 + $0x110] sm:$0xff]  ;;  %v2785_v25 = vld [vmem:[#allocation2 + $0xc0] sm:$0xff] }
 0xe14   :  { %v2556_v63 = vpop.xlane.xlu0 %2555 }
 0xe15   :  { %6736 = vrsqrt.f32 %v2651_v60  ;;  %v2639_v41 = vsub.f32 %v2625_v3, %v2632_v45  ;;  %v2563_v0 = vmul.f32 0.03125, %v2556_v63  ;;  %v2950_v3 = vld [vmem:[#allocation2 + $0x138] sm:$0xff]  ;;  %v2949_v45 = vld [vmem:[#allocation2 + $0x130] sm:$0xff] }
 0xe16   :  { %6738 = vrsqrt.f32 %v2650_v62  ;;  %v8175_v33 = vpop.permute.xlu1 %2689  ;;  %v2951_v62 = vld [vmem:[#allocation2 + $0x140] sm:$0xff] }
 0xe17   :  { %v2653_v15 = vadd.f32 1e-05, %v2639_v41  ;;  %v2633_v2 = vmul.f32 %v2563_v0, %v2563_v0  ;;  %v2647_v43 = vsub.f32 %v8138_v7, %v2563_v0  ;;  %v2789_v7 = vld [vmem:[#allocation2 + $0xe0] sm:$0xff]  ;;  %v2784_v41 = vld [vmem:[#allocation2 + $0xb8] sm:$0xff]  ;;  %v2783_v0 = vld [vmem:[#allocation2 + $0xb0] sm:$0xff] }
 0xe18   :  { %v8173_v34 = vpop.permute.xlu0 %2674 }
 0xe19   :  { %6740 = vrsqrt.f32 %v2653_v15  ;;  %v2640_v36 = vsub.f32 %v2626_v42, %v2633_v2  ;;  %v2678_v6 = vmul.f32 %v8173_v34, %v2663_v28  ;;  %v2782_v28 = vld [vmem:[#allocation2 + $0xa8] sm:$0xff]  ;;  %v3265_v15 = vld [vmem:[#allocation2 + $0x158] sm:$0xf]  ;;  %v3263_v42 = vld [vmem:[%s8634_s1] sm:$0xff] }
 0xe1b   :  { %v2654_v47 = vadd.f32 1e-05, %v2640_v36  ;;  %v2693_v53 = vadd.f32 %v8175_v33, %v2678_v6  ;;  %v3264_v36 = vld [vmem:[%s8634_s1 + $0x8] sm:$0xff] }
 0xe1d   :  { %6742 = vrsqrt.f32 %v2654_v47  ;;  %2708 = vrot.lane.b32.xlu1 %v2693_v53, %s6822_s23 }
 0xe22   :  { %v6737_v11 = vpop.eup %6736 }
 0xe23   :  { %v2665_v9 = vmul.f32 %v6737_v11, %v2644_v37  ;;  %v6739_v23 = vpop.eup %6738 }
 0xe24   :  { %v2664_v26 = vmul.f32 %v6739_v23, %v2643_v56 }
 0xe25   :  { %v2680_v54 = vmul.f32 %v8173_v34, %v2665_v9 }
 0xe26   :  { %v6741_v20 = vpop.eup %6740  ;;  %v2679_v4 = vmul.f32 %v8173_v34, %v2664_v26 }
 0xe27   :  { %v2667_v29 = vmul.f32 %v6741_v20, %v2646_v19  ;;  %v2695_v24 = vadd.f32 %v8175_v33, %v2680_v54  ;;  %v8236_v19 = vld [vmem:[#allocation2 + $0x200] sm:$0xff] }
 0xe28   :  { %v2694_v49 = vadd.f32 %v8175_v33, %v2679_v4  ;;  %v3269_v26 = vrot.slane %v8236_v19, %v8698_v16 }
 0xe29   :  { %2791 = vrot.lane.b32.xlu0 %v2695_v24, %s6822_s23  ;;  %v2682_v38 = vmul.f32 %v8173_v34, %v2667_v29 }
 0xe2a   :  { %v6743_v57 = vpop.eup %6742 }
 0xe2b   :  { %v2668_v31 = vmul.f32 %v6743_v57, %v2647_v43  ;;  %v2697_v50 = vadd.f32 %v8175_v33, %v2682_v38 }
 0xe2d   :  { %2874 = vrot.lane.b32.xlu1 %v2697_v50, %s6822_s23  ;;  %v2683_v40 = vmul.f32 %v8173_v34, %v2668_v31  ;;  %v8699_v31 = vld [vmem:[#allocation9_spill] sm:$0xff] }
 0xe2f   :  { %v2698_v39 = vadd.f32 %v8175_v33, %v2683_v40 }
 0xe31   :  { %2953 = vrot.lane.b32.xlu0 %v2698_v39, %s6822_s23  ;;  %3103 = vrot.lane.b32.xlu1 %v2694_v49, %s6822_s23 }
 0xe8f   :  { %v2709_v22 = vpop.permute.xlu1 %2708 }
 0xe90   :  { %6211 = vmatmul.mubr.msk.f32.vlgmr.msra.gmra.mxu0 %vm241_vm10, %v2709_v22 }
 0xe91   :  { %6214 = vmatpush3.msra.mxu0 %v2789_v7  ;;  %6221 = vmatprep.mubr.msk.f32.mxu0 %vm6821_vm0, %v8686_v17 }
 0xe92   :  { %6215 = vmatprep.subr.mxu0 %v8686_v17 }
 0xe93   :  { %6216 = vmatpush3.msra.mxu0 %v2788_v12 }
 0xe94   :  { %6217 = vmatprep.subr.mxu0 %v8686_v17 }
 0xe95   :  { %6218 = vmatpush3.msra.mxu0 %v2787_v59 }
 0xe96   :  { %6219 = vmatprep.subr.mxu0 %v8686_v17 }
 0xe97   :  { %6220 = vmatpush3.msra.mxu0 %v2786_v46 }
 0xe98   :  { %6224 = vmatprep.subr.mxu0 %v8686_v17 }
 0xe9b   :  { %v2792_v48 = vpop.permute.xlu0 %2791 }
 0xe9c   :  { %6222 = vmatmul.mubr.msk.f32.vlgmr.msra.gmra.mxu0 %vm241_vm10, %v2792_v48  ;;  %v8700_v48 = vld [vmem:[#allocation20_spill] sm:$0xff] }
 0xe9d   :  { %6225 = vmatpush3.msra.mxu0 %v2872_v32  ;;  %6232 = vmatprep.mubr.msk.f32.mxu0 %vm6821_vm0, %v8686_v17 }
 0xe9e   :  { %6226 = vmatprep.subr.mxu0 %v8686_v17 }
 0xe9f   :  { %6227 = vmatpush3.msra.mxu0 %v2871_v10  ;;  %v2875_v60 = vpop.permute.xlu1 %2874 }
 0xea0   :  { %6228 = vmatprep.subr.mxu0 %v8686_v17 }
 0xea1   :  { %6229 = vmatpush3.msra.mxu0 %v2870_v61 }
 0xea2   :  { %6230 = vmatprep.subr.mxu0 %v8686_v17 }
 0xea3   :  { %6231 = vmatpush3.msra.mxu0 %v2869_v30  ;;  %v2954_v63 = vpop.permute.xlu0 %2953  ;;  %v3104_v2 = vpop.permute.xlu1 %3103 }
 0xea4   :  { %6233 = vmatmul.mubr.msk.f32.vlgmr.msra.gmra.mxu0 %vm241_vm10, %v2875_v60  ;;  %6235 = vmatprep.subr.mxu0 %v8686_v17 }
 0xea5   :  { %6236 = vmatpush3.msra.mxu0 %v2951_v62  ;;  %6243 = vmatprep.mubr.msk.f32.mxu0 %vm6821_vm0, %v8686_v17  ;;  %v8701_v62 = vld [vmem:[#allocation19_spill] sm:$0xff] }
 0xea6   :  { %6237 = vmatprep.subr.mxu0 %v8686_v17 }
 0xea7   :  { %6238 = vmatpush3.msra.mxu0 %v2950_v3 }
 0xea8   :  { %6239 = vmatprep.subr.mxu0 %v8686_v17 }
 0xea9   :  { %6240 = vmatpush3.msra.mxu0 %v2949_v45 }
 0xeaa   :  { %6241 = vmatprep.subr.mxu0 %v8686_v17 }
 0xeab   :  { %6242 = vmatpush3.msra.mxu0 %v2948_v13 }
 0xeac   :  { %6244 = vmatmul.mubr.msk.f32.vlgmr.msra.gmra.mxu0 %vm241_vm10, %v2954_v63  ;;  %6257 = vmatprep.subr.mxu0 %v8686_v17 }
 0xead   :  { %6258 = vmatpush3.msra.mxu0 %v2785_v25  ;;  %6265 = vmatprep.mubr.msk.f32.mxu0 %vm6821_vm0, %v8686_v17 }
 0xeae   :  { %6259 = vmatprep.subr.mxu0 %v8686_v17 }
 0xeaf   :  { %6260 = vmatpush3.msra.mxu0 %v2784_v41 }
 0xeb0   :  { %6261 = vmatprep.subr.mxu0 %v8686_v17 }
 0xeb1   :  { %6262 = vmatpush3.msra.mxu0 %v2783_v0 }
 0xeb2   :  { %6263 = vmatprep.subr.mxu0 %v8686_v17 }
 0xeb3   :  { %6264 = vmatpush3.msra.mxu0 %v2782_v28  ;;  %v8702_v28 = vld [vmem:[#allocation15_spill] sm:$0xff] }
 0xeb4   :  { %6266 = vmatmul.mubr.msk.f32.vlgmr.msra.gmra.mxu0 %vm241_vm10, %v3104_v2  ;;  %6279 = vmatprep.subr.msk.mxu0 %vm3277_vm7, %v3265_v15 }
 0xeb5   :  { %6280 = vmatpush3.msk.msra.mxu0 %vm3277_vm7, %v3265_v15  ;;  %6281 = vmatprep.mubr.msk.f32.mxu0 %vm3270_vm8, %v3263_v42  ;;  %v8703_v42 = vld [vmem:[#allocation16_spill] sm:$0xff] }
 0xeb8   :  { %6282 = vmatmul.mubr.msk.f32.vlgmr.msra.gmra.mxu0 %vm3270_vm8, %v3264_v36  ;;  %v8704_v36 = vld [vmem:[#allocation17_spill] sm:$0xff] }
 0xf50   :  { %v8230_v6 = vpop.f32.mrf.mxu0 }
 0xf52   :  { %v6212_v47 = vpop.f32.mrf.mxu0 }
 0xf5c   :  { %v2861_v53 = vpop.f32.mrf.mxu0 }
 0xf5e   :  { %v6223_v37 = vpop.f32.mrf.mxu0 }
 0xf5f   :  { %v2701_v37 = vld [vmem:[#allocation2 + $0x78] sm:$0xff] }
 0xf64   :  { %v8232_v11 = vpop.f32.mrf.mxu0 }
 0xf66   :  { %v6234_v9 = vpop.f32.mrf.mxu0 }
 0xf67   :  { %v2700_v9 = vld [vmem:[#allocation2 + $0x70] sm:$0xff] }
 0xf6c   :  { %v8234_v23 = vpop.f32.mrf.mxu0 }
 0xf6e   :  { %v6245_v56 = vpop.f32.mrf.mxu0 }
 0xf6f   :  { %v2699_v56 = vld [vmem:[#allocation2 + $0x68] sm:$0xff] }
 0xf74   :  { %v3173_v54 = vpop.f32.mrf.mxu0 }
 0xf75   :  { %v8238_v20 = vadd.f32 %v3173_v54, %v2861_v53  ;;  %v2702_v53 = vld [vmem:[#allocation2 + $0x80] sm:$0xff] }
 0xf76   :  { %v6267_v29 = vpop.f32.mrf.mxu0  ;;  %6247 = vmatpush3.msra.mxu1 %v2702_v53 }
 0xf77   :  { %6248 = vmatprep.subr.mxu1 %v8686_v17 }
 0xf78   :  { %v6283_v24 = vpop.f32.mrf.mxu0  ;;  %6249 = vmatpush3.msra.mxu1 %v2701_v37 }
 0xf79   :  { %v8242_v43 = vadd.f32 %v6283_v24, %v3269_v26  ;;  %6250 = vmatprep.subr.mxu1 %v8686_v17 }
 0xf7a   :  { %v3347_v38 = vpop.f32.mrf.mxu0  ;;  %6251 = vmatpush3.msra.mxu1 %v2700_v9 }
 0xf7b   :  { %v8244_v57 = vadd.f32 %v3347_v38, %v3269_v26  ;;  %v3479_v50 = vmul.f32 %v8242_v43, %v8699_v31  ;;  %v3357_v15 = vmul.f32 %v8702_v28, %v8242_v43  ;;  %v3592_v2 = vmul.f32 %v8242_v43, %v8703_v42  ;;  %6252 = vmatprep.subr.mxu1 %v8686_v17 }
 0xf7c   :  { %v3798_v47 = vmul.f32 %v8704_v36, %v8242_v43  ;;  %6253 = vmatpush3.msra.mxu1 %v2699_v56  ;;  %v2867_v56 = vld [vmem:[#allocation2 + $0xf8] sm:$0xff] }
 0xf7d   :  { %3484 = vrot.lane.b32.xlu0 %v3479_v50, %s6823_s0  ;;  %6295 = vmatprep.mubr.msk.f32.mxu0 %vm241_vm10, %v8244_v57  ;;  %v3478_v4 = vmul.f32 %v8244_v57, %v8699_v31 }
 0xf7e   :  { %6268 = vmatprep.subr.mxu1 %v8686_v17 }
 0xf7f   :  { %3482 = vrot.lane.b32.xlu1 %v3478_v4, %s6823_s0 }
 0xf81   :  { %2480 = vrot.lane.b32.xlu0 %v8102_v51, %s6823_s0 }
 0xf83   :  { %2488 = vrot.lane.b32.xlu1 %v8106_v52, %s6823_s0 }
 0xfef   :  { %v3485_v40 = vpop.permute.xlu0 %3484 }
 0xff0   :  { %6291 = vmatprep.subr.msk.mxu0 %vm241_vm10, %v3485_v40 }
 0xff1   :  { %6292 = vmatpush3.xpose.msk.msra.mxu0 %vm241_vm10, %v3485_v40  ;;  %v3483_v39 = vpop.permute.xlu1 %3482 }
 0xff2   :  { %6293 = vmatprep.subr.msk.mxu0 %vm241_vm10, %v3483_v39 }
 0xff3   :  { %v2481_v49 = vpop.permute.xlu0 %2480 }
 0xff4   :  { %v8262_v7 = vadd.f32 %v2481_v49, %v8020_v18 }
 0xff5   :  { %6294 = vmatpush3.xpose.msk.msra.mxu0 %vm241_vm10, %v3483_v39  ;;  %v2489_v22 = vpop.permute.xlu1 %2488 }
 0xff6   :  { %v2564_v51 = vmul.f32 %v8262_v7, %v8262_v7  ;;  %v8268_v52 = vadd.f32 %v2489_v22, %v8036_v8  ;;  %2515 = vrot.lane.b32.xlu0 %v8262_v7, %s6822_s23 }
 0xff8   :  { %2578 = vrot.lane.b32.xlu1 %v2564_v51, %s6822_s23  ;;  %6296 = vmatmul.mubr.msk.f32.vlgmr.msra.gmra.mxu0 %vm241_vm10, %v8242_v43  ;;  %v2568_v18 = vmul.f32 %v8268_v52, %v8268_v52 }
 0xff9   :  { %6309 = vmatprep.mubr.msk.f32.mxu0 %vm241_vm10, %v8244_v57 }
 0xffa   :  { %2523 = vrot.lane.b32.xlu0 %v8268_v52, %s6822_s23 }
 0xffc   :  { %2586 = vrot.lane.b32.xlu1 %v2568_v18, %s6822_s23 }
0x1068   :  { %v2516_v8 = vpop.permute.xlu0 %2515 }
0x1069   :  { %v2536_v12 = vsel %vm241_vm10, %v2516_v8, 0.0 }
0x106a   :  { %2537 = vadd.xlane.f32.xlu0 %v2536_v12  ;;  %v2579_v30 = vpop.permute.xlu1 %2578 }
0x106b   :  { %v2599_v25 = vsel %vm241_vm10, %v2579_v30, 0.0 }
0x106c   :  { %v2524_v13 = vpop.permute.xlu0 %2523 }
0x106d   :  { %v2548_v41 = vsel %vm241_vm10, %v2524_v13, 0.0 }
0x106e   :  { %v2587_v63 = vpop.permute.xlu1 %2586 }
0x106f   :  { %v2611_v0 = vsel %vm241_vm10, %v2587_v63, 0.0 }
0x10b8   :  { %v6297_v59 = vpop.f32.mrf.mxu0 }
0x10b9   :  { %v3566_v46 = vmul.f32 0.35355338, %v6297_v59 }
0x10ba   :  { %v3556_v32 = vpop.f32.mrf.mxu0 }
0x10bb   :  { %v3568_v10 = vadd.f32 %v3566_v46, %v8700_v48  ;;  %v3565_v61 = vmul.f32 0.35355338, %v3556_v32 }
0x10bd   :  { %v8285_v60 = vadd.f32 %v3565_v61, %v8701_v62  ;;  %v3572_v3 = vsel %vm3453_vm9, %v3568_v10, -inf }
0x10be   :  { %3573 = vmax.xlane.f32.xlu0 %v3572_v3 }
0x10bf   :  { %v3569_v45 = vsel %vm3453_vm9, %v8285_v60, -inf }
0x10c0   :  { %3570 = vmax.xlane.f32.xlu1 %v3569_v45 }
0x10c2   :  { %2600 = vadd.xlane.f32.xlu0 %v2599_v25 }
0x10c4   :  { %2549 = vadd.xlane.f32.xlu1 %v2548_v41 }
0x10c6   :  { %2612 = vadd.xlane.f32.xlu0 %v2611_v0 }
0x10dc   :  { %3362 = vrot.lane.b32.xlu0 %v3357_v15, %s6823_s0 }
0x10e0   :  { %3597 = vrot.lane.b32.xlu0 %v3592_v2, %s6824_s10  ;;  %v3591_v2 = vmul.f32 %v8244_v57, %v8703_v42 }
0x10e4   :  { %3803 = vrot.lane.b32.xlu0 %v3798_v47, %s6823_s0 }
0x10f3   :  { %v2538_v54 = vpop.xlane.xlu0 %2537 }
0x10f4   :  { %v2557_v29 = vmul.f32 0.03125, %v2538_v54 }
0x10f6   :  { %v2627_v4 = vmul.f32 %v2557_v29, %v2557_v29  ;;  %v2641_v61 = vsub.f32 %v8262_v7, %v2557_v29  ;;  %v3356_v7 = vmul.f32 %v8702_v28, %v8244_v57 }
0x1147   :  { %v3574_v26 = vpop.xlane.xlu0 %3573 }
0x1148   :  { %v3576_v24 = vsub.f32 %v3568_v10, %v3574_v26  ;;  %v2865_v26 = vld [vmem:[#allocation2 + $0xe8] sm:$0xff] }
0x1149   :  { %v3571_v38 = vpop.xlane.xlu1 %3570 }
0x114a   :  { %v3579_v31 = vmul.f32 1.442695, %v3576_v24  ;;  %v3575_v47 = vsub.f32 %v8285_v60, %v3571_v38  ;;  %v2866_v60 = vld [vmem:[#allocation2 + $0xf0] sm:$0xff] }
0x114b   :  { %v2601_v50 = vpop.xlane.xlu0 %2600 }
0x114c   :  { %6744 = vpow2.f32 %v3579_v31  ;;  %v2620_v40 = vmul.f32 0.03125, %v2601_v50  ;;  %v3577_v28 = vmul.f32 1.442695, %v3575_v47 }
0x114d   :  { %v2550_v39 = vpop.xlane.xlu1 %2549 }
0x114e   :  { %v2634_v49 = vsub.f32 %v2620_v40, %v2627_v4  ;;  %v2561_v22 = vmul.f32 0.03125, %v2550_v39 }
0x114f   :  { %v2613_v51 = vpop.xlane.xlu0 %2612 }
0x1150   :  { %v2648_v18 = vadd.f32 1e-05, %v2634_v49  ;;  %v2631_v8 = vmul.f32 %v2561_v22, %v2561_v22  ;;  %v2624_v12 = vmul.f32 0.03125, %v2613_v51  ;;  %v2645_v45 = vsub.f32 %v8268_v52, %v2561_v22 }
0x1151   :  { %v3797_v52 = vmul.f32 %v8704_v36, %v8244_v57  ;;  %v2868_v36 = vld [vmem:[#allocation2 + $0x100] sm:$0xff] }
0x1152   :  { %6746 = vrsqrt.f32 %v2648_v18  ;;  %v2638_v59 = vsub.f32 %v2624_v12, %v2631_v8 }
0x1153   :  { %v3363_v29 = vpop.permute.xlu0 %3362 }
0x1154   :  { %v2652_v46 = vadd.f32 1e-05, %v2638_v59 }
0x1156   :  { %6748 = vrsqrt.f32 %v2652_v46 }
0x1157   :  { %6750 = vpow2.f32 %v3577_v28  ;;  %v3598_v31 = vpop.permute.xlu0 %3597 }
0x1159   :  { %v8306_v32 = vpop.eup %6744 }
0x115a   :  { %v3584_v10 = vsel %vm3453_vm9, %v8306_v32, 0.0 }
0x115b   :  { %3585 = vadd.xlane.f32.xlu0 %v3584_v10  ;;  %v3804_v4 = vpop.permute.xlu0 %3803 }
0x115f   :  { %v6747_v30 = vpop.eup %6746 }
0x1160   :  { %v2662_v3 = vmul.f32 %v6747_v30, %v2641_v61 }
0x1162   :  { %v2677_v13 = vmul.f32 %v8173_v34, %v2662_v3 }
0x1163   :  { %v6749_v25 = vpop.eup %6748 }
0x1164   :  { %v2692_v63 = vadd.f32 %v8175_v33, %v2677_v13  ;;  %v2666_v41 = vmul.f32 %v6749_v25, %v2645_v45  ;;  %v6751_v53 = vpop.eup %6750 }
0x1165   :  { %v3581_v37 = vsel %vm3453_vm9, %v6751_v53, 0.0 }
0x1166   :  { %3028 = vrot.lane.b32.xlu1 %v2692_v63, %s6822_s23  ;;  %v2681_v0 = vmul.f32 %v8173_v34, %v2666_v41  ;;  %v8705_v34 = vld [vmem:[#allocation18_spill] sm:$0xff] }
0x1167   :  { %v3682_v42 = vmul.f32 %v8244_v57, %v8705_v34 }
0x1168   :  { %v2696_v15 = vadd.f32 %v8175_v33, %v2681_v0  ;;  %v3683_v33 = vmul.f32 %v8242_v43, %v8705_v34 }
0x116a   :  { %3178 = vrot.lane.b32.xlu1 %v2696_v15, %s6822_s23 }
0x116e   :  { %3360 = vrot.lane.b32.xlu1 %v3356_v7, %s6823_s0 }
0x1171   :  { %3801 = vrot.lane.b32.xlu0 %v3797_v52, %s6823_s0 }
0x1172   :  { %3595 = vrot.lane.b32.xlu1 %v3591_v2, %s6824_s10 }
0x1176   :  { %3688 = vrot.lane.b32.xlu1 %v3683_v33, %s6823_s0 }
0x119a   :  { %3582 = vadd.xlane.f32.xlu1 %v3581_v37 }
0x11ab   :  { %3686 = vrot.lane.b32.xlu1 %v3682_v42, %s6823_s0 }
0x11d8   :  { %v3029_v9 = vpop.permute.xlu1 %3028 }
0x11d9   :  { %6255 = vmatmul.mubr.msk.f32.vlgmr.msra.gmra.mxu1 %vm241_vm10, %v3029_v9 }
0x11da   :  { %6269 = vmatpush3.msra.mxu1 %v2868_v36  ;;  %6276 = vmatprep.mubr.msk.f32.mxu1 %vm6821_vm0, %v8686_v17 }
0x11db   :  { %6270 = vmatprep.subr.mxu1 %v8686_v17 }
0x11dc   :  { %6271 = vmatpush3.msra.mxu1 %v2867_v56  ;;  %v3179_v54 = vpop.permute.xlu1 %3178 }
0x11dd   :  { %6272 = vmatprep.subr.mxu1 %v8686_v17 }
0x11de   :  { %6273 = vmatpush3.msra.mxu1 %v2866_v60 }
0x11df   :  { %6274 = vmatprep.subr.mxu1 %v8686_v17 }
0x11e0   :  { %6275 = vmatpush3.msra.mxu1 %v2865_v26  ;;  %v3361_v24 = vpop.permute.xlu1 %3360 }
0x11e1   :  { %6277 = vmatmul.mubr.msk.f32.vlgmr.msra.gmra.mxu1 %vm241_vm10, %v3179_v54  ;;  %6284 = vmatprep.subr.msk.mxu1 %vm241_vm10, %v3363_v29 }
0x11e2   :  { %6285 = vmatpush3.xpose.msk.msra.mxu1 %vm241_vm10, %v3363_v29  ;;  %6288 = vmatprep.mubr.msk.f32.mxu1 %vm241_vm10, %v8244_v57 }
0x11e3   :  { %6286 = vmatprep.subr.msk.mxu1 %vm241_vm10, %v3361_v24 }
0x11e4   :  { %v3596_v38 = vpop.permute.xlu1 %3595  ;;  %v3586_v40 = vpop.xlane.xlu0 %3585 }
0x11e5   :  { %6752 = vrcp.f32 %v3586_v40 }
0x11e6   :  { %6287 = vmatpush3.xpose.msk.msra.mxu1 %vm241_vm10, %v3361_v24 }
0x11e7   :  { %6298 = vmatprep.subr.mxu1 %v3598_v31 }
0x11e8   :  { %v3689_v50 = vpop.permute.xlu1 %3688  ;;  %v3802_v12 = vpop.permute.xlu0 %3801 }
0x11e9   :  { %6289 = vmatmul.mubr.msk.f32.vlgmr.msra.gmra.mxu1 %vm241_vm10, %v8242_v43  ;;  %6305 = vmatprep.subr.msk.mxu0 %vm241_vm10, %v3689_v50 }
0x11ea   :  { %6299 = vmatpush3.msra.mxu1 %v3598_v31  ;;  %6306 = vmatpush3.xpose.msk.msra.mxu0 %vm241_vm10, %v3689_v50 }
0x11eb   :  { %6300 = vmatprep.subr.mxu1 %v3596_v38 }
0x11ec   :  { %6301 = vmatpush3.msra.mxu1 %v3596_v38 }
0x11ed   :  { %6312 = vmatprep.subr.msk.mxu1 %vm241_vm10, %v3804_v4 }
0x11f2   :  { %v6753_v22 = vpop.eup %6752 }
0x11f3   :  { %v3590_v8 = vmul.f32 %v6753_v22, %v8306_v32 }
0x1223   :  { %v3583_v39 = vpop.xlane.xlu1 %3582 }
0x1224   :  { %6754 = vrcp.f32 %v3583_v39 }
0x1227   :  { %v3687_v49 = vpop.permute.xlu1 %3686 }
0x1228   :  { %6307 = vmatprep.subr.msk.mxu0 %vm241_vm10, %v3687_v49 }
0x1229   :  { %6308 = vmatpush3.xpose.msk.msra.mxu0 %vm241_vm10, %v3687_v49 }
0x122c   :  { %6310 = vmatmul.mubr.msk.f32.vlgmr.msra.gmra.mxu0 %vm241_vm10, %v8242_v43 }
0x1231   :  { %v6755_v51 = vpop.eup %6754 }
0x1232   :  { %v3589_v18 = vmul.f32 %v6755_v51, %v6751_v53 }
0x1234   :  { %6302 = vmatprep.mubr.msk.f32.mxu1 %vm3453_vm9, %v3589_v18 }
0x1235   :  { %6303 = vmatmul.mubr.msk.f32.vlgmr.msra.gmra.mxu1 %vm3453_vm9, %v3590_v8 }
0x1236   :  { %6313 = vmatpush3.xpose.msk.msra.mxu1 %vm241_vm10, %v3804_v4  ;;  %6316 = vmatprep.mubr.msk.f32.mxu1 %vm241_vm10, %v8244_v57 }
0x1237   :  { %6314 = vmatprep.subr.msk.mxu1 %vm241_vm10, %v3802_v12 }
0x123a   :  { %6315 = vmatpush3.xpose.msk.msra.mxu1 %vm241_vm10, %v3802_v12 }
0x123d   :  { %6317 = vmatmul.mubr.msk.f32.vlgmr.msra.gmra.mxu1 %vm241_vm10, %v8242_v43 }
0x1299   :  { %v3098_v59 = vpop.f32.mrf.mxu1 }
0x129a   :  { %v3099_v46 = vadd.f32 %v3098_v59, %v8230_v6 }
0x129b   :  { %v6256_v32 = vpop.f32.mrf.mxu1 }
0x129c   :  { %v3252_v10 = vadd.f32 %v8238_v20, %v3099_v46 }
0x12a1   :  { %v3248_v61 = vpop.f32.mrf.mxu1 }
0x12a2   :  { %v3249_v30 = vadd.f32 %v3248_v61, %v8232_v11 }
0x12a3   :  { %v6278_v3 = vpop.f32.mrf.mxu1 }
0x12a4   :  { %v3253_v45 = vadd.f32 %v3249_v30, %v8234_v23 }
0x12a6   :  { %v8371_v13 = vadd.f32 %v3253_v45, %v3252_v10  ;;  %v8706_v45 = vld [vmem:[#allocation21_spill] sm:$0xff] }
0x12a9   :  { %v6290_v25 = vpop.f32.mrf.mxu1 }
0x12aa   :  { %v3450_v2 = vmul.f32 0.35355338, %v6290_v25  ;;  %v3911_v25 = vmul.f32 %v8706_v45, %v8242_v43 }
0x12ab   :  { %v3440_v63 = vpop.f32.mrf.mxu1 }
0x12ac   :  { %v3449_v41 = vmul.f32 0.35355338, %v3440_v63  ;;  %v3452_v53 = vadd.f32 %v3450_v2, %v8700_v48  ;;  %v3477_v63 = vmul.f32 %v7565_v5, %v8242_v43 }
0x12ae   :  { %v3451_v0 = vadd.f32 %v3449_v41, %v8701_v62  ;;  %v3457_v60 = vsel %vm3453_vm9, %v3452_v53, -inf  ;;  %v3796_v41 = vmul.f32 %v8242_v43, %v7509_v14 }
0x12b0   :  { %v3454_v15 = vsel %vm3453_vm9, %v3451_v0, -inf }
0x12b1   :  { %3455 = vmax.xlane.f32.xlu0 %v3454_v15 }
0x12ec   :  { %v6311_v7 = vpop.f32.mrf.mxu0 }
0x12ed   :  { %v3770_v36 = vmul.f32 0.35355338, %v6311_v7 }
0x12ee   :  { %v3760_v52 = vpop.f32.mrf.mxu0 }
0x12ef   :  { %v3769_v33 = vmul.f32 0.35355338, %v3760_v52  ;;  %v3772_v54 = vadd.f32 %v3770_v36, %v8700_v48 }
0x12f1   :  { %v3771_v9 = vadd.f32 %v3769_v33, %v8701_v62  ;;  %v3776_v29 = vsel %vm3453_vm9, %v3772_v54, -inf }
0x12f3   :  { %v3773_v26 = vsel %vm3453_vm9, %v3771_v9, -inf }
0x12f5   :  { %v8375_v6 = vpop.f32.mrf.mxu1 }
0x12f7   :  { %v8377_v20 = vpop.f32.mrf.mxu1 }
0x12fd   :  { %v6318_v11 = vpop.f32.mrf.mxu1 }
0x12fe   :  { %v3885_v34 = vmul.f32 0.35355338, %v6318_v11 }
0x12ff   :  { %v3875_v23 = vpop.f32.mrf.mxu1 }
0x1300   :  { %v3887_v47 = vadd.f32 %v3885_v34, %v8700_v48  ;;  %v3884_v28 = vmul.f32 0.35355338, %v3875_v23 }
0x1302   :  { %v3886_v37 = vadd.f32 %v3884_v28, %v8701_v62  ;;  %v3891_v42 = vsel %vm3453_vm9, %v3887_v47, -inf }
0x1303   :  { %3892 = vmax.xlane.f32.xlu1 %v3891_v42 }
0x1304   :  { %v3888_v56 = vsel %vm3453_vm9, %v3886_v37, -inf }
0x1305   :  { %3889 = vmax.xlane.f32.xlu0 %v3888_v56 }
0x1307   :  { %3458 = vmax.xlane.f32.xlu1 %v3457_v60 }
0x1309   :  { %3774 = vmax.xlane.f32.xlu0 %v3773_v26 }
0x130d   :  { %3777 = vmax.xlane.f32.xlu0 %v3776_v29 }
0x133a   :  { %v3456_v24 = vpop.xlane.xlu0 %3455 }
0x133b   :  { %v3460_v38 = vsub.f32 %v3451_v0, %v3456_v24  ;;  %v3910_v0 = vmul.f32 %v8706_v45, %v8244_v57 }
0x133d   :  { %v3462_v31 = vmul.f32 1.442695, %v3460_v38 }
0x133f   :  { %6756 = vpow2.f32 %v3462_v31 }
0x134c   :  { %v6757_v50 = vpop.eup %6756 }
0x134d   :  { %v3466_v62 = vsel %vm3453_vm9, %v6757_v50, 0.0 }
0x134e   :  { %3467 = vadd.xlane.f32.xlu1 %v3466_v62 }
0x138c   :  { %v3893_v4 = vpop.xlane.xlu1 %3892 }
0x138d   :  { %v3895_v15 = vsub.f32 %v3887_v47, %v3893_v4  ;;  %v3795_v47 = vmul.f32 %v8244_v57, %v7509_v14 }
0x138e   :  { %v3890_v40 = vpop.xlane.xlu0 %3889 }
0x138f   :  { %v3894_v7 = vsub.f32 %v3886_v37, %v3890_v40  ;;  %v3898_v52 = vmul.f32 1.442695, %v3895_v15  ;;  %v3476_v37 = vmul.f32 %v7565_v5, %v8244_v57 }
0x1390   :  { %v3459_v39 = vpop.xlane.xlu1 %3458 }
0x1391   :  { %v3461_v49 = vsub.f32 %v3452_v53, %v3459_v39  ;;  %v3896_v11 = vmul.f32 1.442695, %v3894_v7  ;;  %v4188_v7 = vrot.slane %v8236_v19, %v7910_v27 }
0x1392   :  { %v3775_v22 = vpop.xlane.xlu0 %3774 }
0x1393   :  { %v3464_v48 = vmul.f32 1.442695, %v3461_v49  ;;  %v3779_v51 = vsub.f32 %v3771_v9, %v3775_v22 }
0x1395   :  { %6758 = vpow2.f32 %v3464_v48  ;;  %v3781_v18 = vmul.f32 1.442695, %v3779_v51 }
0x1396   :  { %v3778_v8 = vpop.xlane.xlu0 %3777 }
0x1397   :  { %6760 = vpow2.f32 %v3781_v18  ;;  %v3780_v12 = vsub.f32 %v3772_v54, %v3778_v8  ;;  %v4184_v18 = vld [vmem:[#allocation2 + $0x178] sm:$0xff]  ;;  %v4183_v8 = vld [vmem:[#allocation2 + $0x170] sm:$0xff] }
0x1399   :  { %v3783_v59 = vmul.f32 1.442695, %v3780_v12  ;;  %v4182_v12 = vld [vmem:[#allocation2 + $0x168] sm:$0xff] }
0x139b   :  { %6762 = vpow2.f32 %v3783_v59  ;;  %v4181_v59 = vld [vmem:[#allocation2 + $0x160] sm:$0xff] }
0x139c   :  { %6764 = vpow2.f32 %v3898_v52 }
0x139d   :  { %6766 = vpow2.f32 %v3896_v11 }
0x13a2   :  { %v6759_v46 = vpop.eup %6758 }
0x13a3   :  { %v3469_v32 = vsel %vm3453_vm9, %v6759_v46, 0.0 }
0x13a4   :  { %v8391_v10 = vpop.eup %6760  ;;  %3470 = vadd.xlane.f32.xlu1 %v3469_v32 }
0x13a5   :  { %v3785_v61 = vsel %vm3453_vm9, %v8391_v10, 0.0 }
0x13a6   :  { %3786 = vadd.xlane.f32.xlu0 %v3785_v61 }
0x13a8   :  { %v8395_v30 = vpop.eup %6762 }
0x13a9   :  { %v3788_v3 = vsel %vm3453_vm9, %v8395_v30, 0.0  ;;  %v6765_v34 = vpop.eup %6764 }
0x13aa   :  { %3789 = vadd.xlane.f32.xlu0 %v3788_v3  ;;  %v6767_v23 = vpop.eup %6766  ;;  %v3903_v33 = vsel %vm3453_vm9, %v6765_v34, 0.0 }
0x13ab   :  { %v3900_v28 = vsel %vm3453_vm9, %v6767_v23, 0.0 }
0x13b5   :  { %3916 = vrot.lane.b32.xlu1 %v3911_v25, %s6824_s10 }
0x13b9   :  { %4005 = vrot.lane.b32.xlu1 %v3477_v63, %s6824_s10 }
0x13bd   :  { %4094 = vrot.lane.b32.xlu1 %v3796_v41, %s6824_s10 }
0x13c0   :  { %3914 = vrot.lane.b32.xlu0 %v3910_v0, %s6824_s10 }
0x13d7   :  { %v3468_v2 = vpop.xlane.xlu1 %3467 }
0x13d8   :  { %6768 = vrcp.f32 %v3468_v2 }
0x13df   :  { %3904 = vadd.xlane.f32.xlu0 %v3903_v33 }
0x13e1   :  { %3901 = vadd.xlane.f32.xlu1 %v3900_v28 }
0x13e5   :  { %v6769_v53 = vpop.eup %6768 }
0x13e6   :  { %v3474_v42 = vmul.f32 %v6769_v53, %v6757_v50 }
0x13e8   :  { %6330 = vmatprep.mubr.msk.f32.mxu1 %vm3453_vm9, %v3474_v42 }
0x13f2   :  { %4092 = vrot.lane.b32.xlu1 %v3795_v47, %s6824_s10 }
0x13f5   :  { %4003 = vrot.lane.b32.xlu0 %v3476_v37, %s6824_s10 }
0x142d   :  { %v3471_v36 = vpop.xlane.xlu1 %3470 }
0x142e   :  { %6770 = vrcp.f32 %v3471_v36 }
0x142f   :  { %v3787_v9 = vpop.xlane.xlu0 %3786 }
0x1430   :  { %6772 = vrcp.f32 %v3787_v9 }
0x1431   :  { %v3917_v56 = vpop.permute.xlu1 %3916 }
0x1432   :  { %6319 = vmatprep.subr.mxu0 %v3917_v56 }
0x1433   :  { %v3790_v60 = vpop.xlane.xlu0 %3789  ;;  %6320 = vmatpush3.msra.mxu0 %v3917_v56 }
0x1435   :  { %v4006_v54 = vpop.permute.xlu1 %4005 }
0x1436   :  { %6326 = vmatprep.subr.mxu1 %v4006_v54 }
0x1437   :  { %v3915_v26 = vpop.permute.xlu0 %3914  ;;  %6327 = vmatpush3.msra.mxu1 %v4006_v54  ;;  %v4339_v54 = vrot.slane %v8236_v19, %v2181_v44 }
0x1438   :  { %6321 = vmatprep.subr.mxu0 %v3915_v26 }
0x1439   :  { %6322 = vmatpush3.msra.mxu0 %v3915_v26  ;;  %v4095_v14 = vpop.permute.xlu1 %4094  ;;  %v4349_v26 = vld [vmem:[#allocation2 + $0x198] sm:$0xff] }
0x143a   :  { %6333 = vmatprep.subr.mxu0 %v4095_v14 }
0x143b   :  { %v6771_v5 = vpop.eup %6770 }
0x143c   :  { %v3475_v31 = vmul.f32 %v6771_v5, %v6759_v46 }
0x143d   :  { %v6773_v50 = vpop.eup %6772 }
0x143e   :  { %v3793_v22 = vmul.f32 %v6773_v50, %v8391_v10 }
0x1468   :  { %v3905_v29 = vpop.xlane.xlu0 %3904 }
0x1469   :  { %6774 = vrcp.f32 %v3905_v29 }
0x146a   :  { %v3902_v24 = vpop.xlane.xlu1 %3901 }
0x146b   :  { %6776 = vrcp.f32 %v3902_v24 }
0x146c   :  { %v4004_v38 = vpop.permute.xlu0 %4003  ;;  %6778 = vrcp.f32 %v3790_v60  ;;  %v4329_v60 = vrot.slane %v8236_v19, %v2166_v58 }
0x146d   :  { %6328 = vmatprep.subr.mxu1 %v4004_v38 }
0x146e   :  { %6329 = vmatpush3.msra.mxu1 %v4004_v38  ;;  %v4093_v48 = vpop.permute.xlu1 %4092 }
0x146f   :  { %6331 = vmatmul.mubr.msk.f32.vlgmr.msra.gmra.mxu1 %vm3453_vm9, %v3475_v31  ;;  %6340 = vmatprep.subr.mxu1 %v4184_v18 }
0x1470   :  { %6341 = vmatpush3.msra.mxu1 %v4184_v18 }
0x1471   :  { %6342 = vmatprep.subr.mxu1 %v4183_v8 }
0x1472   :  { %6343 = vmatpush3.msra.mxu1 %v4183_v8 }
0x1473   :  { %6344 = vmatprep.subr.mxu1 %v4182_v12 }
0x1474   :  { %6345 = vmatpush3.msra.mxu1 %v4182_v12 }
0x1475   :  { %6346 = vmatprep.subr.mxu1 %v4181_v59 }
0x1476   :  { %v6775_v62 = vpop.eup %6774  ;;  %6347 = vmatpush3.msra.mxu1 %v4181_v59 }
0x1477   :  { %v3909_v39 = vmul.f32 %v6775_v62, %v6765_v34 }
0x1478   :  { %v6777_v4 = vpop.eup %6776 }
0x1479   :  { %v3908_v40 = vmul.f32 %v6777_v4, %v6767_v23  ;;  %v6779_v49 = vpop.eup %6778 }
0x147a   :  { %v3794_v51 = vmul.f32 %v6779_v49, %v8395_v30 }
0x147b   :  { %6323 = vmatprep.mubr.msk.f32.mxu0 %vm3453_vm9, %v3908_v40 }
0x147c   :  { %6324 = vmatmul.mubr.msk.f32.vlgmr.msra.gmra.mxu0 %vm3453_vm9, %v3909_v39 }
0x147d   :  { %6334 = vmatpush3.msra.mxu0 %v4095_v14  ;;  %6337 = vmatprep.mubr.msk.f32.mxu0 %vm3453_vm9, %v3793_v22  ;;  %v4348_v14 = vld [vmem:[#allocation2 + $0x190] sm:$0xff] }
0x147e   :  { %6335 = vmatprep.subr.mxu0 %v4093_v48 }
0x147f   :  { %6336 = vmatpush3.msra.mxu0 %v4093_v48  ;;  %v4347_v48 = vld [vmem:[#allocation2 + $0x188] sm:$0xff] }
0x1480   :  { %6338 = vmatmul.mubr.msk.f32.vlgmr.msra.gmra.mxu0 %vm3453_vm9, %v3794_v51  ;;  %6351 = vmatprep.subr.mxu0 %v4349_v26  ;;  %v4346_v51 = vld [vmem:[#allocation2 + $0x180] sm:$0xff] }
0x1481   :  { %6352 = vmatpush3.msra.mxu0 %v4349_v26 }
0x1482   :  { %6353 = vmatprep.subr.mxu0 %v4348_v14 }
0x1483   :  { %6354 = vmatpush3.msra.mxu0 %v4348_v14 }
0x1484   :  { %6355 = vmatprep.subr.mxu0 %v4347_v48 }
0x1485   :  { %6356 = vmatpush3.msra.mxu0 %v4347_v48 }
0x1486   :  { %6357 = vmatprep.subr.mxu0 %v4346_v51 }
0x1487   :  { %6358 = vmatpush3.msra.mxu0 %v4346_v51 }
0x1488   :  { %6373 = vmatprep.subr.mxu0 %v8686_v17 }
0x152f   :  { %v6332_v46 = vpop.f32.mrf.mxu1 }
0x1530   :  { %v4087_v41 = vadd.f32 %v6332_v46, %v8375_v6 }
0x1531   :  { %v4081_v61 = vpop.f32.mrf.mxu1 }
0x1532   :  { %v4082_v25 = vadd.f32 %v4081_v61, %v8377_v20 }
0x153c   :  { %v6325_v32 = vpop.f32.mrf.mxu0 }
0x153e   :  { %v3992_v10 = vpop.f32.mrf.mxu0 }
0x1540   :  { %v6339_v30 = vpop.f32.mrf.mxu0 }
0x1541   :  { %v4176_v3 = vadd.f32 %v6339_v30, %v6325_v32 }
0x1542   :  { %v4170_v45 = vpop.f32.mrf.mxu0 }
0x1543   :  { %v4171_v63 = vadd.f32 %v4170_v45, %v3992_v10  ;;  %v4180_v15 = vadd.f32 %v4176_v3, %v4087_v41 }
0x1545   :  { %v4179_v0 = vadd.f32 %v4171_v63, %v4082_v25 }
0x1547   :  { %6348 = vmatprep.mubr.msk.f32.mxu1 %vm241_vm10, %v4179_v0  ;;  %v4444_v0 = vld [vmem:[#allocation2 + $0x1b8] sm:$0xff] }
0x1548   :  { %6349 = vmatmul.mubr.msk.f32.vlgmr.msra.gmra.mxu1 %vm241_vm10, %v4180_v15  ;;  %6362 = vmatprep.subr.mxu1 %v4444_v0  ;;  %v4443_v15 = vld [vmem:[#allocation2 + $0x1b0] sm:$0xff] }
0x1549   :  { %6363 = vmatpush3.msra.mxu1 %v4444_v0 }
0x154a   :  { %6364 = vmatprep.subr.mxu1 %v4443_v15 }
0x154b   :  { %6365 = vmatpush3.msra.mxu1 %v4443_v15 }
0x1608   :  { %v6350_v52 = vpop.f32.mrf.mxu1 }
0x1609   :  { %v4267_v11 = vadd.f32 %v6350_v52, %v4188_v7  ;;  %v4441_v52 = vld [vmem:[#allocation2 + $0x1a0] sm:$0xff] }
0x160a   :  { %v4261_v2 = vpop.f32.mrf.mxu1 }
0x160b   :  { %v4262_v34 = vadd.f32 %v4261_v2, %v4188_v7  ;;  %4274 = vrot.lane.b32.xlu1 %v4267_v11, %s6823_s0  ;;  %v4442_v7 = vld [vmem:[#allocation2 + $0x1a8] sm:$0xff]  ;;  %v4353_v11 = vrot.slane %v8236_v19, %v8073_v1 }
0x160c   :  { %6366 = vmatprep.subr.mxu1 %v4442_v7 }
0x160d   :  { %4272 = vrot.lane.b32.xlu0 %v4262_v34, %s6823_s0  ;;  %6367 = vmatpush3.msra.mxu1 %v4442_v7 }
0x160e   :  { %6368 = vmatprep.subr.mxu1 %v4441_v52 }
0x160f   :  { %6369 = vmatpush3.msra.mxu1 %v4441_v52 }
0x1610   :  { %6384 = vmatprep.subr.mxu1 %v8686_v17 }
0x167d   :  { %v4275_v20 = vpop.permute.xlu1 %4274 }
0x167e   :  { %v8436_v6 = vadd.f32 %v4275_v20, %v8242_v43 }
0x167f   :  { %v4273_v23 = vpop.permute.xlu0 %4272 }
0x1680   :  { %v4278_v33 = vadd.f32 %v4273_v23, %v8244_v57  ;;  %4284 = vrot.lane.b32.xlu1 %v8436_v6, %s6822_s23  ;;  %v4297_v28 = vmul.f32 %v8436_v6, %v8436_v6 }
0x1682   :  { %4282 = vrot.lane.b32.xlu0 %v4278_v33, %s6822_s23  ;;  %v4296_v53 = vmul.f32 %v4278_v33, %v4278_v33 }
0x1684   :  { %4302 = vrot.lane.b32.xlu1 %v4297_v28, %s6822_s23  ;;  %v4448_v28 = vrot.slane %v8236_v19, %v2350_v55 }
0x1686   :  { %4300 = vrot.lane.b32.xlu0 %v4296_v53, %s6822_s23 }
0x16f2   :  { %v4285_v42 = vpop.permute.xlu1 %4284 }
0x16f3   :  { %v4291_v43 = vsel %vm241_vm10, %v4285_v42, 0.0 }
0x16f4   :  { %4292 = vadd.xlane.f32.xlu1 %v4291_v43  ;;  %v4283_v47 = vpop.permute.xlu0 %4282 }
0x16f5   :  { %v4288_v57 = vsel %vm241_vm10, %v4283_v47, 0.0 }
0x16f6   :  { %4289 = vadd.xlane.f32.xlu0 %v4288_v57  ;;  %v4303_v9 = vpop.permute.xlu1 %4302 }
0x16f7   :  { %v4309_v56 = vsel %vm241_vm10, %v4303_v9, 0.0 }
0x16f8   :  { %v4301_v37 = vpop.permute.xlu0 %4300 }
0x16f9   :  { %v4306_v36 = vsel %vm241_vm10, %v4301_v37, 0.0 }
0x16fa   :  { %4307 = vadd.xlane.f32.xlu0 %v4306_v36 }
0x16fe   :  { %4310 = vadd.xlane.f32.xlu0 %v4309_v56 }
0x1705   :  { %4331 = vrot.lane.b32.xlu1 %v4329_v60, %s6823_s0 }
0x1714   :  { %4341 = vrot.lane.b32.xlu0 %v4339_v54, %s6823_s0 }
0x177d   :  { %v4293_v24 = vpop.xlane.xlu1 %4292 }
0x177e   :  { %v4295_v31 = vmul.f32 0.03125, %v4293_v24 }
0x177f   :  { %v4290_v29 = vpop.xlane.xlu0 %4289 }
0x1780   :  { %v4294_v5 = vmul.f32 0.03125, %v4290_v29  ;;  %v4315_v40 = vmul.f32 %v4295_v31, %v4295_v31  ;;  %v4319_v32 = vsub.f32 %v8436_v6, %v4295_v31  ;;  %v4589_v31 = vrot.slane %v8236_v19, %v2671_v35  ;;  %v4610_v35 = vld [vmem:[#allocation2 + $0x1e0] sm:$0xff] }
0x1781   :  { %v4332_v12 = vpop.permute.xlu1 %4331 }
0x1782   :  { %v4314_v58 = vmul.f32 %v4294_v5, %v4294_v5  ;;  %v4318_v18 = vsub.f32 %v4278_v33, %v4294_v5 }
0x1783   :  { %v4308_v38 = vpop.xlane.xlu0 %4307 }
0x1784   :  { %v4312_v50 = vmul.f32 0.03125, %v4308_v38 }
0x1786   :  { %v4316_v62 = vsub.f32 %v4312_v50, %v4314_v58  ;;  %v3262_v58 = vld [vmem:[#allocation2 + $0x208] sm:$0xff] }
0x1787   :  { %v4311_v4 = vpop.xlane.xlu0 %4310  ;;  %v4599_v50 = vrot.slane %v3262_v58, %v8698_v16  ;;  %v4857_v58 = vld [vmem:[#allocation2 + $0x248] sm:$0xff] }
0x1788   :  { %v4320_v39 = vadd.f32 1e-05, %v4316_v62  ;;  %v4313_v44 = vmul.f32 0.03125, %v4311_v4  ;;  %v4613_v62 = vld [vmem:[#allocation2 + $0x1f8] sm:$0xff]  ;;  %v4612_v4 = vld [vmem:[#allocation2 + $0x1f0] sm:$0xff] }
0x178a   :  { %6780 = vrsqrt.f32 %v4320_v39  ;;  %v4317_v49 = vsub.f32 %v4313_v44, %v4315_v40  ;;  %v4609_v40 = vld [vmem:[#allocation2 + $0x1d8] sm:$0xff]  ;;  %v4608_v39 = vld [vmem:[#allocation2 + $0x1d0] sm:$0xff]  ;;  %v4611_v44 = vld [vmem:[#allocation2 + $0x1e8] sm:$0xff] }
0x178b   :  { %v4342_v46 = vpop.permute.xlu0 %4341 }
0x178c   :  { %v4321_v22 = vadd.f32 1e-05, %v4317_v49 }
0x178e   :  { %6782 = vrsqrt.f32 %v4321_v22 }
0x1797   :  { %v6781_v8 = vpop.eup %6780 }
0x1798   :  { %v4324_v59 = vmul.f32 %v6781_v8, %v4318_v18 }
0x179a   :  { %v4334_v10 = vmul.f32 %v4332_v12, %v4324_v59 }
0x179b   :  { %v6783_v61 = vpop.eup %6782 }
0x179c   :  { %v4325_v30 = vmul.f32 %v6783_v61, %v4319_v32  ;;  %v4344_v3 = vadd.f32 %v4342_v46, %v4334_v10 }
0x179e   :  { %v4335_v45 = vmul.f32 %v4332_v12, %v4325_v30  ;;  %4356 = vrot.lane.b32.xlu1 %v4344_v3, %s6822_s23 }
0x17a0   :  { %v4345_v25 = vadd.f32 %v4342_v46, %v4335_v45  ;;  %v4606_v45 = vld [vmem:[#allocation2 + $0x1c0] sm:$0xff] }
0x17a2   :  { %4358 = vrot.lane.b32.xlu1 %v4345_v25, %s6822_s23 }
0x1810   :  { %v4357_v63 = vpop.permute.xlu1 %4356 }
0x1811   :  { %6359 = vmatprep.mubr.msk.f32.mxu0 %vm241_vm10, %v4357_v63 }
0x1814   :  { %v4359_v41 = vpop.permute.xlu1 %4358 }
0x1815   :  { %6360 = vmatmul.mubr.msk.f32.vlgmr.msra.gmra.mxu0 %vm241_vm10, %v4359_v41 }
0x1816   :  { %6381 = vmatprep.mubr.msk.f32.mxu0 %vm6821_vm0, %v8686_v17  ;;  %6374 = vmatpush3.msra.mxu0 %v4613_v62  ;;  %v8541_v62 = vsub.s32 1, %v8691_v21  ;;  %v4854_v21 = vld [vmem:[#allocation2 + $0x230] sm:$0xff] }
0x1817   :  { %6375 = vmatprep.subr.mxu0 %v8686_v17 }
0x1818   :  { %6376 = vmatpush3.msra.mxu0 %v4612_v4  ;;  %v4856_v4 = vld [vmem:[#allocation2 + $0x240] sm:$0xff] }
0x1819   :  { %6377 = vmatprep.subr.mxu0 %v8686_v17 }
0x181a   :  { %6378 = vmatpush3.msra.mxu0 %v4611_v44  ;;  %v6793_v44 = vld [vmem:[#allocation2 + $0x148] sm:$0xff] }
0x181b   :  { %6379 = vmatprep.subr.mxu0 %v8686_v17 }
0x181c   :  { %6380 = vmatpush3.msra.mxu0 %v4610_v35  ;;  %v3258_v35 = vrot.slane %v6793_v44, %v8541_v62  ;;  %v5116_v44 = vld [vmem:[#allocation2 + $0x3a0] sm:$0xff] }
0x181d   :  { %6395 = vmatprep.subr.mxu0 %v8686_v17 }
0x18d5   :  { %v6361_v2 = vpop.f32.mrf.mxu0 }
0x18d6   :  { %v4436_v34 = vadd.f32 %v6361_v2, %v4353_v11 }
0x18d7   :  { %v4430_v20 = vpop.f32.mrf.mxu0 }
0x18d8   :  { %v4431_v6 = vadd.f32 %v4430_v20, %v4353_v11  ;;  %v4440_v33 = vmax.f32 %v4436_v34, 0.0 }
0x18da   :  { %v4439_v23 = vmax.f32 %v4431_v6, 0.0 }
0x18dc   :  { %6370 = vmatprep.mubr.msk.f32.mxu1 %vm241_vm10, %v4439_v23  ;;  %v4771_v23 = vld [vmem:[#allocation2 + $0x210] sm:$0xff] }
0x18dd   :  { %6371 = vmatmul.mubr.msk.f32.vlgmr.msra.gmra.mxu1 %vm241_vm10, %v4440_v33 }
0x18de   :  { %6392 = vmatprep.mubr.msk.f32.mxu1 %vm6821_vm0, %v8686_v17  ;;  %6385 = vmatpush3.msra.mxu1 %v4609_v40  ;;  %v4872_v40 = vld [vmem:[#allocation2 + $0x2c0] sm:$0xff] }
0x18df   :  { %6386 = vmatprep.subr.mxu1 %v8686_v17 }
0x18e0   :  { %6387 = vmatpush3.msra.mxu1 %v4608_v39  ;;  %v4855_v39 = vld [vmem:[#allocation2 + $0x238] sm:$0xff] }
0x18e1   :  { %6388 = vmatprep.subr.mxu1 %v8686_v17 }
0x199d   :  { %v6372_v53 = vpop.f32.mrf.mxu1 }
0x199e   :  { %v4527_v42 = vadd.f32 %v6372_v53, %v4448_v28  ;;  %v4866_v53 = vld [vmem:[#allocation2 + $0x290] sm:$0xff] }
0x199f   :  { %v4521_v43 = vpop.f32.mrf.mxu1 }
0x19a0   :  { %v4522_v47 = vadd.f32 %v4521_v43, %v4448_v28  ;;  %4534 = vrot.lane.b32.xlu1 %v4527_v42, %s6823_s0  ;;  %v4770_v28 = vld [vmem:[%s8635_s2] sm:$0xff]  ;;  %v4882_v43 = vld [vmem:[#allocation2 + $0x310] sm:$0xff] }
0x19a2   :  { %4532 = vrot.lane.b32.xlu0 %v4522_v47, %s6823_s0  ;;  %v4865_v47 = vld [vmem:[#allocation2 + $0x288] sm:$0xff] }
0x1a12   :  { %v4535_v57 = vpop.permute.xlu1 %4534 }
0x1a13   :  { %v8478_v37 = vadd.f32 %v4535_v57, %v4345_v25  ;;  %v4881_v57 = vld [vmem:[#allocation2 + $0x308] sm:$0xff] }
0x1a14   :  { %v4533_v36 = vpop.permute.xlu0 %4532 }
0x1a15   :  { %v8480_v9 = vadd.f32 %v4533_v36, %v4344_v3  ;;  %4544 = vrot.lane.b32.xlu1 %v8478_v37, %s6822_s23  ;;  %v4557_v55 = vmul.f32 %v8478_v37, %v8478_v37  ;;  %v4607_v3 = vld [vmem:[#allocation2 + $0x1c8] sm:$0xff]  ;;  %v4880_v36 = vld [vmem:[#allocation2 + $0x300] sm:$0xff] }
0x1a16   :  { %6389 = vmatpush3.msra.mxu1 %v4607_v3 }
0x1a17   :  { %4542 = vrot.lane.b32.xlu0 %v8480_v9, %s6822_s23  ;;  %v4556_v56 = vmul.f32 %v8480_v9, %v8480_v9  ;;  %6390 = vmatprep.subr.mxu1 %v8686_v17 }
0x1a18   :  { %6391 = vmatpush3.msra.mxu1 %v4606_v45 }
0x1a19   :  { %4562 = vrot.lane.b32.xlu1 %v4557_v55, %s6822_s23  ;;  %6435 = vmatprep.subr.mxu1 %v8686_v17  ;;  %v4879_v55 = vld [vmem:[#allocation2 + $0x2f8] sm:$0xff] }
0x1a1b   :  { %4560 = vrot.lane.b32.xlu0 %v4556_v56, %s6822_s23  ;;  %v4862_v56 = vld [vmem:[#allocation2 + $0x270] sm:$0xff] }
0x1a87   :  { %v4545_v60 = vpop.permute.xlu1 %4544 }
0x1a88   :  { %v4551_v54 = vsel %vm241_vm10, %v4545_v60, 0.0  ;;  %v4878_v60 = vld [vmem:[#allocation2 + $0x2f0] sm:$0xff] }
0x1a89   :  { %4552 = vadd.xlane.f32.xlu1 %v4551_v54  ;;  %v4543_v26 = vpop.permute.xlu0 %4542  ;;  %v4861_v54 = vld [vmem:[#allocation2 + $0x268] sm:$0xff] }
0x1a8a   :  { %v4548_v14 = vsel %vm241_vm10, %v4543_v26, 0.0  ;;  %v4877_v26 = vld [vmem:[#allocation2 + $0x2e8] sm:$0xff] }
0x1a8b   :  { %4549 = vadd.xlane.f32.xlu0 %v4548_v14  ;;  %v4563_v24 = vpop.permute.xlu1 %4562  ;;  %v4860_v14 = vld [vmem:[#allocation2 + $0x260] sm:$0xff] }
0x1a8c   :  { %v4569_v38 = vsel %vm241_vm10, %v4563_v24, 0.0  ;;  %v4875_v24 = vld [vmem:[#allocation2 + $0x2d8] sm:$0xff] }
0x1a8d   :  { %v4561_v29 = vpop.permute.xlu0 %4560 }
0x1a8e   :  { %v4566_v5 = vsel %vm241_vm10, %v4561_v29, 0.0  ;;  %v4876_v29 = vld [vmem:[#allocation2 + $0x2e0] sm:$0xff] }
0x1a8f   :  { %4567 = vadd.xlane.f32.xlu0 %v4566_v5  ;;  %v4859_v5 = vld [vmem:[#allocation2 + $0x258] sm:$0xff] }
0x1a93   :  { %4570 = vadd.xlane.f32.xlu0 %v4569_v38  ;;  %v4858_v38 = vld [vmem:[#allocation2 + $0x250] sm:$0xff] }
0x1a9a   :  { %4591 = vrot.lane.b32.xlu1 %v4589_v31, %s6823_s0  ;;  %v4874_v31 = vld [vmem:[#allocation2 + $0x2d0] sm:$0xff] }
0x1aa9   :  { %4601 = vrot.lane.b32.xlu0 %v4599_v50, %s6823_s0  ;;  %v4873_v50 = vld [vmem:[#allocation2 + $0x2c8] sm:$0xff] }
0x1b12   :  { %v4553_v22 = vpop.xlane.xlu1 %4552 }
0x1b13   :  { %v4555_v51 = vmul.f32 0.03125, %v4553_v22  ;;  %v4852_v22 = vld [vmem:[#allocation2 + $0x220] sm:$0xff] }
0x1b14   :  { %v4550_v19 = vpop.xlane.xlu0 %4549 }
0x1b15   :  { %v4554_v49 = vmul.f32 0.03125, %v4550_v19  ;;  %v4575_v46 = vmul.f32 %v4555_v51, %v4555_v51  ;;  %v4579_v63 = vsub.f32 %v8478_v37, %v4555_v51  ;;  %v4864_v37 = vld [vmem:[#allocation2 + $0x280] sm:$0xff]  ;;  %v4853_v19 = vld [vmem:[#allocation2 + $0x228] sm:$0xff] }
0x1b16   :  { %v4592_v52 = vpop.permute.xlu1 %4591 }
0x1b17   :  { %v4574_v18 = vmul.f32 %v4554_v49, %v4554_v49  ;;  %v4578_v41 = vsub.f32 %v8480_v9, %v4554_v49  ;;  %v4863_v9 = vld [vmem:[#allocation2 + $0x278] sm:$0xff]  ;;  %v3259_v49 = vadd.f32 %v3258_v35, %v8371_v13  ;;  %v4870_v13 = vld [vmem:[#allocation2 + $0x2b0] sm:$0xff] }
0x1b18   :  { %v4568_v48 = vpop.xlane.xlu0 %4567  ;;  %v5115_v35 = vld [vmem:[#allocation2 + $0x398] sm:$0xff] }
0x1b19   :  { %v4572_v8 = vmul.f32 0.03125, %v4568_v48  ;;  %v4851_v48 = vld [vmem:[#allocation2 + $0x218] sm:$0xff]  ;;  %v3260_v51 = vmax.f32 %v3259_v49, 0.0  ;;  %v5219_v49 = vld [vmem:[#allocation2 + $0x480] sm:$0xff] }
0x1b1b   :  { %v4576_v12 = vsub.f32 %v4572_v8, %v4574_v18  ;;  %v4871_v18 = vld [vmem:[#allocation2 + $0x2b8] sm:$0xff]  ;;  %v4869_v8 = vld [vmem:[#allocation2 + $0x2a8] sm:$0xff] }
0x1b1c   :  { %v4571_v59 = vpop.xlane.xlu0 %4570 }
0x1b1d   :  { %v4580_v32 = vadd.f32 1e-05, %v4576_v12  ;;  %v4573_v10 = vmul.f32 0.03125, %v4571_v59  ;;  %v4868_v12 = vld [vmem:[#allocation2 + $0x2a0] sm:$0xff]  ;;  %v4867_v59 = vld [vmem:[#allocation2 + $0x298] sm:$0xff] }
0x1b1f   :  { %v4577_v61 = vsub.f32 %v4573_v10, %v4575_v46  ;;  %6784 = vrsqrt.f32 %v4580_v32  ;;  %v6794_v10 = vld [vmem:[#allocation2 + $0x200] sm:$0xff] }
0x1b20   :  { %v4602_v2 = vpop.permute.xlu0 %4601 }
0x1b21   :  { %v4581_v30 = vadd.f32 1e-05, %v4577_v61  ;;  %v4767_v61 = vrot.slane %v6794_v10, %v8541_v62 }
0x1b23   :  { %6786 = vrsqrt.f32 %v4581_v30 }
0x1b2c   :  { %v6785_v25 = vpop.eup %6784 }
0x1b2d   :  { %v4584_v15 = vmul.f32 %v6785_v25, %v4578_v41 }
0x1b2f   :  { %v4594_v34 = vmul.f32 %v4592_v52, %v4584_v15  ;;  %v5038_v15 = vld [vmem:[#allocation2 + $0x390] sm:$0xff] }
0x1b30   :  { %v6787_v0 = vpop.eup %6786 }
0x1b31   :  { %v4585_v7 = vmul.f32 %v6787_v0, %v4579_v63  ;;  %v4604_v6 = vadd.f32 %v4602_v2, %v4594_v34  ;;  %v5033_v34 = vld [vmem:[#allocation2 + $0x368] sm:$0xff] }
0x1b33   :  { %v4595_v11 = vmul.f32 %v4592_v52, %v4585_v7  ;;  %v5037_v7 = vld [vmem:[#allocation2 + $0x388] sm:$0xff]  ;;  %v5036_v52 = vld [vmem:[#allocation2 + $0x380] sm:$0xff] }
0x1b35   :  { %v4605_v20 = vadd.f32 %v4602_v2, %v4595_v11  ;;  %v5035_v11 = vld [vmem:[#allocation2 + $0x378] sm:$0xff]  ;;  %v5034_v2 = vld [vmem:[#allocation2 + $0x370] sm:$0xff] }
0x1b37   :  { %4615 = vrot.lane.b32.xlu1 %v4605_v20, %s6822_s23  ;;  %v5032_v20 = vld [vmem:[#allocation2 + $0x360] sm:$0xff] }
0x1b3b   :  { %4690 = vrot.lane.b32.xlu1 %v4604_v6, %s6822_s23  ;;  %v5031_v6 = vld [vmem:[#allocation2 + $0x358] sm:$0xff] }
0x1ba9   :  { %v4616_v33 = vpop.permute.xlu1 %4615 }
0x1baa   :  { %6382 = vmatmul.mubr.msk.f32.vlgmr.msra.gmra.mxu0 %vm241_vm10, %v4616_v33  ;;  %v5029_v33 = vld [vmem:[#allocation2 + $0x348] sm:$0xff] }
0x1bab   :  { %6396 = vmatpush3.msra.mxu0 %v4771_v23  ;;  %6397 = vmatprep.mubr.msk.f32.mxu0 %vm6821_vm0, %v8686_v17  ;;  %v5030_v23 = vld [vmem:[#allocation2 + $0x350] sm:$0xff] }
0x1bac   :  { %6400 = vmatprep.subr.mxu0 %v8686_v17 }
0x1bad   :  { %v4691_v42 = vpop.permute.xlu1 %4690 }
0x1bae   :  { %6393 = vmatmul.mubr.msk.f32.vlgmr.msra.gmra.mxu1 %vm241_vm10, %v4691_v42  ;;  %6398 = vmatmul.mubr.msk.f32.vlgmr.msra.gmra.mxu0 %vm4776_vm11, %v4770_v28  ;;  %v8576_v28 = vld [vmem:[#allocation2 + $0x498] sm:$0xff] }
0x1baf   :  { %6436 = vmatpush3.msra.mxu1 %v4866_v53  ;;  %6467 = vmatprep.mubr.msk.f32.mxu1 %vm6821_vm0, %v8686_v17  ;;  %v5028_v53 = vld [vmem:[#allocation2 + $0x340] sm:$0xff]  ;;  %v5027_v42 = vld [vmem:[#allocation2 + $0x338] sm:$0xff] }
0x1bb0   :  { %6437 = vmatprep.subr.mxu1 %v8686_v17  ;;  %6401 = vmatpush3.msra.mxu0 %v4882_v43  ;;  %v4775_v43 = vrot.slane %v8576_v28, %v8698_v16  ;;  %v5023_v16 = vld [vmem:[#allocation2 + $0x318] sm:$0xff] }
0x1bb1   :  { %6438 = vmatpush3.msra.mxu1 %v4865_v47  ;;  %6402 = vmatprep.subr.mxu0 %v8686_v17  ;;  %v5026_v47 = vld [vmem:[#allocation2 + $0x330] sm:$0xff] }
0x1bb2   :  { %6439 = vmatprep.subr.mxu1 %v8686_v17  ;;  %6403 = vmatpush3.msra.mxu0 %v4881_v57 }
0x1bb3   :  { %6440 = vmatpush3.msra.mxu1 %v4864_v37  ;;  %6404 = vmatprep.subr.mxu0 %v8686_v17  ;;  %v5025_v37 = vld [vmem:[#allocation2 + $0x328] sm:$0xff] }
0x1bb4   :  { %6441 = vmatprep.subr.mxu1 %v8686_v17  ;;  %6405 = vmatpush3.msra.mxu0 %v4880_v36 }
0x1bb5   :  { %6442 = vmatpush3.msra.mxu1 %v4863_v9  ;;  %6406 = vmatprep.subr.mxu0 %v8686_v17  ;;  %v5024_v9 = vld [vmem:[#allocation2 + $0x320] sm:$0xff] }
0x1bb6   :  { %6443 = vmatprep.subr.mxu1 %v8686_v17  ;;  %6407 = vmatpush3.msra.mxu0 %v4879_v55 }
0x1bb7   :  { %6444 = vmatpush3.msra.mxu1 %v4862_v56  ;;  %6408 = vmatprep.subr.mxu0 %v8686_v17 }
0x1bb8   :  { %6445 = vmatprep.subr.mxu1 %v8686_v17  ;;  %6409 = vmatpush3.msra.mxu0 %v4878_v60  ;;  %v5130_v60 = vld [vmem:[#allocation2 + $0x410] sm:$0xff] }
0x1bb9   :  { %6446 = vmatpush3.msra.mxu1 %v4861_v54  ;;  %6410 = vmatprep.subr.mxu0 %v8686_v17  ;;  %v5129_v54 = vld [vmem:[#allocation2 + $0x408] sm:$0xff] }
0x1bba   :  { %6447 = vmatprep.subr.mxu1 %v8686_v17  ;;  %6411 = vmatpush3.msra.mxu0 %v4877_v26  ;;  %v5128_v26 = vld [vmem:[#allocation2 + $0x400] sm:$0xff] }
0x1bbb   :  { %6448 = vmatpush3.msra.mxu1 %v4860_v14  ;;  %6412 = vmatprep.subr.mxu0 %v8686_v17  ;;  %v5127_v14 = vld [vmem:[#allocation2 + $0x3f8] sm:$0xff] }
0x1bbc   :  { %6449 = vmatprep.subr.mxu1 %v8686_v17  ;;  %6413 = vmatpush3.msra.mxu0 %v4876_v29  ;;  %v5126_v29 = vld [vmem:[#allocation2 + $0x3f0] sm:$0xff] }
0x1bbd   :  { %6450 = vmatpush3.msra.mxu1 %v4859_v5  ;;  %6414 = vmatprep.subr.mxu0 %v8686_v17  ;;  %v5125_v5 = vld [vmem:[#allocation2 + $0x3e8] sm:$0xff] }
0x1bbe   :  { %6451 = vmatprep.subr.mxu1 %v8686_v17  ;;  %6415 = vmatpush3.msra.mxu0 %v4875_v24  ;;  %v5124_v24 = vld [vmem:[#allocation2 + $0x3e0] sm:$0xff] }
0x1bbf   :  { %6452 = vmatpush3.msra.mxu1 %v4858_v38  ;;  %6416 = vmatprep.subr.mxu0 %v8686_v17  ;;  %v5123_v38 = vld [vmem:[#allocation2 + $0x3d8] sm:$0xff] }
0x1bc0   :  { %6453 = vmatprep.subr.mxu1 %v8686_v17  ;;  %6417 = vmatpush3.msra.mxu0 %v4874_v31  ;;  %v5122_v31 = vld [vmem:[#allocation2 + $0x3d0] sm:$0xff] }
0x1bc1   :  { %6454 = vmatpush3.msra.mxu1 %v4857_v58  ;;  %6418 = vmatprep.subr.mxu0 %v8686_v17  ;;  %v5121_v58 = vld [vmem:[#allocation2 + $0x3c8] sm:$0xff] }
0x1bc2   :  { %6455 = vmatprep.subr.mxu1 %v8686_v17  ;;  %6419 = vmatpush3.msra.mxu0 %v4873_v50  ;;  %v5120_v50 = vld [vmem:[#allocation2 + $0x3c0] sm:$0xff] }
0x1bc3   :  { %6456 = vmatpush3.msra.mxu1 %v4856_v4  ;;  %6420 = vmatprep.subr.mxu0 %v8686_v17  ;;  %v5119_v4 = vld [vmem:[#allocation2 + $0x3b8] sm:$0xff] }
0x1bc4   :  { %6457 = vmatprep.subr.mxu1 %v8686_v17  ;;  %6421 = vmatpush3.msra.mxu0 %v4872_v40  ;;  %v5118_v40 = vld [vmem:[#allocation2 + $0x3b0] sm:$0xff] }
0x1bc5   :  { %6458 = vmatpush3.msra.mxu1 %v4855_v39  ;;  %6422 = vmatprep.subr.mxu0 %v8686_v17  ;;  %v5117_v39 = vld [vmem:[#allocation2 + $0x3a8] sm:$0xff] }
0x1bc6   :  { %6459 = vmatprep.subr.mxu1 %v8686_v17  ;;  %6432 = vmatprep.mubr.msk.f32.mxu0 %vm6821_vm0, %v8686_v17 }
0x1bc7   :  { %6460 = vmatpush3.msra.mxu1 %v4854_v21  ;;  %6423 = vmatpush3.msra.mxu0 %v4871_v18  ;;  %v5221_v21 = vld [vmem:[#allocation2 + $0x490] sm:$0xff]  ;;  %v5215_v18 = vld [vmem:[#allocation2 + $0x460] sm:$0xff] }
0x1bc8   :  { %6461 = vmatprep.subr.mxu1 %v8686_v17  ;;  %6424 = vmatprep.subr.mxu0 %v8686_v17 }
0x1bc9   :  { %6462 = vmatpush3.msra.mxu1 %v4853_v19  ;;  %6425 = vmatpush3.msra.mxu0 %v4870_v13  ;;  %v5220_v19 = vld [vmem:[#allocation2 + $0x488] sm:$0xff]  ;;  %v5214_v13 = vld [vmem:[#allocation2 + $0x458] sm:$0xff] }
0x1bca   :  { %6463 = vmatprep.subr.mxu1 %v8686_v17  ;;  %6426 = vmatprep.subr.mxu0 %v8686_v17 }
0x1bcb   :  { %6464 = vmatpush3.msra.mxu1 %v4852_v22  ;;  %6427 = vmatpush3.msra.mxu0 %v4869_v8  ;;  %v5218_v22 = vld [vmem:[#allocation2 + $0x478] sm:$0xff]  ;;  %v5213_v8 = vld [vmem:[#allocation2 + $0x450] sm:$0xff] }
0x1bcc   :  { %6465 = vmatprep.subr.mxu1 %v8686_v17  ;;  %6428 = vmatprep.subr.mxu0 %v8686_v17 }
0x1bcd   :  { %6466 = vmatpush3.msra.mxu1 %v4851_v48  ;;  %6429 = vmatpush3.msra.mxu0 %v4868_v12  ;;  %v5217_v48 = vld [vmem:[#allocation2 + $0x470] sm:$0xff]  ;;  %v5212_v12 = vld [vmem:[#allocation2 + $0x448] sm:$0xff] }
0x1bce   :  { %6468 = vmatmul.mubr.f32.vlgmr.msra.gmra.mxu1 %v3260_v51  ;;  %6505 = vmatprep.subr.mxu1 %v8686_v17  ;;  %v5216_v51 = vld [vmem:[#allocation2 + $0x468] sm:$0xff] }
0x1bcf   :  { %6537 = vmatprep.mubr.msk.f32.mxu1 %vm6821_vm0, %v8686_v17  ;;  %6430 = vmatprep.subr.mxu0 %v8686_v17 }
0x1bd0   :  { %6431 = vmatpush3.msra.mxu0 %v4867_v59  ;;  %6506 = vmatpush3.msra.mxu1 %v5130_v60  ;;  %v5211_v59 = vld [vmem:[#allocation2 + $0x440] sm:$0xff] }
0x1bd1   :  { %6470 = vmatprep.subr.mxu0 %v8686_v17  ;;  %6507 = vmatprep.subr.mxu1 %v8686_v17 }
0x1bd2   :  { %6508 = vmatpush3.msra.mxu1 %v5129_v54 }
0x1bd3   :  { %6509 = vmatprep.subr.mxu1 %v8686_v17 }
0x1bd4   :  { %6510 = vmatpush3.msra.mxu1 %v5128_v26 }
0x1bd5   :  { %6511 = vmatprep.subr.mxu1 %v8686_v17 }
0x1bd6   :  { %6512 = vmatpush3.msra.mxu1 %v5127_v14 }
0x1bd7   :  { %6513 = vmatprep.subr.mxu1 %v8686_v17 }
0x1bd8   :  { %6514 = vmatpush3.msra.mxu1 %v5126_v29 }
0x1bd9   :  { %6515 = vmatprep.subr.mxu1 %v8686_v17 }
0x1bda   :  { %6516 = vmatpush3.msra.mxu1 %v5125_v5 }
0x1bdb   :  { %6517 = vmatprep.subr.mxu1 %v8686_v17 }
0x1bdc   :  { %6518 = vmatpush3.msra.mxu1 %v5124_v24 }
0x1bdd   :  { %6519 = vmatprep.subr.mxu1 %v8686_v17 }
0x1bde   :  { %6520 = vmatpush3.msra.mxu1 %v5123_v38 }
0x1bdf   :  { %6521 = vmatprep.subr.mxu1 %v8686_v17 }
0x1be0   :  { %6522 = vmatpush3.msra.mxu1 %v5122_v31 }
0x1be1   :  { %6523 = vmatprep.subr.mxu1 %v8686_v17 }
0x1be2   :  { %6524 = vmatpush3.msra.mxu1 %v5121_v58 }
0x1be3   :  { %6525 = vmatprep.subr.mxu1 %v8686_v17 }
0x1be4   :  { %6526 = vmatpush3.msra.mxu1 %v5120_v50 }
0x1be5   :  { %6527 = vmatprep.subr.mxu1 %v8686_v17 }
0x1be6   :  { %6528 = vmatpush3.msra.mxu1 %v5119_v4 }
0x1be7   :  { %6529 = vmatprep.subr.mxu1 %v8686_v17 }
0x1be8   :  { %6530 = vmatpush3.msra.mxu1 %v5118_v40 }
0x1be9   :  { %6531 = vmatprep.subr.mxu1 %v8686_v17 }
0x1bea   :  { %6532 = vmatpush3.msra.mxu1 %v5117_v39 }
0x1beb   :  { %6533 = vmatprep.subr.mxu1 %v8686_v17 }
0x1bec   :  { %6534 = vmatpush3.msra.mxu1 %v5116_v44 }
0x1bed   :  { %6535 = vmatprep.subr.mxu1 %v8686_v17 }
0x1bee   :  { %6536 = vmatpush3.msra.mxu1 %v5115_v35 }
0x1c6a   :  { %v4685_v46 = vpop.f32.mrf.mxu0 }
0x1c6c   :  { %v6383_v32 = vpop.f32.mrf.mxu0 }
0x1c6d   :  { %v5209_v32 = vld [vmem:[#allocation2 + $0x430] sm:$0xff] }
0x1c6e   :  { %v4760_v30 = vpop.f32.mrf.mxu1  ;;  %v4846_v3 = vpop.f32.mrf.mxu0 }
0x1c6f   :  { %v4761_v45 = vadd.f32 %v4760_v30, %v4685_v46  ;;  %v4847_v57 = vadd.f32 %v4846_v3, %v4775_v43  ;;  %v5210_v46 = vld [vmem:[#allocation2 + $0x438] sm:$0xff]  ;;  %v5042_v30 = vrot.slane %v8576_v28, %v8541_v62  ;;  %v5134_v62 = vrot.slane %v8576_v28, %v7910_v27 }
0x1c70   :  { %v6394_v25 = vpop.f32.mrf.mxu1  ;;  %v6399_v63 = vpop.f32.mrf.mxu0 }
0x1c71   :  { %v4768_v41 = vadd.f32 %v4767_v61, %v4761_v45  ;;  %v4850_v56 = vmax.f32 %v4847_v57, 0.0 }
0x1c73   :  { %v4769_v0 = vmax.f32 %v4768_v41, 0.0 }
0x1c75   :  { %6433 = vmatmul.mubr.f32.vlgmr.msra.gmra.mxu0 %v4769_v0 }
0x1c76   :  { %6471 = vmatpush3.msra.mxu0 %v5038_v15  ;;  %6502 = vmatprep.mubr.msk.f32.mxu0 %vm6821_vm0, %v8686_v17  ;;  %v5208_v15 = vld [vmem:[#allocation2 + $0x428] sm:$0xff] }
0x1c77   :  { %6472 = vmatprep.subr.mxu0 %v8686_v17 }
0x1c78   :  { %6473 = vmatpush3.msra.mxu0 %v5037_v7  ;;  %v5207_v7 = vld [vmem:[#allocation2 + $0x420] sm:$0xff] }
0x1c79   :  { %6474 = vmatprep.subr.mxu0 %v8686_v17 }
0x1c7a   :  { %6475 = vmatpush3.msra.mxu0 %v5036_v52  ;;  %v5206_v52 = vld [vmem:[#allocation2 + $0x418] sm:$0xff] }
0x1c7b   :  { %6476 = vmatprep.subr.mxu0 %v8686_v17 }
0x1c7c   :  { %6477 = vmatpush3.msra.mxu0 %v5035_v11 }
0x1c7d   :  { %6478 = vmatprep.subr.mxu0 %v8686_v17 }
0x1c7e   :  { %6479 = vmatpush3.msra.mxu0 %v5034_v2 }
0x1c7f   :  { %6480 = vmatprep.subr.mxu0 %v8686_v17 }
0x1c80   :  { %6481 = vmatpush3.msra.mxu0 %v5033_v34 }
0x1c81   :  { %6482 = vmatprep.subr.mxu0 %v8686_v17 }
0x1c82   :  { %6483 = vmatpush3.msra.mxu0 %v5032_v20 }
0x1c83   :  { %6484 = vmatprep.subr.mxu0 %v8686_v17 }
0x1c84   :  { %6485 = vmatpush3.msra.mxu0 %v5031_v6  ;;  %v5225_v6 = vrot.slane %v8576_v28, %v8073_v1 }
0x1c85   :  { %6486 = vmatprep.subr.mxu0 %v8686_v17 }
0x1c86   :  { %6487 = vmatpush3.msra.mxu0 %v5030_v23 }
0x1c87   :  { %6488 = vmatprep.subr.mxu0 %v8686_v17 }
0x1c88   :  { %6489 = vmatpush3.msra.mxu0 %v5029_v33  ;;  %v8707_v33 = vld [vmem:[#allocation5_spill] sm:$0xff] }
0x1c89   :  { %6490 = vmatprep.subr.mxu0 %v8686_v17 }
0x1c8a   :  { %6491 = vmatpush3.msra.mxu0 %v5028_v53 }
0x1c8b   :  { %6492 = vmatprep.subr.mxu0 %v8686_v17 }
0x1c8c   :  { %6493 = vmatpush3.msra.mxu0 %v5027_v42 }
0x1c8d   :  { %6494 = vmatprep.subr.mxu0 %v8686_v17 }
0x1c8e   :  { %v8584_v36 = vpop.f32.mrf.mxu1  ;;  %6495 = vmatpush3.msra.mxu0 %v5026_v47 }
0x1c8f   :  { %6496 = vmatprep.subr.mxu0 %v8686_v17 }
0x1c90   :  { %v6469_v55 = vpop.f32.mrf.mxu1  ;;  %6497 = vmatpush3.msra.mxu0 %v5025_v37 }
0x1c91   :  { %6498 = vmatprep.subr.mxu0 %v8686_v17 }
0x1c92   :  { %6499 = vmatpush3.msra.mxu0 %v5024_v9 }
0x1c93   :  { %6500 = vmatprep.subr.mxu0 %v8686_v17 }
0x1c94   :  { %6501 = vmatpush3.msra.mxu0 %v5023_v16 }
0x1c95   :  { %6503 = vmatmul.mubr.f32.vlgmr.msra.gmra.mxu0 %v4850_v56  ;;  %6540 = vmatprep.subr.mxu0 %v8686_v17 }
0x1c96   :  { %6572 = vmatprep.mubr.msk.f32.mxu0 %vm6821_vm0, %v8686_v17  ;;  %6541 = vmatpush3.msra.mxu0 %v5221_v21  ;;  %vm5296_vm0 = vcmp.lt.s32.totalorder %v8707_v33, 7 }
0x1c97   :  { %6542 = vmatprep.subr.mxu0 %v8686_v17 }
0x1c98   :  { %6543 = vmatpush3.msra.mxu0 %v5220_v19 }
0x1c99   :  { %6544 = vmatprep.subr.mxu0 %v8686_v17 }
0x1c9a   :  { %6545 = vmatpush3.msra.mxu0 %v5219_v49 }
0x1c9b   :  { %6546 = vmatprep.subr.mxu0 %v8686_v17 }
0x1c9c   :  { %6547 = vmatpush3.msra.mxu0 %v5218_v22 }
0x1c9d   :  { %6548 = vmatprep.subr.mxu0 %v8686_v17 }
0x1c9e   :  { %6549 = vmatpush3.msra.mxu0 %v5217_v48 }
0x1c9f   :  { %6550 = vmatprep.subr.mxu0 %v8686_v17 }
0x1ca0   :  { %6551 = vmatpush3.msra.mxu0 %v5216_v51 }
0x1ca1   :  { %6552 = vmatprep.subr.mxu0 %v8686_v17 }
0x1ca2   :  { %6553 = vmatpush3.msra.mxu0 %v5215_v18 }
0x1ca3   :  { %6554 = vmatprep.subr.mxu0 %v8686_v17 }
0x1ca4   :  { %6555 = vmatpush3.msra.mxu0 %v5214_v13 }
0x1ca5   :  { %6556 = vmatprep.subr.mxu0 %v8686_v17 }
0x1ca6   :  { %6557 = vmatpush3.msra.mxu0 %v5213_v8 }
0x1ca7   :  { %6558 = vmatprep.subr.mxu0 %v8686_v17 }
0x1ca8   :  { %6559 = vmatpush3.msra.mxu0 %v5212_v12 }
0x1ca9   :  { %6560 = vmatprep.subr.mxu0 %v8686_v17 }
0x1caa   :  { %6561 = vmatpush3.msra.mxu0 %v5211_v59 }
0x1cab   :  { %6562 = vmatprep.subr.mxu0 %v8686_v17 }
0x1cac   :  { %6563 = vmatpush3.msra.mxu0 %v5210_v46 }
0x1cad   :  { %6564 = vmatprep.subr.mxu0 %v8686_v17 }
0x1cae   :  { %6565 = vmatpush3.msra.mxu0 %v5209_v32 }
0x1caf   :  { %6566 = vmatprep.subr.mxu0 %v8686_v17 }
0x1cb0   :  { %6567 = vmatpush3.msra.mxu0 %v5208_v15 }
0x1cb1   :  { %6568 = vmatprep.subr.mxu0 %v8686_v17 }
0x1cb2   :  { %6569 = vmatpush3.msra.mxu0 %v5207_v7 }
0x1cb3   :  { %6570 = vmatprep.subr.mxu0 %v8686_v17 }
0x1cb4   :  { %6571 = vmatpush3.msra.mxu0 %v5206_v52 }
0x1d35   :  { %v4949_v10 = vpop.f32.mrf.mxu0 }
0x1d36   :  { %v5020_v45 = vadd.f32 %v8584_v36, %v4949_v10 }
0x1d37   :  { %v6434_v61 = vpop.f32.mrf.mxu0 }
0x1d55   :  { %v5109_v3 = vpop.f32.mrf.mxu0 }
0x1d56   :  { %v5110_v25 = vadd.f32 %v5109_v3, %v5042_v30 }
0x1d57   :  { %v6504_v63 = vpop.f32.mrf.mxu0 }
0x1d58   :  { %v5113_v41 = vadd.f32 %v5110_v25, %v5020_v45 }
0x1d5a   :  { %v5114_v0 = vmax.f32 %v5113_v41, 0.0 }
0x1d5c   :  { %6538 = vmatmul.mubr.f32.vlgmr.msra.gmra.mxu1 %v5114_v0 }
0x1e1c   :  { %v5201_v11 = vpop.f32.mrf.mxu1 }
0x1e1d   :  { %v5202_v2 = vadd.f32 %v5201_v11, %v5134_v62 }
0x1e1e   :  { %v6539_v34 = vpop.f32.mrf.mxu1 }
0x1e1f   :  { %v5205_v20 = vmax.f32 %v5202_v2, 0.0 }
0x1e21   :  { %6573 = vmatmul.mubr.f32.vlgmr.msra.gmra.mxu0 %v5205_v20 }
0x1ee1   :  { %v5292_v23 = vpop.f32.mrf.mxu0 }
0x1ee2   :  { %v5293_v53 = vadd.f32 %v5292_v23, %v5225_v6 }
0x1ee3   :  { %v6574_v42 = vpop.f32.mrf.mxu0 }
0x1ee4   :  { %v5297_v43 = vsel %vm5296_vm0, %v5293_v53, -1e+30 }
0x1ee5   :  { %5298 = vmax.xlane.f32.xlu0 %v5297_v43 }
0x1f6e   :  { %v5299_v17 = vpop.xlane.xlu0 %5298 }
0x1f6f   :  { %v5300_v47 = vsub.f32 %v5297_v43, %v5299_v17 }
0x1f71   :  { %v5301_v57 = vmul.f32 1.442695, %v5300_v47 }
0x1f73   :  { %6788 = vpow2.f32 %v5301_v57 }
0x1f80   :  { %v6789_v27 = vpop.eup %6788 }
0x1f81   :  { %5303 = vadd.xlane.f32.xlu1 %v6789_v27 }
0x200a   :  { %v5304_v37 = vpop.xlane.xlu1 %5303 }
0x200b   :  { %6790 = vrcp.f32 %v5304_v37 }
0x2018   :  { %v6791_v36 = vpop.eup %6790 }
0x2019   :  { %v5306_v9 = vmul.f32 %v6791_v36, %v6789_v27 }
0x201b   :  { %v5307_v55 = vsel %vm5296_vm0, %v5306_v9, %v5293_v53 }
0x201c   :  { %5308 = vst [vmem:[%s8637_s4] sm:$0xff] %v5307_v55 }
0x201d   :  { %5313 = vsyncpa [#allocation3], 1 }

</bundles_post_ra>
